<compile_context>
chip_gen: v7x
topology: tpu7x:2x2x1
jax: 0.10.0
libtpu: 0.0.40
codegen_flags: <defaults>
</compile_context>

<pallas_src>
import functools

import jax
import jax.numpy as jnp
from jax.experimental import pallas as pl
from jax.experimental.pallas import tpu as pltpu

EPS = 1e-3   # BatchNorm2d eps
N_K = 2      # K-axis (3072) grid split


def se_conv_bn_kernel(x1_ref, w1t_ref, b1_ref, x2_ref, w2t_ref, g_ref, bta_ref,
                      o_ref, acc_ref, *, inv_count):
    k = pl.program_id(0)

    @pl.when(k == 0)
    def _init():
        acc_ref[...] = jnp.zeros_like(acc_ref)

    # SE gate for this K-chunk: [1, C_in] @ [C_in, tk] -> lane-dense [1, tk]
    gate = jnp.dot(x1_ref[...], w1t_ref[...],
                   preferred_element_type=jnp.float32)
    gate = jax.nn.sigmoid(gate + b1_ref[...])

    # Broadcast gate over the spatial (sublane) axis and gate the activations.
    y = x2_ref[...] * gate.astype(x2_ref.dtype)          # [HW_pad, tk] bf16

    # 1x1 conv (no bias): [HW_pad, tk] @ [tk, C_out] accumulated in f32.
    acc_ref[...] += jnp.dot(y, w2t_ref[...],
                            preferred_element_type=jnp.float32)

    @pl.when(k == pl.num_programs(0) - 1)
    def _finalize():
        z = acc_ref[...]                                   # [HW_pad, C_out] f32
        # BatchNorm (training mode, biased variance) over the HW axis.
        # Padded rows of z are exactly zero, so summing all rows and dividing
        # by the true element count (HW) is exact.
        mean = jnp.sum(z, axis=0, keepdims=True) * inv_count
        ex2 = jnp.sum(z * z, axis=0, keepdims=True) * inv_count
        var = ex2 - mean * mean
        zn = (z - mean) * jax.lax.rsqrt(var + EPS)
        o_ref[...] = zn * g_ref[...] + bta_ref[...]


@jax.jit
def module_forward(x757, x754, w1, b1, w2, gamma, beta):
    """x757: [1,128,1,1], x754: [1,3072,7,7] -> [1,512,7,7] (float32)."""
    n1, c_in, h1, w1_sp = x757.shape
    n2, c_mid, H, W = x754.shape
    assert n1 == 1 and n2 == 1 and h1 == 1 and w1_sp == 1
    c_out = w2.shape[0]
    hw = H * W
    hw_pad = max(16, ((hw + 15) // 16) * 16)   # bf16-friendly sublane count (49 -> 64)
    tk = c_mid // N_K
    assert c_mid % N_K == 0

    # Layout plumbing (in a real graph the weight transposes/casts fold into
    # constants): spatial-major activations, K-major weights, bf16 MXU inputs.
    x1_row = x757.reshape(1, c_in).astype(jnp.bfloat16)                  # [1, 128]
    w1_t = w1.reshape(c_mid, c_in).T.astype(jnp.bfloat16)                # [128, 3072]
    b1_row = b1.reshape(1, c_mid).astype(jnp.float32)                    # [1, 3072]
    x2_t = x754.reshape(c_mid, hw).T                                      # [49, 3072]
    x2_t = jnp.pad(x2_t, ((0, hw_pad - hw), (0, 0))).astype(jnp.bfloat16)  # [64, 3072]
    w2_t = w2.reshape(c_out, c_mid).T.astype(jnp.bfloat16)               # [3072, 512]
    g_row = gamma.reshape(1, c_out).astype(jnp.float32)                  # [1, 512]
    bta_row = beta.reshape(1, c_out).astype(jnp.float32)                 # [1, 512]

    out_t = pl.pallas_call(
        functools.partial(se_conv_bn_kernel, inv_count=1.0 / hw),
        out_shape=jax.ShapeDtypeStruct((hw_pad, c_out), jnp.float32),
        grid=(N_K,),
        in_specs=[
            pl.BlockSpec((1, c_in), lambda k: (0, 0)),        # x1 row
            pl.BlockSpec((c_in, tk), lambda k: (0, k)),       # w1.T chunk
            pl.BlockSpec((1, tk), lambda k: (0, k)),          # b1 chunk
            pl.BlockSpec((hw_pad, tk), lambda k: (0, k)),     # x2 chunk
            pl.BlockSpec((tk, c_out), lambda k: (k, 0)),      # w2.T chunk
            pl.BlockSpec((1, c_out), lambda k: (0, 0)),       # gamma
            pl.BlockSpec((1, c_out), lambda k: (0, 0)),       # beta
        ],
        out_specs=pl.BlockSpec((hw_pad, c_out), lambda k: (0, 0)),
        scratch_shapes=[pltpu.VMEM((hw_pad, c_out), jnp.float32)],
        compiler_params=pltpu.CompilerParams(
            dimension_semantics=("arbitrary",)),
    )(x1_row, w1_t, b1_row, x2_t, w2_t, g_row, bta_row)

    # Back to NCHW.
    return out_t[:hw].T.reshape(1, c_out, H, W)


def _reference_f32(x757, x754, w1, b1, w2, gamma, beta):
    """Pure-JAX f32 reference of the original module math."""
    _, c_in, _, _ = x757.shape
    _, c_mid, H, W = x754.shape
    c_out = w2.shape[0]
    hw = H * W
    x1 = x757.reshape(c_in, 1)
    x2 = x754.reshape(c_mid, hw)
    s = jax.nn.sigmoid(
        jnp.dot(w1.reshape(c_mid, c_in), x1,
                precision=jax.lax.Precision.HIGHEST) + b1.reshape(-1, 1))
    y = s * x2
    z = jnp.dot(w2.reshape(c_out, c_mid), y, precision=jax.lax.Precision.HIGHEST)
    mean = jnp.mean(z, axis=1, keepdims=True)
    var = jnp.mean((z - mean) ** 2, axis=1, keepdims=True)
    zn = (z - mean) * jax.lax.rsqrt(var + EPS)
    return (zn * gamma.reshape(-1, 1) + beta.reshape(-1, 1)).reshape(1, c_out, H, W)


def _reference_matched(x757, x754, w1, b1, w2, gamma, beta):
    """Reference using the same bf16 input rounding as the kernel (f32 accumulate)."""
    _, c_in, _, _ = x757.shape
    _, c_mid, H, W = x754.shape
    c_out = w2.shape[0]
    hw = H * W
    x1_row = x757.reshape(1, c_in).astype(jnp.bfloat16)
    w1_t = w1.reshape(c_mid, c_in).T.astype(jnp.bfloat16)
    x2_t = x754.reshape(c_mid, hw).T.astype(jnp.bfloat16)
    w2_t = w2.reshape(c_out, c_mid).T.astype(jnp.bfloat16)
    gate = jax.nn.sigmoid(
        jnp.dot(x1_row, w1_t, preferred_element_type=jnp.float32)
        + b1.reshape(1, c_mid).astype(jnp.float32))
    y = x2_t * gate.astype(jnp.bfloat16)
    z = jnp.dot(y, w2_t, preferred_element_type=jnp.float32)   # [49, 512]
    mean = jnp.mean(z, axis=0, keepdims=True)
    var = jnp.mean(z * z, axis=0, keepdims=True) - mean * mean
    zn = (z - mean) * jax.lax.rsqrt(var + EPS)
    out = zn * gamma.reshape(1, c_out) + beta.reshape(1, c_out)
    return out.T.reshape(1, c_out, H, W)


if __name__ == "__main__":
    key = jax.random.PRNGKey(0)
    k = jax.random.split(key, 7)

    # Input shapes fixed by the module spec.
    x757 = jax.random.normal(k[0], (1, 128, 1, 1), dtype=jnp.float32)
    x754 = jax.random.normal(k[1], (1, 3072, 7, 7), dtype=jnp.float32)

    # Deterministic synthetic parameters (PyTorch conv-weight layouts).
    w1 = jax.random.normal(k[2], (3072, 128, 1, 1), dtype=jnp.float32) * 0.05   # conv2d237 weight
    b1 = jax.random.normal(k[3], (3072,), dtype=jnp.float32) * 0.05             # conv2d237 bias
    w2 = jax.random.normal(k[4], (512, 3072, 1, 1), dtype=jnp.float32) * 0.02   # conv2d238 weight
    gamma = 1.0 + 0.1 * jax.random.normal(k[5], (512,), dtype=jnp.float32)      # BN weight
    beta = 0.1 * jax.random.normal(k[6], (512,), dtype=jnp.float32)             # BN bias

    out = module_forward(x757, x754, w1, b1, w2, gamma, beta)
    out = jax.block_until_ready(out)
    assert out.shape == (1, 512, 7, 7), out.shape

    # Tight check vs. a precision-matched (bf16 inputs, f32 accumulate) reference.
    ref_m = _reference_matched(x757, x754, w1, b1, w2, gamma, beta)
    assert jnp.allclose(out, ref_m, rtol=2e-2, atol=2e-2), \
        float(jnp.max(jnp.abs(out - ref_m)))

    # Looser check vs. the full-f32 module math (bf16 weight/activation rounding).
    ref_f = _reference_f32(x757, x754, w1, b1, w2, gamma, beta)
    assert jnp.allclose(out, ref_f, rtol=5e-2, atol=5e-2), \
        float(jnp.max(jnp.abs(out - ref_f)))

    print("KERNEL_OK")
</pallas_src>

<mosaic_0001>
module attributes {stable_mosaic.version = 11 : i64} {
  func.func @se_conv_bn_kernel(%arg0: i32, %arg1: memref<1x128xbf16, #tpu.memory_space<vmem>>, %arg2: memref<128x1536xbf16, #tpu.memory_space<vmem>>, %arg3: memref<1x1536xf32, #tpu.memory_space<vmem>>, %arg4: memref<64x1536xbf16, #tpu.memory_space<vmem>>, %arg5: memref<1536x512xbf16, #tpu.memory_space<vmem>>, %arg6: memref<1x512xf32, #tpu.memory_space<vmem>>, %arg7: memref<1x512xf32, #tpu.memory_space<vmem>>, %arg8: memref<64x512xf32, #tpu.memory_space<vmem>>, %arg9: memref<64x512xf32, #tpu.memory_space<vmem>>) attributes {dimension_semantics = [#tpu.dimension_semantics<arbitrary>], iteration_bounds = array<i64: 2>, scalar_prefetch = 0 : i64, scratch_operands = 1 : i64, tpu.core_type = #tpu.core_type<tc>, window_params = [{pipeline_mode = #tpu.pipeline_mode<synchronous>, transform_indices = @transform_0, window_bounds = array<i64: 1, 128>}, {transform_indices = @transform_1, window_bounds = array<i64: 128, 1536>}, {transform_indices = @transform_2, window_bounds = array<i64: 1, 1536>}, {transform_indices = @transform_3, window_bounds = array<i64: 64, 1536>}, {transform_indices = @transform_4, window_bounds = array<i64: 1536, 512>}, {pipeline_mode = #tpu.pipeline_mode<synchronous>, transform_indices = @transform_5, window_bounds = array<i64: 1, 512>}, {pipeline_mode = #tpu.pipeline_mode<synchronous>, transform_indices = @transform_6, window_bounds = array<i64: 1, 512>}, {pipeline_mode = #tpu.pipeline_mode<synchronous>, transform_indices = @transform_7, window_bounds = array<i64: 64, 512>}]} {
    %c0_i32 = arith.constant 0 : i32
    %0 = arith.cmpi eq, %arg0, %c0_i32 : i32
    %1 = arith.extui %0 : i1 to i32
    %c0_i32_0 = arith.constant 0 : i32
    %2 = arith.cmpi ne, %1, %c0_i32_0 : i32
    scf.if %2 {
      %cst_17 = arith.constant 0.000000e+00 : f32
      %25 = vector.broadcast %cst_17 : f32 to vector<64x512xf32>
      %c0_18 = arith.constant 0 : index
      %c0_19 = arith.constant 0 : index
      %26 = vector.load %arg9[%c0_18, %c0_19] : memref<64x512xf32, #tpu.memory_space<vmem>>, vector<64x512xf32>
      tpu.vector_store %arg9[%c0_18, %c0_19], %25 {strides = array<i32>} : memref<64x512xf32, #tpu.memory_space<vmem>>, vector<64x512xf32>,
    } else {
    }
    %c0 = arith.constant 0 : index
    %c0_1 = arith.constant 0 : index
    %3 = vector.load %arg1[%c0, %c0_1] : memref<1x128xbf16, #tpu.memory_space<vmem>>, vector<1x128xbf16>
    %c0_2 = arith.constant 0 : index
    %c0_3 = arith.constant 0 : index
    %4 = vector.load %arg2[%c0_2, %c0_3] : memref<128x1536xbf16, #tpu.memory_space<vmem>>, vector<128x1536xbf16>
    %cst = arith.constant dense<0.000000e+00> : vector<1x1536xf32>
    %5 = tpu.matmul %3, %4, %cst {dimension_numbers = #tpu.dot_dimension_numbers<[1], [0], [0], [1], [0, 0, 1, 1], [], []>} : vector<1x128xbf16>, vector<128x1536xbf16>, vector<1x1536xf32> -> vector<1x1536xf32>
    %c0_4 = arith.constant 0 : index
    %c0_5 = arith.constant 0 : index
    %6 = vector.load %arg3[%c0_4, %c0_5] : memref<1x1536xf32, #tpu.memory_space<vmem>>, vector<1x1536xf32>
    %7 = arith.addf %5, %6 : vector<1x1536xf32>
    %8 = arith.negf %7 : vector<1x1536xf32>
    %9 = math.exp %8 : vector<1x1536xf32>
    %cst_6 = arith.constant 1.000000e+00 : f32
    %10 = vector.broadcast %cst_6 : f32 to vector<1x1536xf32>
    %11 = arith.addf %10, %9 : vector<1x1536xf32>
    %12 = arith.divf %10, %11 : vector<1x1536xf32>
    %c0_7 = arith.constant 0 : index
    %c0_8 = arith.constant 0 : index
    %13 = vector.load %arg4[%c0_7, %c0_8] : memref<64x1536xbf16, #tpu.memory_space<vmem>>, vector<64x1536xbf16>
    %14 = arith.truncf %12 : vector<1x1536xf32> to vector<1x1536xbf16>
    %15 = vector.broadcast %14 : vector<1x1536xbf16> to vector<64x1536xbf16>
    %16 = arith.mulf %13, %15 : vector<64x1536xbf16>
    %c0_9 = arith.constant 0 : index
    %c0_10 = arith.constant 0 : index
    %17 = vector.load %arg9[%c0_9, %c0_10] : memref<64x512xf32, #tpu.memory_space<vmem>>, vector<64x512xf32>
    %c0_11 = arith.constant 0 : index
    %c0_12 = arith.constant 0 : index
    %18 = vector.load %arg5[%c0_11, %c0_12] : memref<1536x512xbf16, #tpu.memory_space<vmem>>, vector<1536x512xbf16>
    %cst_13 = arith.constant dense<0.000000e+00> : vector<64x512xf32>
    %19 = tpu.matmul %16, %18, %cst_13 {dimension_numbers = #tpu.dot_dimension_numbers<[1], [0], [0], [1], [0, 0, 1, 1], [], []>} : vector<64x1536xbf16>, vector<1536x512xbf16>, vector<64x512xf32> -> vector<64x512xf32>
    %20 = arith.addf %17, %19 : vector<64x512xf32>
    %c0_14 = arith.constant 0 : index
    %c0_15 = arith.constant 0 : index
    %21 = vector.load %arg9[%c0_14, %c0_15] : memref<64x512xf32, #tpu.memory_space<vmem>>, vector<64x512xf32>
    tpu.vector_store %arg9[%c0_14, %c0_15], %20 {strides = array<i32>} : memref<64x512xf32, #tpu.memory_space<vmem>>, vector<64x512xf32>,
    %c1_i32 = arith.constant 1 : i32
    %22 = arith.cmpi eq, %arg0, %c1_i32 : i32
    %23 = arith.extui %22 : i1 to i32
    %c0_i32_16 = arith.constant 0 : i32
    %24 = arith.cmpi ne, %23, %c0_i32_16 : i32
    scf.if %24 {
      %c0_17 = arith.constant 0 : index
      %c0_18 = arith.constant 0 : index
      %25 = vector.load %arg9[%c0_17, %c0_18] : memref<64x512xf32, #tpu.memory_space<vmem>>, vector<64x512xf32>
      %cst_19 = arith.constant dense<0.000000e+00> : vector<512xf32>
      %26 = vector.multi_reduction <add>, %25, %cst_19 [0] : vector<64x512xf32> to vector<512xf32>
      %27 = vector.shape_cast %26 : vector<512xf32> to vector<1x512xf32>
      %cst_20 = arith.constant 0.0204081628 : f32
      %28 = vector.broadcast %cst_20 : f32 to vector<1x512xf32>
      %29 = arith.mulf %27, %28 : vector<1x512xf32>
      %30 = arith.mulf %25, %25 : vector<64x512xf32>
      %cst_21 = arith.constant dense<0.000000e+00> : vector<512xf32>
      %31 = vector.multi_reduction <add>, %30, %cst_21 [0] : vector<64x512xf32> to vector<512xf32>
      %32 = vector.shape_cast %31 : vector<512xf32> to vector<1x512xf32>
      %cst_22 = arith.constant 0.0204081628 : f32
      %33 = vector.broadcast %cst_22 : f32 to vector<1x512xf32>
      %34 = arith.mulf %32, %33 : vector<1x512xf32>
      %35 = arith.mulf %29, %29 : vector<1x512xf32>
      %36 = arith.subf %34, %35 : vector<1x512xf32>
      %37 = vector.broadcast %29 : vector<1x512xf32> to vector<64x512xf32>
      %38 = arith.subf %25, %37 : vector<64x512xf32>
      %cst_23 = arith.constant 1.000000e-03 : f32
      %39 = vector.broadcast %cst_23 : f32 to vector<1x512xf32>
      %40 = arith.addf %36, %39 : vector<1x512xf32>
      %41 = math.rsqrt %40 : vector<1x512xf32>
      %42 = vector.broadcast %41 : vector<1x512xf32> to vector<64x512xf32>
      %43 = arith.mulf %38, %42 : vector<64x512xf32>
      %c0_24 = arith.constant 0 : index
      %c0_25 = arith.constant 0 : index
      %44 = vector.load %arg6[%c0_24, %c0_25] : memref<1x512xf32, #tpu.memory_space<vmem>>, vector<1x512xf32>
      %45 = vector.broadcast %44 : vector<1x512xf32> to vector<64x512xf32>
      %46 = arith.mulf %43, %45 : vector<64x512xf32>
      %c0_26 = arith.constant 0 : index
      %c0_27 = arith.constant 0 : index
      %47 = vector.load %arg7[%c0_26, %c0_27] : memref<1x512xf32, #tpu.memory_space<vmem>>, vector<1x512xf32>
      %48 = vector.broadcast %47 : vector<1x512xf32> to vector<64x512xf32>
      %49 = arith.addf %46, %48 : vector<64x512xf32>
      %c0_28 = arith.constant 0 : index
      %c0_29 = arith.constant 0 : index
      %50 = vector.load %arg8[%c0_28, %c0_29] : memref<64x512xf32, #tpu.memory_space<vmem>>, vector<64x512xf32>
      tpu.vector_store %arg8[%c0_28, %c0_29], %49 {strides = array<i32>} : memref<64x512xf32, #tpu.memory_space<vmem>>, vector<64x512xf32>,
    } else {
    }
    return
  }
  func.func @transform_0(%arg0: i32) -> (i32, i32) {
    %c0_i32 = arith.constant 0 : i32
    %c0_i32_0 = arith.constant 0 : i32
    %c0_i32_1 = arith.constant 0 : i32
    return %c0_i32, %c0_i32_0 : i32, i32
  }
  func.func @transform_1(%arg0: i32) -> (i32, i32) {
    %c0_i32 = arith.constant 0 : i32
    %c0_i32_0 = arith.constant 0 : i32
    return %c0_i32, %arg0 : i32, i32
  }
  func.func @transform_2(%arg0: i32) -> (i32, i32) {
    %c0_i32 = arith.constant 0 : i32
    %c0_i32_0 = arith.constant 0 : i32
    return %c0_i32, %arg0 : i32, i32
  }
  func.func @transform_3(%arg0: i32) -> (i32, i32) {
    %c0_i32 = arith.constant 0 : i32
    %c0_i32_0 = arith.constant 0 : i32
    return %c0_i32, %arg0 : i32, i32
  }
  func.func @transform_4(%arg0: i32) -> (i32, i32) {
    %c0_i32 = arith.constant 0 : i32
    %c0_i32_0 = arith.constant 0 : i32
    return %arg0, %c0_i32 : i32, i32
  }
  func.func @transform_5(%arg0: i32) -> (i32, i32) {
    %c0_i32 = arith.constant 0 : i32
    %c0_i32_0 = arith.constant 0 : i32
    %c0_i32_1 = arith.constant 0 : i32
    return %c0_i32, %c0_i32_0 : i32, i32
  }
  func.func @transform_6(%arg0: i32) -> (i32, i32) {
    %c0_i32 = arith.constant 0 : i32
    %c0_i32_0 = arith.constant 0 : i32
    %c0_i32_1 = arith.constant 0 : i32
    return %c0_i32, %c0_i32_0 : i32, i32
  }
  func.func @transform_7(%arg0: i32) -> (i32, i32) {
    %c0_i32 = arith.constant 0 : i32
    %c0_i32_0 = arith.constant 0 : i32
    %c0_i32_1 = arith.constant 0 : i32
    return %c0_i32, %c0_i32_0 : i32, i32
  }
}

</mosaic_0001>

<bundles_post_ra>
// kernel: module_forward.1
= control target key start
LH: loop header
LB: loop body
LE: loop exit
PB: predicated region body
PF: predicated region fallthrough
CT: control target
= control target key end

     0   :  { %s7460_s24 = smov 0   ;;  %s7462_s25 = smov 0   ;;  %s9025_s0 = inlined_call_operand.vmem [shape: bf16[1,128], index: 0, kind: input, shape index: {}]   ;;  %s9026_s1 = inlined_call_operand.vmem [shape: bf16[128,3072], index: 1, kind: input, shape index: {}]   ;;  %s9027_s2 = inlined_call_operand.vmem [shape: f32[1,3072], index: 2, kind: input, shape index: {}]   ;;  %s9028_s3 = inlined_call_operand.vmem [shape: bf16[64,3072], index: 3, kind: input, shape index: {}]   ;;  %s9029_s4 = inlined_call_operand.vmem [shape: bf16[3072,512], index: 4, kind: input, shape index: {}]   ;;  %s9030_s5 = inlined_call_operand.vmem [shape: f32[1,512], index: 5, kind: input, shape index: {}]   ;;  %s9031_s6 = inlined_call_operand.vmem [shape: f32[1,512], index: 6, kind: input, shape index: {}]   ;;  %s9032_s7 = inlined_call_operand.vmem [shape: f32[64,512], index: 7, kind: output, shape index: {}]  }
   0x1   :  { %s7464_s26 = smov 0  }
   0x2 LB: > { %s7476_s27 = sadd.s32 4294967295, %s7416_s26   ;;  %s7479_s28 = sadd.s32 1, %s7416_s26   ;;  %s7416_s26 = sphi %s7464_s26, %s9046_s26   ;;  %s7412_s25 = sphi %s7462_s25, %s9045_s25   ;;  %s7408_s24 = sphi %s7460_s24, %s9044_s24  }
   0x3   : > { %s42_s29 = ssub.s32 %s7416_s26, %s7479_s28  ;;  %s45_s30 = sadd.s32 1, %s7412_s25 }
   0x4   : > { %p43_p0 = scmp.eq.s32.totalorder %s42_s29, 0  ;;  %p52_p1 = scmp.ne.s32.totalorder %s7412_s25, %s7408_s24 }
   0x5   : > { %p53_p2 = scmp.eq.s32.totalorder %s7416_s26, 0  ;;  %p5869_p4 = scmp.ge.s32.totalorder %s7416_s26, 2 }
   0x6   : > { %s7488_s8 = scalar_select %p43_p0, %s7412_s25, %s45_s30  }
   0x7   : > { %p7490_p3 = por %p53_p2, %p52_p1  ;;  %228 = sbr.rel (%p5869_p4) target bundleno = 96 (0x60), region = 28 }
   0xe   : > { %231 = sbr.rel (!%p7490_p3) target bundleno = 67 (0x43), region = 32  ;;  %s233_s10 = sand.u32 (%p7490_p3), 1, %s7412_s25  }
   0xf   : > { %s6425_s11 = smul.u32 (%p7490_p3), 48, %s7416_s26 }
  0x10   : > { %s6588_s12 = smul.u32 (%p7490_p3), 768, %s233_s10 }
  0x11   : > { %s7502_s15 = scalar_lea.vmem (%p7490_p3), %s9026_s1, %s6425_s11 }
  0x12   : > { %v251_v0 = vld [vmem:[%s7502_s15] sm:$0xff] (%p7490_p3)  ;;  %v253_v1 = vld [vmem:[%s7502_s15 + $0x8] sm:$0xff] (%p7490_p3)  ;;  %v255_v2 = vld [vmem:[%s7502_s15 + $0x10] sm:$0xff] (%p7490_p3)  ;;  %s7507_s16 = scalar_lea.vmem (%p7490_p3), [#allocation3], %s6588_s12 }
  0x13   : > { %252 = vst [vmem:[%s7507_s16] sm:$0xff] (%p7490_p3), %v251_v0  ;;  %254 = vst [vmem:[%s7507_s16 + $0x8] sm:$0xff] (%p7490_p3), %v253_v1  ;;  %v257_v3 = vld [vmem:[%s7502_s15 + $0x18] sm:$0xff] (%p7490_p3)  ;;  %v259_v4 = vld [vmem:[%s7502_s15 + $0x20] sm:$0xff] (%p7490_p3) }
  0x14   : > { %256 = vst [vmem:[%s7507_s16 + $0x10] sm:$0xff] (%p7490_p3), %v255_v2  ;;  %v261_v5 = vld [vmem:[%s7502_s15 + $0x28] sm:$0xff] (%p7490_p3)  ;;  %258 = vst [vmem:[%s7507_s16 + $0x18] sm:$0xff] (%p7490_p3), %v257_v3  ;;  %v263_v6 = vld [vmem:[%s7502_s15 + $0x60] sm:$0xff] (%p7490_p3) }
  0x15   : > { %260 = vst [vmem:[%s7507_s16 + $0x20] sm:$0xff] %v259_v4  ;;  %262 = vst [vmem:[%s7507_s16 + $0x28] sm:$0xff] %v261_v5  ;;  %v265_v7 = vld [vmem:[%s7502_s15 + $0x68] sm:$0xff]  ;;  %v267_v8 = vld [vmem:[%s7502_s15 + $0x70] sm:$0xff] }
  0x16   : > { %264 = vst [vmem:[%s7507_s16 + $0x30] sm:$0xff] %v263_v6  ;;  %266 = vst [vmem:[%s7507_s16 + $0x38] sm:$0xff] %v265_v7  ;;  %v269_v9 = vld [vmem:[%s7502_s15 + $0x78] sm:$0xff]  ;;  %v271_v10 = vld [vmem:[%s7502_s15 + $0x80] sm:$0xff] }
  0x17   : > { %268 = vst [vmem:[%s7507_s16 + $0x40] sm:$0xff] %v267_v8  ;;  %v273_v11 = vld [vmem:[%s7502_s15 + $0x88] sm:$0xff]  ;;  %270 = vst [vmem:[%s7507_s16 + $0x48] sm:$0xff] %v269_v9  ;;  %v275_v12 = vld [vmem:[%s7502_s15 + $0xc0] sm:$0xff] }
  0x18   : > { %272 = vst [vmem:[%s7507_s16 + $0x50] sm:$0xff] %v271_v10  ;;  %274 = vst [vmem:[%s7507_s16 + $0x58] sm:$0xff] %v273_v11  ;;  %v277_v13 = vld [vmem:[%s7502_s15 + $0xc8] sm:$0xff]  ;;  %v279_v14 = vld [vmem:[%s7502_s15 + $0xd0] sm:$0xff] }
  0x19   : > { %276 = vst [vmem:[%s7507_s16 + $0x60] sm:$0xff] %v275_v12  ;;  %278 = vst [vmem:[%s7507_s16 + $0x68] sm:$0xff] %v277_v13  ;;  %v281_v15 = vld [vmem:[%s7502_s15 + $0xd8] sm:$0xff]  ;;  %v283_v16 = vld [vmem:[%s7502_s15 + $0xe0] sm:$0xff] }
  0x1a   : > { %280 = vst [vmem:[%s7507_s16 + $0x70] sm:$0xff] %v279_v14  ;;  %v285_v17 = vld [vmem:[%s7502_s15 + $0xe8] sm:$0xff]  ;;  %282 = vst [vmem:[%s7507_s16 + $0x78] sm:$0xff] %v281_v15  ;;  %v287_v18 = vld [vmem:[%s7502_s15 + $0x120] sm:$0xff] }
  0x1b   : > { %284 = vst [vmem:[%s7507_s16 + $0x80] sm:$0xff] %v283_v16  ;;  %286 = vst [vmem:[%s7507_s16 + $0x88] sm:$0xff] %v285_v17  ;;  %v289_v19 = vld [vmem:[%s7502_s15 + $0x128] sm:$0xff]  ;;  %v291_v20 = vld [vmem:[%s7502_s15 + $0x130] sm:$0xff] }
  0x1c   : > { %288 = vst [vmem:[%s7507_s16 + $0x90] sm:$0xff] %v287_v18  ;;  %290 = vst [vmem:[%s7507_s16 + $0x98] sm:$0xff] %v289_v19  ;;  %v293_v21 = vld [vmem:[%s7502_s15 + $0x138] sm:$0xff]  ;;  %v295_v22 = vld [vmem:[%s7502_s15 + $0x140] sm:$0xff] }
  0x1d   : > { %292 = vst [vmem:[%s7507_s16 + $0xa0] sm:$0xff] %v291_v20  ;;  %v297_v23 = vld [vmem:[%s7502_s15 + $0x148] sm:$0xff]  ;;  %294 = vst [vmem:[%s7507_s16 + $0xa8] sm:$0xff] %v293_v21  ;;  %v299_v24 = vld [vmem:[%s7502_s15 + $0x180] sm:$0xff] }
  0x1e   : > { %296 = vst [vmem:[%s7507_s16 + $0xb0] sm:$0xff] %v295_v22  ;;  %298 = vst [vmem:[%s7507_s16 + $0xb8] sm:$0xff] %v297_v23  ;;  %v301_v25 = vld [vmem:[%s7502_s15 + $0x188] sm:$0xff]  ;;  %v303_v26 = vld [vmem:[%s7502_s15 + $0x190] sm:$0xff] }
  0x1f   : > { %300 = vst [vmem:[%s7507_s16 + $0xc0] sm:$0xff] %v299_v24  ;;  %302 = vst [vmem:[%s7507_s16 + $0xc8] sm:$0xff] %v301_v25  ;;  %v305_v27 = vld [vmem:[%s7502_s15 + $0x198] sm:$0xff]  ;;  %v307_v28 = vld [vmem:[%s7502_s15 + $0x1a0] sm:$0xff] }
  0x20   : > { %304 = vst [vmem:[%s7507_s16 + $0xd0] sm:$0xff] %v303_v26  ;;  %v309_v29 = vld [vmem:[%s7502_s15 + $0x1a8] sm:$0xff]  ;;  %306 = vst [vmem:[%s7507_s16 + $0xd8] sm:$0xff] %v305_v27  ;;  %v311_v30 = vld [vmem:[%s7502_s15 + $0x1e0] sm:$0xff] }
  0x21   : > { %308 = vst [vmem:[%s7507_s16 + $0xe0] sm:$0xff] %v307_v28  ;;  %310 = vst [vmem:[%s7507_s16 + $0xe8] sm:$0xff] %v309_v29  ;;  %v313_v31 = vld [vmem:[%s7502_s15 + $0x1e8] sm:$0xff]  ;;  %v315_v32 = vld [vmem:[%s7502_s15 + $0x1f0] sm:$0xff] }
  0x22   : > { %312 = vst [vmem:[%s7507_s16 + $0xf0] sm:$0xff] %v311_v30  ;;  %314 = vst [vmem:[%s7507_s16 + $0xf8] sm:$0xff] %v313_v31  ;;  %v317_v33 = vld [vmem:[%s7502_s15 + $0x1f8] sm:$0xff]  ;;  %v319_v34 = vld [vmem:[%s7502_s15 + $0x200] sm:$0xff] }
  0x23   : > { %316 = vst [vmem:[%s7507_s16 + $0x100] sm:$0xff] %v315_v32  ;;  %v321_v35 = vld [vmem:[%s7502_s15 + $0x208] sm:$0xff]  ;;  %318 = vst [vmem:[%s7507_s16 + $0x108] sm:$0xff] %v317_v33  ;;  %v323_v36 = vld [vmem:[%s7502_s15 + $0x240] sm:$0xff] }
  0x24   : > { %320 = vst [vmem:[%s7507_s16 + $0x110] sm:$0xff] %v319_v34  ;;  %322 = vst [vmem:[%s7507_s16 + $0x118] sm:$0xff] %v321_v35  ;;  %v325_v37 = vld [vmem:[%s7502_s15 + $0x248] sm:$0xff]  ;;  %v327_v38 = vld [vmem:[%s7502_s15 + $0x250] sm:$0xff] }
  0x25   : > { %324 = vst [vmem:[%s7507_s16 + $0x120] sm:$0xff] %v323_v36  ;;  %326 = vst [vmem:[%s7507_s16 + $0x128] sm:$0xff] %v325_v37  ;;  %v329_v39 = vld [vmem:[%s7502_s15 + $0x258] sm:$0xff]  ;;  %v331_v40 = vld [vmem:[%s7502_s15 + $0x260] sm:$0xff] }
  0x26   : > { %328 = vst [vmem:[%s7507_s16 + $0x130] sm:$0xff] %v327_v38  ;;  %v333_v41 = vld [vmem:[%s7502_s15 + $0x268] sm:$0xff]  ;;  %330 = vst [vmem:[%s7507_s16 + $0x138] sm:$0xff] %v329_v39  ;;  %v335_v42 = vld [vmem:[%s7502_s15 + $0x2a0] sm:$0xff] }
  0x27   : > { %332 = vst [vmem:[%s7507_s16 + $0x140] sm:$0xff] %v331_v40  ;;  %334 = vst [vmem:[%s7507_s16 + $0x148] sm:$0xff] %v333_v41  ;;  %v337_v43 = vld [vmem:[%s7502_s15 + $0x2a8] sm:$0xff]  ;;  %v339_v44 = vld [vmem:[%s7502_s15 + $0x2b0] sm:$0xff] }
  0x28   : > { %336 = vst [vmem:[%s7507_s16 + $0x150] sm:$0xff] %v335_v42  ;;  %338 = vst [vmem:[%s7507_s16 + $0x158] sm:$0xff] %v337_v43  ;;  %v341_v45 = vld [vmem:[%s7502_s15 + $0x2b8] sm:$0xff]  ;;  %v343_v46 = vld [vmem:[%s7502_s15 + $0x2c0] sm:$0xff] }
  0x29   : > { %340 = vst [vmem:[%s7507_s16 + $0x160] sm:$0xff] %v339_v44  ;;  %v345_v47 = vld [vmem:[%s7502_s15 + $0x2c8] sm:$0xff]  ;;  %342 = vst [vmem:[%s7507_s16 + $0x168] sm:$0xff] %v341_v45  ;;  %v347_v48 = vld [vmem:[%s7502_s15 + $0x300] sm:$0xff] }
  0x2a   : > { %344 = vst [vmem:[%s7507_s16 + $0x170] sm:$0xff] %v343_v46  ;;  %346 = vst [vmem:[%s7507_s16 + $0x178] sm:$0xff] %v345_v47  ;;  %v349_v49 = vld [vmem:[%s7502_s15 + $0x308] sm:$0xff]  ;;  %v351_v50 = vld [vmem:[%s7502_s15 + $0x310] sm:$0xff] }
  0x2b   : > { %348 = vst [vmem:[%s7507_s16 + $0x180] sm:$0xff] %v347_v48  ;;  %350 = vst [vmem:[%s7507_s16 + $0x188] sm:$0xff] %v349_v49  ;;  %v353_v51 = vld [vmem:[%s7502_s15 + $0x318] sm:$0xff]  ;;  %v355_v52 = vld [vmem:[%s7502_s15 + $0x320] sm:$0xff] }
  0x2c   : > { %352 = vst [vmem:[%s7507_s16 + $0x190] sm:$0xff] %v351_v50  ;;  %v357_v53 = vld [vmem:[%s7502_s15 + $0x328] sm:$0xff]  ;;  %354 = vst [vmem:[%s7507_s16 + $0x198] sm:$0xff] %v353_v51  ;;  %v359_v54 = vld [vmem:[%s7502_s15 + $0x360] sm:$0xff] }
  0x2d   : > { %356 = vst [vmem:[%s7507_s16 + $0x1a0] sm:$0xff] %v355_v52  ;;  %358 = vst [vmem:[%s7507_s16 + $0x1a8] sm:$0xff] %v357_v53  ;;  %v361_v55 = vld [vmem:[%s7502_s15 + $0x368] sm:$0xff]  ;;  %v363_v56 = vld [vmem:[%s7502_s15 + $0x370] sm:$0xff] }
  0x2e   : > { %360 = vst [vmem:[%s7507_s16 + $0x1b0] sm:$0xff] %v359_v54  ;;  %362 = vst [vmem:[%s7507_s16 + $0x1b8] sm:$0xff] %v361_v55  ;;  %v365_v57 = vld [vmem:[%s7502_s15 + $0x378] sm:$0xff]  ;;  %v367_v58 = vld [vmem:[%s7502_s15 + $0x380] sm:$0xff] }
  0x2f   : > { %364 = vst [vmem:[%s7507_s16 + $0x1c0] sm:$0xff] %v363_v56  ;;  %v369_v59 = vld [vmem:[%s7502_s15 + $0x388] sm:$0xff]  ;;  %366 = vst [vmem:[%s7507_s16 + $0x1c8] sm:$0xff] %v365_v57  ;;  %v371_v60 = vld [vmem:[%s7502_s15 + $0x3c0] sm:$0xff] }
  0x30   : > { %368 = vst [vmem:[%s7507_s16 + $0x1d0] sm:$0xff] %v367_v58  ;;  %370 = vst [vmem:[%s7507_s16 + $0x1d8] sm:$0xff] %v369_v59  ;;  %v373_v61 = vld [vmem:[%s7502_s15 + $0x3c8] sm:$0xff]  ;;  %v375_v62 = vld [vmem:[%s7502_s15 + $0x3d0] sm:$0xff] }
  0x31   : > { %372 = vst [vmem:[%s7507_s16 + $0x1e0] sm:$0xff] %v371_v60  ;;  %374 = vst [vmem:[%s7507_s16 + $0x1e8] sm:$0xff] %v373_v61  ;;  %v377_v63 = vld [vmem:[%s7502_s15 + $0x3d8] sm:$0xff]  ;;  %v379_v0 = vld [vmem:[%s7502_s15 + $0x3e0] sm:$0xff] }
  0x32   : > { %376 = vst [vmem:[%s7507_s16 + $0x1f0] sm:$0xff] %v375_v62  ;;  %v381_v1 = vld [vmem:[%s7502_s15 + $0x3e8] sm:$0xff]  ;;  %378 = vst [vmem:[%s7507_s16 + $0x1f8] sm:$0xff] %v377_v63  ;;  %v383_v2 = vld [vmem:[%s7502_s15 + $0x420] sm:$0xff] }
  0x33   : > { %380 = vst [vmem:[%s7507_s16 + $0x200] sm:$0xff] %v379_v0  ;;  %382 = vst [vmem:[%s7507_s16 + $0x208] sm:$0xff] %v381_v1  ;;  %v385_v3 = vld [vmem:[%s7502_s15 + $0x428] sm:$0xff]  ;;  %v387_v4 = vld [vmem:[%s7502_s15 + $0x430] sm:$0xff] }
  0x34   : > { %384 = vst [vmem:[%s7507_s16 + $0x210] sm:$0xff] %v383_v2  ;;  %386 = vst [vmem:[%s7507_s16 + $0x218] sm:$0xff] %v385_v3  ;;  %v389_v5 = vld [vmem:[%s7502_s15 + $0x438] sm:$0xff]  ;;  %v391_v6 = vld [vmem:[%s7502_s15 + $0x440] sm:$0xff] }
  0x35   : > { %388 = vst [vmem:[%s7507_s16 + $0x220] sm:$0xff] %v387_v4  ;;  %v393_v7 = vld [vmem:[%s7502_s15 + $0x448] sm:$0xff]  ;;  %390 = vst [vmem:[%s7507_s16 + $0x228] sm:$0xff] %v389_v5  ;;  %v395_v8 = vld [vmem:[%s7502_s15 + $0x480] sm:$0xff] }
  0x36   : > { %392 = vst [vmem:[%s7507_s16 + $0x230] sm:$0xff] %v391_v6  ;;  %394 = vst [vmem:[%s7507_s16 + $0x238] sm:$0xff] %v393_v7  ;;  %v397_v9 = vld [vmem:[%s7502_s15 + $0x488] sm:$0xff]  ;;  %v399_v10 = vld [vmem:[%s7502_s15 + $0x490] sm:$0xff] }
  0x37   : > { %396 = vst [vmem:[%s7507_s16 + $0x240] sm:$0xff] %v395_v8  ;;  %398 = vst [vmem:[%s7507_s16 + $0x248] sm:$0xff] %v397_v9  ;;  %v401_v11 = vld [vmem:[%s7502_s15 + $0x498] sm:$0xff]  ;;  %v403_v12 = vld [vmem:[%s7502_s15 + $0x4a0] sm:$0xff] }
  0x38   : > { %400 = vst [vmem:[%s7507_s16 + $0x250] sm:$0xff] %v399_v10  ;;  %v405_v13 = vld [vmem:[%s7502_s15 + $0x4a8] sm:$0xff]  ;;  %402 = vst [vmem:[%s7507_s16 + $0x258] sm:$0xff] %v401_v11  ;;  %v407_v14 = vld [vmem:[%s7502_s15 + $0x4e0] sm:$0xff] }
  0x39   : > { %404 = vst [vmem:[%s7507_s16 + $0x260] sm:$0xff] %v403_v12  ;;  %406 = vst [vmem:[%s7507_s16 + $0x268] sm:$0xff] %v405_v13  ;;  %v409_v15 = vld [vmem:[%s7502_s15 + $0x4e8] sm:$0xff]  ;;  %v411_v16 = vld [vmem:[%s7502_s15 + $0x4f0] sm:$0xff] }
  0x3a   : > { %408 = vst [vmem:[%s7507_s16 + $0x270] sm:$0xff] %v407_v14  ;;  %410 = vst [vmem:[%s7507_s16 + $0x278] sm:$0xff] %v409_v15  ;;  %v413_v17 = vld [vmem:[%s7502_s15 + $0x4f8] sm:$0xff]  ;;  %v415_v18 = vld [vmem:[%s7502_s15 + $0x500] sm:$0xff] }
  0x3b   : > { %412 = vst [vmem:[%s7507_s16 + $0x280] sm:$0xff] %v411_v16  ;;  %v417_v19 = vld [vmem:[%s7502_s15 + $0x508] sm:$0xff]  ;;  %414 = vst [vmem:[%s7507_s16 + $0x288] sm:$0xff] %v413_v17  ;;  %v419_v20 = vld [vmem:[%s7502_s15 + $0x540] sm:$0xff] }
  0x3c   : > { %416 = vst [vmem:[%s7507_s16 + $0x290] sm:$0xff] %v415_v18  ;;  %418 = vst [vmem:[%s7507_s16 + $0x298] sm:$0xff] %v417_v19  ;;  %v421_v21 = vld [vmem:[%s7502_s15 + $0x548] sm:$0xff]  ;;  %v423_v22 = vld [vmem:[%s7502_s15 + $0x550] sm:$0xff] }
  0x3d   : > { %420 = vst [vmem:[%s7507_s16 + $0x2a0] sm:$0xff] %v419_v20  ;;  %422 = vst [vmem:[%s7507_s16 + $0x2a8] sm:$0xff] %v421_v21  ;;  %v425_v23 = vld [vmem:[%s7502_s15 + $0x558] sm:$0xff]  ;;  %v427_v24 = vld [vmem:[%s7502_s15 + $0x560] sm:$0xff] }
  0x3e   : > { %424 = vst [vmem:[%s7507_s16 + $0x2b0] sm:$0xff] %v423_v22  ;;  %v429_v25 = vld [vmem:[%s7502_s15 + $0x568] sm:$0xff]  ;;  %426 = vst [vmem:[%s7507_s16 + $0x2b8] sm:$0xff] %v425_v23  ;;  %v431_v26 = vld [vmem:[%s7502_s15 + $0x5a0] sm:$0xff] }
  0x3f   : > { %428 = vst [vmem:[%s7507_s16 + $0x2c0] sm:$0xff] %v427_v24  ;;  %430 = vst [vmem:[%s7507_s16 + $0x2c8] sm:$0xff] %v429_v25  ;;  %v433_v27 = vld [vmem:[%s7502_s15 + $0x5a8] sm:$0xff]  ;;  %v435_v28 = vld [vmem:[%s7502_s15 + $0x5b0] sm:$0xff] }
  0x40   : > { %432 = vst [vmem:[%s7507_s16 + $0x2d0] sm:$0xff] %v431_v26  ;;  %434 = vst [vmem:[%s7507_s16 + $0x2d8] sm:$0xff] %v433_v27  ;;  %v437_v29 = vld [vmem:[%s7502_s15 + $0x5b8] sm:$0xff]  ;;  %v439_v30 = vld [vmem:[%s7502_s15 + $0x5c0] sm:$0xff] }
  0x41   : > { %436 = vst [vmem:[%s7507_s16 + $0x2e0] sm:$0xff] %v435_v28  ;;  %v441_v31 = vld [vmem:[%s7502_s15 + $0x5c8] sm:$0xff]  ;;  %438 = vst [vmem:[%s7507_s16 + $0x2e8] sm:$0xff] %v437_v29 }
  0x42   : > { %440 = vst [vmem:[%s7507_s16 + $0x2f0] sm:$0xff] %v439_v30  ;;  %442 = vst [vmem:[%s7507_s16 + $0x2f8] sm:$0xff] %v441_v31 }
  0x43 PF: > { %456 = sbr.rel (!%p7490_p3) target bundleno = 96 (0x60), region = 59  ;;  %s458_s17 = sand.u32 (%p7490_p3), 1, %s7412_s25  }
  0x44   : > { %s6426_s18 = smul.u32 (%p7490_p3), 48, %s7416_s26 }
  0x45   : > { %s6589_s19 = smul.u32 (%p7490_p3), 384, %s458_s17 }
  0x46   : > { %s7705_s22 = scalar_lea.vmem (%p7490_p3), %s9028_s3, %s6426_s18 }
  0x47   : > { %v476_v32 = vld [vmem:[%s7705_s22] sm:$0xff] (%p7490_p3)  ;;  %v478_v33 = vld [vmem:[%s7705_s22 + $0x8] sm:$0xff] (%p7490_p3)  ;;  %v480_v34 = vld [vmem:[%s7705_s22 + $0x10] sm:$0xff] (%p7490_p3)  ;;  %s7710_s23 = scalar_lea.vmem (%p7490_p3), [#allocation4], %s6589_s19 }
  0x48   : > { %477 = vst [vmem:[%s7710_s23] sm:$0xff] (%p7490_p3), %v476_v32  ;;  %479 = vst [vmem:[%s7710_s23 + $0x8] sm:$0xff] (%p7490_p3), %v478_v33  ;;  %v482_v35 = vld [vmem:[%s7705_s22 + $0x18] sm:$0xff] (%p7490_p3)  ;;  %v484_v36 = vld [vmem:[%s7705_s22 + $0x20] sm:$0xff] (%p7490_p3) }
  0x49   : > { %481 = vst [vmem:[%s7710_s23 + $0x10] sm:$0xff] (%p7490_p3), %v480_v34  ;;  %v486_v37 = vld [vmem:[%s7705_s22 + $0x28] sm:$0xff] (%p7490_p3)  ;;  %483 = vst [vmem:[%s7710_s23 + $0x18] sm:$0xff] (%p7490_p3), %v482_v35  ;;  %v488_v38 = vld [vmem:[%s7705_s22 + $0x60] sm:$0xff] (%p7490_p3) }
  0x4a   : > { %485 = vst [vmem:[%s7710_s23 + $0x20] sm:$0xff] %v484_v36  ;;  %487 = vst [vmem:[%s7710_s23 + $0x28] sm:$0xff] %v486_v37  ;;  %v490_v39 = vld [vmem:[%s7705_s22 + $0x68] sm:$0xff]  ;;  %v492_v40 = vld [vmem:[%s7705_s22 + $0x70] sm:$0xff] }
  0x4b   : > { %489 = vst [vmem:[%s7710_s23 + $0x30] sm:$0xff] %v488_v38  ;;  %491 = vst [vmem:[%s7710_s23 + $0x38] sm:$0xff] %v490_v39  ;;  %v494_v41 = vld [vmem:[%s7705_s22 + $0x78] sm:$0xff]  ;;  %v496_v42 = vld [vmem:[%s7705_s22 + $0x80] sm:$0xff] }
  0x4c   : > { %493 = vst [vmem:[%s7710_s23 + $0x40] sm:$0xff] %v492_v40  ;;  %v498_v43 = vld [vmem:[%s7705_s22 + $0x88] sm:$0xff]  ;;  %495 = vst [vmem:[%s7710_s23 + $0x48] sm:$0xff] %v494_v41  ;;  %v500_v44 = vld [vmem:[%s7705_s22 + $0xc0] sm:$0xff] }
  0x4d   : > { %497 = vst [vmem:[%s7710_s23 + $0x50] sm:$0xff] %v496_v42  ;;  %499 = vst [vmem:[%s7710_s23 + $0x58] sm:$0xff] %v498_v43  ;;  %v502_v45 = vld [vmem:[%s7705_s22 + $0xc8] sm:$0xff]  ;;  %v504_v46 = vld [vmem:[%s7705_s22 + $0xd0] sm:$0xff] }
  0x4e   : > { %501 = vst [vmem:[%s7710_s23 + $0x60] sm:$0xff] %v500_v44  ;;  %503 = vst [vmem:[%s7710_s23 + $0x68] sm:$0xff] %v502_v45  ;;  %v506_v47 = vld [vmem:[%s7705_s22 + $0xd8] sm:$0xff]  ;;  %v508_v48 = vld [vmem:[%s7705_s22 + $0xe0] sm:$0xff] }
  0x4f   : > { %505 = vst [vmem:[%s7710_s23 + $0x70] sm:$0xff] %v504_v46  ;;  %v510_v49 = vld [vmem:[%s7705_s22 + $0xe8] sm:$0xff]  ;;  %507 = vst [vmem:[%s7710_s23 + $0x78] sm:$0xff] %v506_v47  ;;  %v512_v50 = vld [vmem:[%s7705_s22 + $0x120] sm:$0xff] }
  0x50   : > { %509 = vst [vmem:[%s7710_s23 + $0x80] sm:$0xff] %v508_v48  ;;  %511 = vst [vmem:[%s7710_s23 + $0x88] sm:$0xff] %v510_v49  ;;  %v514_v51 = vld [vmem:[%s7705_s22 + $0x128] sm:$0xff]  ;;  %v516_v52 = vld [vmem:[%s7705_s22 + $0x130] sm:$0xff] }
  0x51   : > { %513 = vst [vmem:[%s7710_s23 + $0x90] sm:$0xff] %v512_v50  ;;  %515 = vst [vmem:[%s7710_s23 + $0x98] sm:$0xff] %v514_v51  ;;  %v518_v53 = vld [vmem:[%s7705_s22 + $0x138] sm:$0xff]  ;;  %v520_v54 = vld [vmem:[%s7705_s22 + $0x140] sm:$0xff] }
  0x52   : > { %517 = vst [vmem:[%s7710_s23 + $0xa0] sm:$0xff] %v516_v52  ;;  %v522_v55 = vld [vmem:[%s7705_s22 + $0x148] sm:$0xff]  ;;  %519 = vst [vmem:[%s7710_s23 + $0xa8] sm:$0xff] %v518_v53  ;;  %v524_v56 = vld [vmem:[%s7705_s22 + $0x180] sm:$0xff] }
  0x53   : > { %521 = vst [vmem:[%s7710_s23 + $0xb0] sm:$0xff] %v520_v54  ;;  %523 = vst [vmem:[%s7710_s23 + $0xb8] sm:$0xff] %v522_v55  ;;  %v526_v57 = vld [vmem:[%s7705_s22 + $0x188] sm:$0xff]  ;;  %v528_v58 = vld [vmem:[%s7705_s22 + $0x190] sm:$0xff] }
  0x54   : > { %525 = vst [vmem:[%s7710_s23 + $0xc0] sm:$0xff] %v524_v56  ;;  %527 = vst [vmem:[%s7710_s23 + $0xc8] sm:$0xff] %v526_v57  ;;  %v530_v59 = vld [vmem:[%s7705_s22 + $0x198] sm:$0xff]  ;;  %v532_v60 = vld [vmem:[%s7705_s22 + $0x1a0] sm:$0xff] }
  0x55   : > { %529 = vst [vmem:[%s7710_s23 + $0xd0] sm:$0xff] %v528_v58  ;;  %v534_v61 = vld [vmem:[%s7705_s22 + $0x1a8] sm:$0xff]  ;;  %531 = vst [vmem:[%s7710_s23 + $0xd8] sm:$0xff] %v530_v59  ;;  %v536_v62 = vld [vmem:[%s7705_s22 + $0x1e0] sm:$0xff] }
  0x56   : > { %533 = vst [vmem:[%s7710_s23 + $0xe0] sm:$0xff] %v532_v60  ;;  %535 = vst [vmem:[%s7710_s23 + $0xe8] sm:$0xff] %v534_v61  ;;  %v538_v63 = vld [vmem:[%s7705_s22 + $0x1e8] sm:$0xff]  ;;  %v540_v0 = vld [vmem:[%s7705_s22 + $0x1f0] sm:$0xff] }
  0x57   : > { %537 = vst [vmem:[%s7710_s23 + $0xf0] sm:$0xff] %v536_v62  ;;  %539 = vst [vmem:[%s7710_s23 + $0xf8] sm:$0xff] %v538_v63  ;;  %v542_v1 = vld [vmem:[%s7705_s22 + $0x1f8] sm:$0xff]  ;;  %v544_v2 = vld [vmem:[%s7705_s22 + $0x200] sm:$0xff] }
  0x58   : > { %541 = vst [vmem:[%s7710_s23 + $0x100] sm:$0xff] %v540_v0  ;;  %v546_v3 = vld [vmem:[%s7705_s22 + $0x208] sm:$0xff]  ;;  %543 = vst [vmem:[%s7710_s23 + $0x108] sm:$0xff] %v542_v1  ;;  %v548_v4 = vld [vmem:[%s7705_s22 + $0x240] sm:$0xff] }
  0x59   : > { %545 = vst [vmem:[%s7710_s23 + $0x110] sm:$0xff] %v544_v2  ;;  %547 = vst [vmem:[%s7710_s23 + $0x118] sm:$0xff] %v546_v3  ;;  %v550_v5 = vld [vmem:[%s7705_s22 + $0x248] sm:$0xff]  ;;  %v552_v6 = vld [vmem:[%s7705_s22 + $0x250] sm:$0xff] }
  0x5a   : > { %549 = vst [vmem:[%s7710_s23 + $0x120] sm:$0xff] %v548_v4  ;;  %551 = vst [vmem:[%s7710_s23 + $0x128] sm:$0xff] %v550_v5  ;;  %v554_v7 = vld [vmem:[%s7705_s22 + $0x258] sm:$0xff]  ;;  %v556_v8 = vld [vmem:[%s7705_s22 + $0x260] sm:$0xff] }
  0x5b   : > { %553 = vst [vmem:[%s7710_s23 + $0x130] sm:$0xff] %v552_v6  ;;  %v558_v9 = vld [vmem:[%s7705_s22 + $0x268] sm:$0xff]  ;;  %555 = vst [vmem:[%s7710_s23 + $0x138] sm:$0xff] %v554_v7  ;;  %v560_v10 = vld [vmem:[%s7705_s22 + $0x2a0] sm:$0xff] }
  0x5c   : > { %557 = vst [vmem:[%s7710_s23 + $0x140] sm:$0xff] %v556_v8  ;;  %559 = vst [vmem:[%s7710_s23 + $0x148] sm:$0xff] %v558_v9  ;;  %v562_v11 = vld [vmem:[%s7705_s22 + $0x2a8] sm:$0xff]  ;;  %v564_v12 = vld [vmem:[%s7705_s22 + $0x2b0] sm:$0xff] }
  0x5d   : > { %561 = vst [vmem:[%s7710_s23 + $0x150] sm:$0xff] %v560_v10  ;;  %563 = vst [vmem:[%s7710_s23 + $0x158] sm:$0xff] %v562_v11  ;;  %v566_v13 = vld [vmem:[%s7705_s22 + $0x2b8] sm:$0xff]  ;;  %v568_v14 = vld [vmem:[%s7705_s22 + $0x2c0] sm:$0xff] }
  0x5e   : > { %565 = vst [vmem:[%s7710_s23 + $0x160] sm:$0xff] %v564_v12  ;;  %v570_v15 = vld [vmem:[%s7705_s22 + $0x2c8] sm:$0xff]  ;;  %567 = vst [vmem:[%s7710_s23 + $0x168] sm:$0xff] %v566_v13 }
  0x5f   : > { %569 = vst [vmem:[%s7710_s23 + $0x170] sm:$0xff] %v568_v14  ;;  %571 = vst [vmem:[%s7710_s23 + $0x178] sm:$0xff] %v570_v15 }
  0x60 PF: > { %p5872_p5 = scmp.ge.s32.totalorder %s7416_s26, 1  ;;  %p586_p6 = scmp.lt.s32.totalorder %s7416_s26, 3 }
  0x62   : > { %p587_p7 = pnand %p5872_p5, %p586_p6 }
  0x64   : > { %590 = sbr.rel (%p587_p7) target bundleno = 1067 (0x42b), region = 86 }
  0x6b   : > { %s593_s29 = sand.u32 1, %s7408_s24   ;;  %s641_s30 = smul.u32 12, %s7476_s27 }
  0x6c   : > { %s6590_s9 = smul.u32 768, %s593_s29  ;;  %p5875_p10 = scmp.ne.s32.totalorder %s7476_s27, 0 }
  0x6d   : > { %s6591_s10 = smul.u32 384, %s593_s29  ;;  %p642_p8 = scmp.lt.s32.totalorder %s641_s30, 23  ;;  %v7418_v16 = vmov (!%p5875_p10), 0.0  }
  0x6e   : > { %s647_s11 = smul.u32 192, %s7476_s27  ;;  %s7820_s24 = scalar_lea.vmem [#allocation3], %s6590_s9  ;;  %659 = vst [vmem:[#allocation2] sm:$0xff] (!%p5875_p10), %v7418_v16  ;;  %660 = vst [vmem:[#allocation2 + $0x8] sm:$0xff] (!%p5875_p10), %v7418_v16 }
  0x6f   : > { %s9048_s30 = smov (!%p642_p8, %s641_s30), 23  ;;  %s7822_s18 = scalar_lea.vmem [#allocation4], %s6591_s10  ;;  %661 = vst [vmem:[#allocation2 + $0x10] sm:$0xff] (!%p5875_p10), %v7418_v16  ;;  %662 = vst [vmem:[#allocation2 + $0x18] sm:$0xff] (!%p5875_p10), %v7418_v16 }
  0x70   : > { %p648_p9 = scmp.lt.s32.totalorder %s647_s11, 383  ;;  %s7813_s14 = scalar_lea.vmem %s9027_s2, %s9048_s30  ;;  %663 = vst [vmem:[#allocation2 + $0x20] sm:$0xff] (!%p5875_p10), %v7418_v16  ;;  %664 = vst [vmem:[#allocation2 + $0x28] sm:$0xff] (!%p5875_p10), %v7418_v16 }
  0x71   : > { %658 = sbr.rel (%p5875_p10) target bundleno = 126 (0x7e), region = 98  ;;  %665 = vst [vmem:[#allocation2 + $0x30] sm:$0xff] (!%p5875_p10), %v7418_v16  ;;  %666 = vst [vmem:[#allocation2 + $0x38] sm:$0xff] (!%p5875_p10), %v7418_v16 }
  0x72   : > { %s9050_s11 = smov (!%p648_p9, %s647_s11), 383  ;;  %667 = vst [vmem:[#allocation2 + $0x40] sm:$0xff] (!%p5875_p10), %v7418_v16  ;;  %668 = vst [vmem:[#allocation2 + $0x48] sm:$0xff] (!%p5875_p10), %v7418_v16 }
  0x73   : > { %s6427_s26 = sshll.u32 %s9050_s11, 4  ;;  %669 = vst [vmem:[#allocation2 + $0x50] sm:$0xff] (!%p5875_p10), %v7418_v16  ;;  %670 = vst [vmem:[#allocation2 + $0x58] sm:$0xff] (!%p5875_p10), %v7418_v16 }
  0x74   : > { %s7818_s17 = scalar_lea.vmem %s9029_s4, %s6427_s26  ;;  %671 = vst [vmem:[#allocation2 + $0x60] sm:$0xff] (!%p5875_p10), %v7418_v16  ;;  %672 = vst [vmem:[#allocation2 + $0x68] sm:$0xff] (!%p5875_p10), %v7418_v16 }
  0x75   : > { %673 = vst [vmem:[#allocation2 + $0x70] sm:$0xff] (!%p5875_p10), %v7418_v16  ;;  %674 = vst [vmem:[#allocation2 + $0x78] sm:$0xff] (!%p5875_p10), %v7418_v16 }
  0x76   : > { %675 = vst [vmem:[#allocation2 + $0x80] sm:$0xff] (!%p5875_p10), %v7418_v16  ;;  %676 = vst [vmem:[#allocation2 + $0x88] sm:$0xff] (!%p5875_p10), %v7418_v16 }
  0x77   : > { %677 = vst [vmem:[#allocation2 + $0x90] sm:$0xff] (!%p5875_p10), %v7418_v16  ;;  %678 = vst [vmem:[#allocation2 + $0x98] sm:$0xff] (!%p5875_p10), %v7418_v16 }
  0x78   : > { %679 = vst [vmem:[#allocation2 + $0xa0] sm:$0xff] %v7418_v16  ;;  %680 = vst [vmem:[#allocation2 + $0xa8] sm:$0xff] %v7418_v16 }
  0x79   : > { %681 = vst [vmem:[#allocation2 + $0xb0] sm:$0xff] %v7418_v16  ;;  %682 = vst [vmem:[#allocation2 + $0xb8] sm:$0xff] %v7418_v16 }
  0x7a   : > { %683 = vst [vmem:[#allocation2 + $0xc0] sm:$0xff] %v7418_v16  ;;  %684 = vst [vmem:[#allocation2 + $0xc8] sm:$0xff] %v7418_v16 }
  0x7b   : > { %685 = vst [vmem:[#allocation2 + $0xd0] sm:$0xff] %v7418_v16  ;;  %686 = vst [vmem:[#allocation2 + $0xd8] sm:$0xff] %v7418_v16 }
  0x7c   : > { %687 = vst [vmem:[#allocation2 + $0xe0] sm:$0xff] %v7418_v16  ;;  %688 = vst [vmem:[#allocation2 + $0xe8] sm:$0xff] %v7418_v16 }
  0x7d   : > { %689 = vst [vmem:[#allocation2 + $0xf0] sm:$0xff] %v7418_v16  ;;  %690 = vst [vmem:[#allocation2 + $0xf8] sm:$0xff] %v7418_v16 }
  0x7e PF: > { %v6618_v17 = vld [vmem:[%s7820_s24 + $0x4] ss:$48 sps:$4 sm:$0xff]   ;;  %v6620_v18 = vld [vmem:[%s7820_s24] ss:$48 sps:$4 sm:$0xff]   ;;  %v7419_v19 = vmov 0   ;;  %p6422_p11 = scmp.ne.s32.totalorder %s7476_s27, 1 }
  0x7f   : > { %1364 = vmatprep.mubr.bf16.mxu0 %v7419_v19  ;;  %1405 = vmatprep.mubr.bf16.mxu1 %v7419_v19  ;;  %v6621_v20 = vld [vmem:[%s7820_s24 + $0x64] ss:$48 sps:$4 sm:$0xff]   ;;  %v6623_v21 = vld [vmem:[%s7820_s24 + $0x60] ss:$48 sps:$4 sm:$0xff]   ;;  %v6642_v27 = vld [vmem:[%s7820_s24 + $0xc] ss:$48 sps:$4 sm:$0xff]  }
  0x80   : > { %1332 = vmatprep.subr.bf16.mxu0 %v6618_v17  ;;  %v6624_v22 = vld [vmem:[%s7820_s24 + $0xc4] ss:$48 sps:$4 sm:$0xff]   ;;  %v6626_v23 = vld [vmem:[%s7820_s24 + $0xc0] ss:$48 sps:$4 sm:$0xff]   ;;  %v6644_v28 = vld [vmem:[%s7820_s24 + $0x8] ss:$48 sps:$4 sm:$0xff]   ;;  %1373 = vmatprep.subr.bf16.mxu1 %v6642_v27 }
  0x81   : > { %1333 = vmatpush1.bf16.msra.mxu0 %v6620_v18  ;;  %v6627_v24 = vld [vmem:[%s7820_s24 + $0x124] ss:$48 sps:$4 sm:$0xff]   ;;  %v6629_v25 = vld [vmem:[%s7820_s24 + $0x120] ss:$48 sps:$4 sm:$0xff]   ;;  %v6645_v29 = vld [vmem:[%s7820_s24 + $0x6c] ss:$48 sps:$4 sm:$0xff]   ;;  %1374 = vmatpush1.bf16.msra.mxu1 %v6644_v28 }
  0x82   : > { %1334 = vmatprep.subr.bf16.mxu0 %v6621_v20  ;;  %v6630_v26 = vld [vmem:[%s7820_s24 + $0x184] ss:$48 sps:$4 sm:$0xff]   ;;  %v6632_v30 = vld [vmem:[%s7820_s24 + $0x180] ss:$48 sps:$4 sm:$0xff]   ;;  %v6647_v31 = vld [vmem:[%s7820_s24 + $0x68] ss:$48 sps:$4 sm:$0xff]   ;;  %1375 = vmatprep.subr.bf16.mxu1 %v6645_v29 }
  0x83   : > { %v6648_v32 = vld [vmem:[%s7820_s24 + $0xcc] ss:$48 sps:$4 sm:$0xff]   ;;  %v6633_v33 = vld [vmem:[%s7820_s24 + $0x1e4] ss:$48 sps:$4 sm:$0xff]   ;;  %v6635_v34 = vld [vmem:[%s7820_s24 + $0x1e0] ss:$48 sps:$4 sm:$0xff]  }
  0x84   : > { %v6650_v35 = vld [vmem:[%s7820_s24 + $0xc8] ss:$48 sps:$4 sm:$0xff]   ;;  %v6651_v36 = vld [vmem:[%s7820_s24 + $0x12c] ss:$48 sps:$4 sm:$0xff]   ;;  %v6636_v37 = vld [vmem:[%s7820_s24 + $0x244] ss:$48 sps:$4 sm:$0xff]  }
  0x85   : > { %1335 = vmatpush1.bf16.msra.mxu0 %v6623_v21  ;;  %1376 = vmatpush1.bf16.msra.mxu1 %v6647_v31  ;;  %v6638_v38 = vld [vmem:[%s7820_s24 + $0x240] ss:$48 sps:$4 sm:$0xff]   ;;  %v6653_v39 = vld [vmem:[%s7820_s24 + $0x128] ss:$48 sps:$4 sm:$0xff]   ;;  %v6654_v40 = vld [vmem:[%s7820_s24 + $0x18c] ss:$48 sps:$4 sm:$0xff]  }
  0x86   : > { %1336 = vmatprep.subr.bf16.mxu0 %v6624_v22  ;;  %1377 = vmatprep.subr.bf16.mxu1 %v6648_v32  ;;  %v6639_v41 = vld [vmem:[%s7820_s24 + $0x2a4] ss:$48 sps:$4 sm:$0xff]   ;;  %v6641_v42 = vld [vmem:[%s7820_s24 + $0x2a0] ss:$48 sps:$4 sm:$0xff]   ;;  %v6656_v43 = vld [vmem:[%s7820_s24 + $0x188] ss:$48 sps:$4 sm:$0xff]  }
  0x87   : > { %v6657_v44 = vld [vmem:[%s7820_s24 + $0x1ec] ss:$48 sps:$4 sm:$0xff]   ;;  %v6668_v45 = vld [vmem:[%s7820_s24 + $0x14] ss:$48 sps:$4 sm:$0xff]   ;;  %v7858_v46 = vld [vmem:[%s9025_s0] sm:$0x1] }
  0x88   : > { %v6659_v47 = vld [vmem:[%s7820_s24 + $0x1e8] ss:$48 sps:$4 sm:$0xff]   ;;  %v6660_v48 = vld [vmem:[%s7820_s24 + $0x24c] ss:$48 sps:$4 sm:$0xff]   ;;  %v6666_v49 = vld [vmem:[%s7820_s24 + $0x10] ss:$48 sps:$4 sm:$0xff]  }
  0x89   : > { %1337 = vmatpush1.bf16.msra.mxu0 %v6626_v23  ;;  %1378 = vmatpush1.bf16.msra.mxu1 %v6650_v35  ;;  %v6671_v50 = vld [vmem:[%s7820_s24 + $0x74] ss:$48 sps:$4 sm:$0xff]   ;;  %v6662_v51 = vld [vmem:[%s7820_s24 + $0x248] ss:$48 sps:$4 sm:$0xff]   ;;  %v6663_v52 = vld [vmem:[%s7820_s24 + $0x2ac] ss:$48 sps:$4 sm:$0xff]  }
  0x8a   : > { %1338 = vmatprep.subr.bf16.mxu0 %v6627_v24  ;;  %1379 = vmatprep.subr.bf16.mxu1 %v6651_v36  ;;  %v6669_v53 = vld [vmem:[%s7820_s24 + $0x70] ss:$48 sps:$4 sm:$0xff]   ;;  %v6674_v54 = vld [vmem:[%s7820_s24 + $0xd4] ss:$48 sps:$4 sm:$0xff]   ;;  %v6665_v55 = vld [vmem:[%s7820_s24 + $0x2a8] ss:$48 sps:$4 sm:$0xff]  }
  0x8b   : > { %v6672_v56 = vld [vmem:[%s7820_s24 + $0xd0] ss:$48 sps:$4 sm:$0xff]   ;;  %v6692_v57 = vld [vmem:[%s7820_s24 + $0x1c] ss:$48 sps:$4 sm:$0xff]   ;;  %v6677_v58 = vld [vmem:[%s7820_s24 + $0x134] ss:$48 sps:$4 sm:$0xff]  }
  0x8c   : > { %v6675_v59 = vld [vmem:[%s7820_s24 + $0x130] ss:$48 sps:$4 sm:$0xff]   ;;  %v6690_v60 = vld [vmem:[%s7820_s24 + $0x18] ss:$48 sps:$4 sm:$0xff]   ;;  %v6695_v61 = vld [vmem:[%s7820_s24 + $0x7c] ss:$48 sps:$4 sm:$0xff]  }
  0x8d   : > { %1339 = vmatpush1.bf16.msra.mxu0 %v6629_v25  ;;  %1380 = vmatpush1.bf16.msra.mxu1 %v6653_v39  ;;  %v6680_v62 = vld [vmem:[%s7820_s24 + $0x194] ss:$48 sps:$4 sm:$0xff]   ;;  %v6678_v63 = vld [vmem:[%s7820_s24 + $0x190] ss:$48 sps:$4 sm:$0xff]   ;;  %v6693_v0 = vld [vmem:[%s7820_s24 + $0x78] ss:$48 sps:$4 sm:$0xff]  }
  0x8e   : > { %1340 = vmatprep.subr.bf16.mxu0 %v6630_v26  ;;  %1381 = vmatprep.subr.bf16.mxu1 %v6654_v40  ;;  %v6698_v1 = vld [vmem:[%s7820_s24 + $0xdc] ss:$48 sps:$4 sm:$0xff]   ;;  %v6683_v2 = vld [vmem:[%s7820_s24 + $0x1f4] ss:$48 sps:$4 sm:$0xff]   ;;  %v6681_v3 = vld [vmem:[%s7820_s24 + $0x1f0] ss:$48 sps:$4 sm:$0xff]  }
  0x8f   : > { %v6696_v4 = vld [vmem:[%s7820_s24 + $0xd8] ss:$48 sps:$4 sm:$0xff]   ;;  %v6701_v5 = vld [vmem:[%s7820_s24 + $0x13c] ss:$48 sps:$4 sm:$0xff]   ;;  %v6686_v6 = vld [vmem:[%s7820_s24 + $0x254] ss:$48 sps:$4 sm:$0xff]  }
  0x90   : > { %v6684_v7 = vld [vmem:[%s7820_s24 + $0x250] ss:$48 sps:$4 sm:$0xff]   ;;  %v6699_v8 = vld [vmem:[%s7820_s24 + $0x138] ss:$48 sps:$4 sm:$0xff]   ;;  %v6704_v9 = vld [vmem:[%s7820_s24 + $0x19c] ss:$48 sps:$4 sm:$0xff]  }
  0x91   : > { %1341 = vmatpush1.bf16.msra.mxu0 %v6632_v30  ;;  %1382 = vmatpush1.bf16.msra.mxu1 %v6656_v43  ;;  %v6689_v10 = vld [vmem:[%s7820_s24 + $0x2b4] ss:$48 sps:$4 sm:$0xff]   ;;  %v6687_v11 = vld [vmem:[%s7820_s24 + $0x2b0] ss:$48 sps:$4 sm:$0xff]   ;;  %v6702_v12 = vld [vmem:[%s7820_s24 + $0x198] ss:$48 sps:$4 sm:$0xff]  }
  0x92   : > { %1342 = vmatprep.subr.bf16.mxu0 %v6633_v33  ;;  %1383 = vmatprep.subr.bf16.mxu1 %v6657_v44  ;;  %v6707_v13 = vld [vmem:[%s7820_s24 + $0x1fc] ss:$48 sps:$4 sm:$0xff]   ;;  %v6716_v14 = vld [vmem:[%s7820_s24 + $0x24] ss:$48 sps:$4 sm:$0xff]   ;;  %v6705_v15 = vld [vmem:[%s7820_s24 + $0x1f8] ss:$48 sps:$4 sm:$0xff]  }
  0x93   : > { %v6710_v16 = vld [vmem:[%s7820_s24 + $0x25c] ss:$48 sps:$4 sm:$0xff]   ;;  %v6714_v17 = vld [vmem:[%s7820_s24 + $0x20] ss:$48 sps:$4 sm:$0xff]   ;;  %v6722_v18 = vld [vmem:[%s7820_s24 + $0x84] ss:$48 sps:$4 sm:$0xff]  }
  0x94   : > { %v6708_v20 = vld [vmem:[%s7820_s24 + $0x258] ss:$48 sps:$4 sm:$0xff]   ;;  %v6713_v21 = vld [vmem:[%s7820_s24 + $0x2bc] ss:$48 sps:$4 sm:$0xff]   ;;  %v6720_v22 = vld [vmem:[%s7820_s24 + $0x80] ss:$48 sps:$4 sm:$0xff]  }
  0x95   : > { %1343 = vmatpush1.bf16.msra.mxu0 %v6635_v34  ;;  %1384 = vmatpush1.bf16.msra.mxu1 %v6659_v47  ;;  %v6728_v23 = vld [vmem:[%s7820_s24 + $0xe4] ss:$48 sps:$4 sm:$0xff]   ;;  %v6711_v24 = vld [vmem:[%s7820_s24 + $0x2b8] ss:$48 sps:$4 sm:$0xff]   ;;  %v6719_v25 = vld [vmem:[%s7820_s24 + $0x2c] ss:$48 sps:$4 sm:$0xff]  }
  0x96   : > { %1344 = vmatprep.subr.bf16.mxu0 %v6636_v37  ;;  %1385 = vmatprep.subr.bf16.mxu1 %v6660_v48  ;;  %v6726_v26 = vld [vmem:[%s7820_s24 + $0xe0] ss:$48 sps:$4 sm:$0xff]   ;;  %v6734_v27 = vld [vmem:[%s7820_s24 + $0x144] ss:$48 sps:$4 sm:$0xff]   ;;  %v6717_v28 = vld [vmem:[%s7820_s24 + $0x28] ss:$48 sps:$4 sm:$0xff]  }
  0x97   : > { %v6725_v29 = vld [vmem:[%s7820_s24 + $0x8c] ss:$48 sps:$4 sm:$0xff]   ;;  %v6732_v30 = vld [vmem:[%s7820_s24 + $0x140] ss:$48 sps:$4 sm:$0xff]   ;;  %v6740_v31 = vld [vmem:[%s7820_s24 + $0x1a4] ss:$48 sps:$4 sm:$0xff]  }
  0x98   : > { %v6723_v32 = vld [vmem:[%s7820_s24 + $0x88] ss:$48 sps:$4 sm:$0xff]   ;;  %v6731_v33 = vld [vmem:[%s7820_s24 + $0xec] ss:$48 sps:$4 sm:$0xff]   ;;  %v6738_v34 = vld [vmem:[%s7820_s24 + $0x1a0] ss:$48 sps:$4 sm:$0xff]  }
  0x99   : > { %1345 = vmatpush1.bf16.msra.mxu0 %v6638_v38  ;;  %1386 = vmatpush1.bf16.msra.mxu1 %v6662_v51  ;;  %v6729_v35 = vld [vmem:[%s7820_s24 + $0xe8] ss:$48 sps:$4 sm:$0xff]   ;;  %v6746_v36 = vld [vmem:[%s7820_s24 + $0x204] ss:$48 sps:$4 sm:$0xff]   ;;  %v6737_v37 = vld [vmem:[%s7820_s24 + $0x14c] ss:$48 sps:$4 sm:$0xff]  }
  0x9a   : > { %1346 = vmatprep.subr.bf16.mxu0 %v6639_v41  ;;  %1387 = vmatprep.subr.bf16.mxu1 %v6663_v52  ;;  %v6744_v38 = vld [vmem:[%s7820_s24 + $0x200] ss:$48 sps:$4 sm:$0xff]   ;;  %v6752_v39 = vld [vmem:[%s7820_s24 + $0x264] ss:$48 sps:$4 sm:$0xff]   ;;  %v6735_v40 = vld [vmem:[%s7820_s24 + $0x148] ss:$48 sps:$4 sm:$0xff]  }
  0x9b   : > { %v6750_v41 = vld [vmem:[%s7820_s24 + $0x260] ss:$48 sps:$4 sm:$0xff]   ;;  %v6741_v43 = vld [vmem:[%s7820_s24 + $0x1a8] ss:$48 sps:$4 sm:$0xff]   ;;  %v6749_v44 = vld [vmem:[%s7820_s24 + $0x20c] ss:$48 sps:$4 sm:$0xff]  }
  0x9c   : > { %v6764_v47 = vld [vmem:[%s7818_s17 + $0x4] ss:$16 sps:$4 sm:$0xff]   ;;  %v6747_v48 = vld [vmem:[%s7820_s24 + $0x208] ss:$48 sps:$4 sm:$0xff]  }
  0x9d   : > { %1347 = vmatpush1.bf16.msra.mxu0 %v6641_v42  ;;  %1388 = vmatpush1.bf16.msra.mxu1 %v6665_v55  ;;  %v6758_v42 = vld [vmem:[%s7820_s24 + $0x2c4] ss:$48 sps:$4 sm:$0xff]   ;;  %v6753_v52 = vld [vmem:[%s7820_s24 + $0x268] ss:$48 sps:$4 sm:$0xff]  }
  0x9e   : > { %1414 = vmatprep.subr.bf16.mxu0 %v6668_v45  ;;  %1455 = vmatprep.subr.bf16.mxu1 %v6692_v57  ;;  %v6756_v45 = vld [vmem:[%s7820_s24 + $0x2c0] ss:$48 sps:$4 sm:$0xff]   ;;  %v6770_v51 = vld [vmem:[%s7818_s17 + $0x24] ss:$16 sps:$4 sm:$0xff]   ;;  %v6767_v57 = vld [vmem:[%s7818_s17 + $0xc] ss:$16 sps:$4 sm:$0xff]  }
  0x9f   : > { %v6776_v55 = vld [vmem:[%s7818_s17 + $0x44] ss:$16 sps:$4 sm:$0xff]  }
  0xa0   : > { %1365 = vmatmul.mubr.bf16.vlgmr.msra.gmra.mrb[0].mxu0 %v7858_v46  ;;  %1406 = vmatmul.mubr.bf16.vlgmr.msra.gmra.mrb[0].mxu1 %v7858_v46 }
  0xa1   : > { %1415 = vmatpush1.bf16.msra.mxu0 %v6666_v49  ;;  %1446 = vmatprep.mubr.bf16.mxu0 %v7419_v19  ;;  %v6755_v49 = vld [vmem:[%s7820_s24 + $0x26c] ss:$48 sps:$4 sm:$0xff]  }
  0xa2   : > { %1416 = vmatprep.subr.bf16.mxu0 %v6671_v50  ;;  %1456 = vmatpush1.bf16.msra.mxu1 %v6690_v60  ;;  %v6762_v50 = vld [vmem:[%s7818_s17] ss:$16 sps:$4 sm:$0xff]   ;;  %v6765_v60 = vld [vmem:[%s7818_s17 + $0x8] ss:$16 sps:$4 sm:$0xff]  }
  0xa3   : > { %1487 = vmatprep.mubr.bf16.mxu1 %v7419_v19  ;;  %1457 = vmatprep.subr.bf16.mxu1 %v6695_v61  ;;  %v6773_v61 = vld [vmem:[%s7818_s17 + $0x2c] ss:$16 sps:$4 sm:$0xff]  }
  0xa5   : > { %1417 = vmatpush1.bf16.msra.mxu0 %v6669_v53  ;;  %v6761_v53 = vld [vmem:[%s7820_s24 + $0x2cc] ss:$48 sps:$4 sm:$0xff]  }
  0xa6   : > { %1418 = vmatprep.subr.bf16.mxu0 %v6674_v54  ;;  %1458 = vmatpush1.bf16.msra.mxu1 %v6693_v0  ;;  %v6768_v54 = vld [vmem:[%s7818_s17 + $0x20] ss:$16 sps:$4 sm:$0xff]   ;;  %v6771_v0 = vld [vmem:[%s7818_s17 + $0x28] ss:$16 sps:$4 sm:$0xff]  }
  0xa7   : > { %1459 = vmatprep.subr.bf16.mxu1 %v6698_v1  ;;  %v6779_v1 = vld [vmem:[%s7818_s17 + $0x4c] ss:$16 sps:$4 sm:$0xff]  }
  0xa9   : > { %1419 = vmatpush1.bf16.msra.mxu0 %v6672_v56  ;;  %v6759_v56 = vld [vmem:[%s7820_s24 + $0x2c8] ss:$48 sps:$4 sm:$0xff]  }
  0xaa   : > { %1420 = vmatprep.subr.bf16.mxu0 %v6677_v58  ;;  %1460 = vmatpush1.bf16.msra.mxu1 %v6696_v4  ;;  %v6774_v58 = vld [vmem:[%s7818_s17 + $0x40] ss:$16 sps:$4 sm:$0xff]   ;;  %v6777_v4 = vld [vmem:[%s7818_s17 + $0x48] ss:$16 sps:$4 sm:$0xff]  }
  0xab   : > { %1461 = vmatprep.subr.bf16.mxu1 %v6701_v5  ;;  %v6785_v5 = vld [vmem:[%s7818_s17 + $0x6c] ss:$16 sps:$4 sm:$0xff]  }
  0xad   : > { %1421 = vmatpush1.bf16.msra.mxu0 %v6675_v59  ;;  %v6782_v59 = vld [vmem:[%s7818_s17 + $0x64] ss:$16 sps:$4 sm:$0xff]  }
  0xae   : > { %1422 = vmatprep.subr.bf16.mxu0 %v6680_v62  ;;  %1462 = vmatpush1.bf16.msra.mxu1 %v6699_v8  ;;  %v6780_v62 = vld [vmem:[%s7818_s17 + $0x60] ss:$16 sps:$4 sm:$0xff]   ;;  %v6791_v8 = vld [vmem:[%s7818_s17 + $0x8c] ss:$16 sps:$4 sm:$0xff]  }
  0xaf   : > { %1463 = vmatprep.subr.bf16.mxu1 %v6704_v9  ;;  %v6798_v9 = vld [vmem:[%s7818_s17 + $0xc0] ss:$16 sps:$4 sm:$0xff]  }
  0xb1   : > { %1423 = vmatpush1.bf16.msra.mxu0 %v6678_v63  ;;  %v6788_v63 = vld [vmem:[%s7818_s17 + $0x84] ss:$16 sps:$4 sm:$0xff]  }
  0xb2   : > { %1424 = vmatprep.subr.bf16.mxu0 %v6683_v2  ;;  %1464 = vmatpush1.bf16.msra.mxu1 %v6702_v12  ;;  %v6786_v2 = vld [vmem:[%s7818_s17 + $0x80] ss:$16 sps:$4 sm:$0xff]   ;;  %v6797_v12 = vld [vmem:[%s7818_s17 + $0xac] ss:$16 sps:$4 sm:$0xff]  }
  0xb3   : > { %1465 = vmatprep.subr.bf16.mxu1 %v6707_v13  ;;  %v6804_v13 = vld [vmem:[%s7818_s17 + $0xe0] ss:$16 sps:$4 sm:$0xff]  }
  0xb5   : > { %1425 = vmatpush1.bf16.msra.mxu0 %v6681_v3  ;;  %v6794_v3 = vld [vmem:[%s7818_s17 + $0xa4] ss:$16 sps:$4 sm:$0xff]  }
  0xb6   : > { %1426 = vmatprep.subr.bf16.mxu0 %v6686_v6  ;;  %1466 = vmatpush1.bf16.msra.mxu1 %v6705_v15  ;;  %v6792_v6 = vld [vmem:[%s7818_s17 + $0xa0] ss:$16 sps:$4 sm:$0xff]   ;;  %v6812_v15 = vld [vmem:[%s7818_s17 + $0x104] ss:$16 sps:$4 sm:$0xff]  }
  0xb7   : > { %1467 = vmatprep.subr.bf16.mxu1 %v6710_v16  ;;  %v6803_v16 = vld [vmem:[%s7818_s17 + $0xcc] ss:$16 sps:$4 sm:$0xff]  }
  0xb9   : > { %1427 = vmatpush1.bf16.msra.mxu0 %v6684_v7  ;;  %v6800_v7 = vld [vmem:[%s7818_s17 + $0xc4] ss:$16 sps:$4 sm:$0xff]  }
  0xba   : > { %1428 = vmatprep.subr.bf16.mxu0 %v6689_v10  ;;  %1468 = vmatpush1.bf16.msra.mxu1 %v6708_v20  ;;  %v6789_v10 = vld [vmem:[%s7818_s17 + $0x88] ss:$16 sps:$4 sm:$0xff]   ;;  %v6818_v20 = vld [vmem:[%s7818_s17 + $0x124] ss:$16 sps:$4 sm:$0xff]  }
  0xbb   : > { %1469 = vmatprep.subr.bf16.mxu1 %v6713_v21  ;;  %v6809_v21 = vld [vmem:[%s7818_s17 + $0xec] ss:$16 sps:$4 sm:$0xff]  }
  0xbd   : > { %1429 = vmatpush1.bf16.msra.mxu0 %v6687_v11  ;;  %v6806_v11 = vld [vmem:[%s7818_s17 + $0xe4] ss:$16 sps:$4 sm:$0xff]  }
  0xbe   : > { %1496 = vmatprep.subr.bf16.mxu0 %v6716_v14  ;;  %1470 = vmatpush1.bf16.msra.mxu1 %v6711_v24  ;;  %v6795_v14 = vld [vmem:[%s7818_s17 + $0xa8] ss:$16 sps:$4 sm:$0xff]   ;;  %v6824_v24 = vld [vmem:[%s7818_s17 + $0x144] ss:$16 sps:$4 sm:$0xff]  }
  0xbf   : > { %1537 = vmatprep.subr.bf16.mxu1 %v6719_v25  ;;  %v6815_v25 = vld [vmem:[%s7818_s17 + $0x10c] ss:$16 sps:$4 sm:$0xff]  }
  0xc0   : > { %1447 = vmatmul.mubr.bf16.vlgmr.msra.gmra.mrb[4].mxu0 %v7858_v46 }
  0xc1   : > { %1497 = vmatpush1.bf16.msra.mxu0 %v6714_v17  ;;  %1528 = vmatprep.mubr.bf16.mxu0 %v7419_v19  ;;  %v6810_v17 = vld [vmem:[%s7818_s17 + $0x100] ss:$16 sps:$4 sm:$0xff]  }
  0xc2   : > { %1498 = vmatprep.subr.bf16.mxu0 %v6722_v18  ;;  %1488 = vmatmul.mubr.bf16.vlgmr.msra.gmra.mrb[4].mxu1 %v7858_v46  ;;  %v6801_v18 = vld [vmem:[%s7818_s17 + $0xc8] ss:$16 sps:$4 sm:$0xff]  }
  0xc3   : > { %1538 = vmatpush1.bf16.msra.mxu1 %v6717_v28  ;;  %1569 = vmatprep.mubr.bf16.mxu1 %v7419_v19  ;;  %v6743_v19 = vld [vmem:[%s7820_s24 + $0x1ac] ss:$48 sps:$4 sm:$0xff]   ;;  %v6830_v28 = vld [vmem:[%s7818_s17 + $0x164] ss:$16 sps:$4 sm:$0xff]  }
  0xc4   : > { %1539 = vmatprep.subr.bf16.mxu1 %v6725_v29  ;;  %v6821_v29 = vld [vmem:[%s7818_s17 + $0x12c] ss:$16 sps:$4 sm:$0xff]  }
  0xc5   : > { %1499 = vmatpush1.bf16.msra.mxu0 %v6720_v22  ;;  %v6816_v22 = vld [vmem:[%s7818_s17 + $0x120] ss:$16 sps:$4 sm:$0xff]  }
  0xc6   : > { %1500 = vmatprep.subr.bf16.mxu0 %v6728_v23  ;;  %v6807_v23 = vld [vmem:[%s7818_s17 + $0xe8] ss:$16 sps:$4 sm:$0xff]  }
  0xc7   : > { %1540 = vmatpush1.bf16.msra.mxu1 %v6723_v32  ;;  %v6836_v32 = vld [vmem:[%s7818_s17 + $0x184] ss:$16 sps:$4 sm:$0xff]  }
  0xc8   : > { %1541 = vmatprep.subr.bf16.mxu1 %v6731_v33  ;;  %v6827_v33 = vld [vmem:[%s7818_s17 + $0x14c] ss:$16 sps:$4 sm:$0xff]  }
  0xc9   : > { %1501 = vmatpush1.bf16.msra.mxu0 %v6726_v26  ;;  %v6822_v26 = vld [vmem:[%s7818_s17 + $0x140] ss:$16 sps:$4 sm:$0xff]  }
  0xca   : > { %1502 = vmatprep.subr.bf16.mxu0 %v6734_v27  ;;  %v6813_v27 = vld [vmem:[%s7818_s17 + $0x108] ss:$16 sps:$4 sm:$0xff]  }
  0xcb   : > { %1542 = vmatpush1.bf16.msra.mxu1 %v6729_v35  ;;  %v6825_v35 = vld [vmem:[%s7818_s17 + $0x148] ss:$16 sps:$4 sm:$0xff]  }
  0xcc   : > { %1543 = vmatprep.subr.bf16.mxu1 %v6737_v37  ;;  %v6833_v37 = vld [vmem:[%s7818_s17 + $0x16c] ss:$16 sps:$4 sm:$0xff]  }
  0xcd   : > { %1503 = vmatpush1.bf16.msra.mxu0 %v6732_v30  ;;  %v6828_v30 = vld [vmem:[%s7818_s17 + $0x160] ss:$16 sps:$4 sm:$0xff]  }
  0xce   : > { %1504 = vmatprep.subr.bf16.mxu0 %v6740_v31  ;;  %v6819_v31 = vld [vmem:[%s7818_s17 + $0x128] ss:$16 sps:$4 sm:$0xff]  }
  0xcf   : > { %1544 = vmatpush1.bf16.msra.mxu1 %v6735_v40  ;;  %v6848_v40 = vld [vmem:[%s7818_s17 + $0x1c4] ss:$16 sps:$4 sm:$0xff]  }
  0xd0   : > { %1545 = vmatprep.subr.bf16.mxu1 %v6743_v19  ;;  %v6839_v19 = vld [vmem:[%s7818_s17 + $0x18c] ss:$16 sps:$4 sm:$0xff]  }
  0xd1   : > { %1505 = vmatpush1.bf16.msra.mxu0 %v6738_v34  ;;  %v6834_v34 = vld [vmem:[%s7818_s17 + $0x180] ss:$16 sps:$4 sm:$0xff]  }
  0xd2   : > { %1506 = vmatprep.subr.bf16.mxu0 %v6746_v36  ;;  %v6842_v36 = vld [vmem:[%s7818_s17 + $0x1a4] ss:$16 sps:$4 sm:$0xff]  }
  0xd3   : > { %1546 = vmatpush1.bf16.msra.mxu1 %v6741_v43  ;;  %v6837_v43 = vld [vmem:[%s7818_s17 + $0x188] ss:$16 sps:$4 sm:$0xff]  }
  0xd4   : > { %1547 = vmatprep.subr.bf16.mxu1 %v6749_v44  ;;  %v6845_v44 = vld [vmem:[%s7818_s17 + $0x1ac] ss:$16 sps:$4 sm:$0xff]  }
  0xd5   : > { %1507 = vmatpush1.bf16.msra.mxu0 %v6744_v38  ;;  %v6840_v38 = vld [vmem:[%s7818_s17 + $0x1a0] ss:$16 sps:$4 sm:$0xff]  }
  0xd6   : > { %1508 = vmatprep.subr.bf16.mxu0 %v6752_v39  ;;  %v6831_v39 = vld [vmem:[%s7818_s17 + $0x168] ss:$16 sps:$4 sm:$0xff]  }
  0xd7   : > { %1548 = vmatpush1.bf16.msra.mxu1 %v6747_v48  ;;  %v6843_v48 = vld [vmem:[%s7818_s17 + $0x1a8] ss:$16 sps:$4 sm:$0xff]  }
  0xd8   : > { %1549 = vmatprep.subr.bf16.mxu1 %v6755_v49  ;;  %v6851_v49 = vld [vmem:[%s7818_s17 + $0x1cc] ss:$16 sps:$4 sm:$0xff]  }
  0xd9   : > { %1509 = vmatpush1.bf16.msra.mxu0 %v6750_v41  ;;  %v6846_v41 = vld [vmem:[%s7818_s17 + $0x1c0] ss:$16 sps:$4 sm:$0xff]  }
  0xda   : > { %1510 = vmatprep.subr.bf16.mxu0 %v6758_v42  ;;  %v6854_v42 = vld [vmem:[%s7818_s17 + $0x1e4] ss:$16 sps:$4 sm:$0xff]  }
  0xdb   : > { %1550 = vmatpush1.bf16.msra.mxu1 %v6753_v52  ;;  %v6855_v52 = vld [vmem:[%s7818_s17 + $0x1e8] ss:$16 sps:$4 sm:$0xff]  }
  0xdc   : > { %1551 = vmatprep.subr.bf16.mxu1 %v6761_v53  ;;  %v6863_v53 = vld [vmem:[%s7818_s17 + $0x20c] ss:$16 sps:$4 sm:$0xff]  }
  0xdd   : > { %1511 = vmatpush1.bf16.msra.mxu0 %v6756_v45  ;;  %v6852_v45 = vld [vmem:[%s7818_s17 + $0x1e0] ss:$16 sps:$4 sm:$0xff]  }
  0xde   : > { %4454 = vmatprep.subr.bf16.mxu0 %v6764_v47  ;;  %v6860_v47 = vld [vmem:[%s7818_s17 + $0x204] ss:$16 sps:$4 sm:$0xff]  }
  0xdf   : > { %1552 = vmatpush1.bf16.msra.mxu1 %v6759_v56 }
  0xe0   : > { %1529 = vmatmul.mubr.bf16.vlgmr.msra.gmra.mrb[8].mxu0 %v7858_v46  ;;  %4892 = vmatprep.subr.bf16.mxu1 %v6767_v57  ;;  %v8010_v57 = vld [vmem:[%s7813_s14] sm:$0xff] }
  0xe1   : > { %4455 = vmatpush1.bf16.msra.mxu0 %v6762_v50  ;;  %v6849_v50 = vld [vmem:[%s7818_s17 + $0x1c8] ss:$16 sps:$4 sm:$0xff]  }
  0xe2   : > { %4456 = vmatprep.subr.bf16.mxu0 %v6770_v51  ;;  %1570 = vmatmul.mubr.bf16.vlgmr.msra.gmra.mrb[8].mxu1 %v7858_v46  ;;  %v6783_v46 = vld [vmem:[%s7818_s17 + $0x68] ss:$16 sps:$4 sm:$0xff]   ;;  %v6857_v51 = vld [vmem:[%s7818_s17 + $0x1ec] ss:$16 sps:$4 sm:$0xff]  }
  0xe3   : > { %4893 = vmatpush1.bf16.msra.mxu1 %v6765_v60 }
  0xe4   : > { %4894 = vmatprep.subr.bf16.mxu1 %v6773_v61 }
  0xe5   : > { %4457 = vmatpush1.bf16.msra.mxu0 %v6768_v54  ;;  %v1272_v54 = vlaneseq }
  0xe6   : > { %4458 = vmatprep.subr.bf16.mxu0 %v6776_v55 }
  0xe7   : > { %4895 = vmatpush1.bf16.msra.mxu1 %v6771_v0  ;;  %v8004_v55 = vshrl.u32 %v1272_v54, 7 }
  0xe8   : > { %4896 = vmatprep.subr.bf16.mxu1 %v6779_v1 }
  0xe9   : > { %4459 = vmatpush1.bf16.msra.mxu0 %v6774_v58  ;;  %v8007_v56 = vsub.s32 0, %v8004_v55  ;;  %v8013_v58 = vsub.s32 1, %v8004_v55 }
  0xea   : > { %4460 = vmatprep.subr.bf16.mxu0 %v6782_v59 }
  0xeb   : > { %4897 = vmatpush1.bf16.msra.mxu1 %v6777_v4  ;;  %v1275_v59 = vrot.slane %v8010_v57, %v8007_v56  ;;  %v1279_v60 = vrot.slane %v8010_v57, %v8013_v58 }
  0xec   : > { %4898 = vmatprep.subr.bf16.mxu1 %v6785_v5  ;;  %v8020_v5 = vsub.s32 2, %v8004_v55 }
  0xed   : > { %4461 = vmatpush1.bf16.msra.mxu0 %v6780_v62 }
  0xee   : > { %4462 = vmatprep.subr.bf16.mxu0 %v6788_v63 }
  0xef   : > { %4899 = vmatpush1.bf16.msra.mxu1 %v6783_v46  ;;  %v1283_v46 = vrot.slane %v8010_v57, %v8020_v5 }
  0xf0   : > { %4900 = vmatprep.subr.bf16.mxu1 %v6791_v8 }
  0xf1   : > { %4463 = vmatpush1.bf16.msra.mxu0 %v6786_v2 }
  0xf2   : > { %4464 = vmatprep.subr.bf16.mxu0 %v6794_v3 }
  0xf3   : > { %4901 = vmatpush1.bf16.msra.mxu1 %v6789_v10 }
  0xf4   : > { %4902 = vmatprep.subr.bf16.mxu1 %v6797_v12 }
  0xf5   : > { %4465 = vmatpush1.bf16.msra.mxu0 %v6792_v6  ;;  %v8023_v6 = vsub.s32 3, %v8004_v55 }
  0xf6   : > { %4466 = vmatprep.subr.bf16.mxu0 %v6800_v7 }
  0xf7   : > { %4903 = vmatpush1.bf16.msra.mxu1 %v6795_v14  ;;  %9037 = vst [vmem:[#allocation5_spill] sm:$0xff] %v8023_v6  ;;  %v1287_v7 = vrot.slane %v8010_v57, %v8023_v6 }
  0xf8   : > { %4904 = vmatprep.subr.bf16.mxu1 %v6803_v16 }
  0xf9   : > { %4467 = vmatpush1.bf16.msra.mxu0 %v6798_v9 }
  0xfa   : > { %4468 = vmatprep.subr.bf16.mxu0 %v6806_v11 }
  0xfb   : > { %4905 = vmatpush1.bf16.msra.mxu1 %v6801_v18 }
  0xfc   : > { %4906 = vmatprep.subr.bf16.mxu1 %v6809_v21  ;;  %v1290_v21 = vsub.s32 4, %v8004_v55 }
  0xfd   : > { %4469 = vmatpush1.bf16.msra.mxu0 %v6804_v13 }
  0xfe   : > { %4470 = vmatprep.subr.bf16.mxu0 %v6812_v15 }
  0xff   : > { %4907 = vmatpush1.bf16.msra.mxu1 %v6807_v23  ;;  %v1294_v23 = vsub.s32 5, %v8004_v55 }
 0x100   : > { %4908 = vmatprep.subr.bf16.mxu1 %v6815_v25 }
 0x101   : > { %4471 = vmatpush1.bf16.msra.mxu0 %v6810_v17 }
 0x102   : > { %4472 = vmatprep.subr.bf16.mxu0 %v6818_v20 }
 0x103   : > { %4909 = vmatpush1.bf16.msra.mxu1 %v6813_v27 }
 0x104   : > { %4910 = vmatprep.subr.bf16.mxu1 %v6821_v29 }
 0x105   : > { %4473 = vmatpush1.bf16.msra.mxu0 %v6816_v22 }
 0x106   : > { %4474 = vmatprep.subr.bf16.mxu0 %v6824_v24 }
 0x107   : > { %4911 = vmatpush1.bf16.msra.mxu1 %v6819_v31 }
 0x108   : > { %4912 = vmatprep.subr.bf16.mxu1 %v6827_v33 }
 0x109   : > { %4475 = vmatpush1.bf16.msra.mxu0 %v6822_v26 }
 0x10a   : > { %4476 = vmatprep.subr.bf16.mxu0 %v6830_v28 }
 0x10b   : > { %4913 = vmatpush1.bf16.msra.mxu1 %v6825_v35 }
 0x10c   : > { %4914 = vmatprep.subr.bf16.mxu1 %v6833_v37 }
 0x10d   : > { %4477 = vmatpush1.bf16.msra.mxu0 %v6828_v30  ;;  %v1291_v30 = vrot.slane %v8010_v57, %v1290_v21 }
 0x10e   : > { %4478 = vmatprep.subr.bf16.mxu0 %v6836_v32  ;;  %v1295_v32 = vrot.slane %v8010_v57, %v1294_v23 }
 0x10f   : > { %4915 = vmatpush1.bf16.msra.mxu1 %v6831_v39 }
 0x110   : > { %4916 = vmatprep.subr.bf16.mxu1 %v6839_v19 }
 0x111   : > { %4479 = vmatpush1.bf16.msra.mxu0 %v6834_v34 }
 0x112   : > { %4480 = vmatprep.subr.bf16.mxu0 %v6842_v36 }
 0x113   : > { %4917 = vmatpush1.bf16.msra.mxu1 %v6837_v43 }
 0x114   : > { %4918 = vmatprep.subr.bf16.mxu1 %v6845_v44 }
 0x115   : > { %4481 = vmatpush1.bf16.msra.mxu0 %v6840_v38 }
 0x116   : > { %4482 = vmatprep.subr.bf16.mxu0 %v6848_v40 }
 0x117   : > { %4919 = vmatpush1.bf16.msra.mxu1 %v6843_v48  ;;  %v1668_v48 = vld [vmem:[%s7822_s18 + $0x90] sm:$0xff] }
 0x118   : > { %4920 = vmatprep.subr.bf16.mxu1 %v6851_v49  ;;  %v1298_v49 = vsub.s32 6, %v8004_v55 }
 0x119   : > { %4483 = vmatpush1.bf16.msra.mxu0 %v6846_v41  ;;  %v1650_v41 = vld [vmem:[%s7822_s18] sm:$0xff] }
 0x11a   : > { %4484 = vmatprep.subr.bf16.mxu0 %v6854_v42  ;;  %v1656_v42 = vld [vmem:[%s7822_s18 + $0x30] sm:$0xff] }
 0x11b   : > { %4921 = vmatpush1.bf16.msra.mxu1 %v6849_v50  ;;  %v1302_v50 = vsub.s32 7, %v8004_v55  ;;  %v1299_v55 = vrot.slane %v8010_v57, %v1298_v49  ;;  %v6882_v49 = vld [vmem:[%s7818_s17 + $0x280] ss:$16 sps:$4 sm:$0xff]  }
 0x11c   : > { %4922 = vmatprep.subr.bf16.mxu1 %v6857_v51 }
 0x11d   : > { %4485 = vmatpush1.bf16.msra.mxu0 %v6852_v45 }
 0x11e   : > { %4527 = vmatprep.subr.bf16.mxu0 %v6860_v47  ;;  %v1662_v47 = vld [vmem:[%s7822_s18 + $0x60] sm:$0xff] }
 0x11f   : > { %4923 = vmatpush1.bf16.msra.mxu1 %v6855_v52 }
 0x120   : > { %4965 = vmatprep.subr.bf16.mxu1 %v6863_v53 }
 0x173   : > { %v1366_v61 = vpop.f32.mrb[0].mxu0  ;;  %v1407_v8 = vpop.f32.mrb[0].mxu1 }
 0x174   : > { %v1367_v62 = vadd.f32 %v1366_v61, %v1275_v59  ;;  %v1368_v63 = vpop.f32.mrb[1].mxu0  ;;  %v1408_v9 = vadd.f32 %v1407_v8, %v1283_v46  ;;  %v1409_v10 = vpop.f32.mrb[1].mxu1  ;;  %v6869_v46 = vld [vmem:[%s7818_s17 + $0x22c] ss:$16 sps:$4 sm:$0xff]  }
 0x175   : > { %v1369_v0 = vadd.f32 %v1368_v63, %v1279_v60  ;;  %v1370_v1 = vpop.f32.mrb[2].mxu0  ;;  %v1410_v11 = vadd.f32 %v1409_v10, %v1287_v7  ;;  %v1411_v12 = vpop.f32.mrb[2].mxu1  ;;  %v6858_v63 = vld [vmem:[%s7818_s17 + $0x200] ss:$16 sps:$4 sm:$0xff]  }
 0x176   : > { %v5972_v2 = vmul.f32 -1.442695, %v1367_v62  ;;  %v1371_v3 = vpop.f32.mrb[3].mxu0  ;;  %v5974_v13 = vmul.f32 -1.442695, %v1408_v9  ;;  %v1412_v14 = vpop.f32.mrb[3].mxu1 }
 0x177   : > { %v5973_v4 = vmul.f32 -1.442695, %v1369_v0  ;;  %v5975_v16 = vmul.f32 -1.442695, %v1410_v11  ;;  %v6861_v0 = vld [vmem:[%s7818_s17 + $0x208] ss:$16 sps:$4 sm:$0xff]   ;;  %v1303_v3 = vrot.slane %v8010_v57, %v1302_v50 }
 0x178   : > { %7338 = vpow2.f32 %v5972_v2  ;;  %v1674_v9 = vld [vmem:[%s7822_s18 + $0xc0] sm:$0xff]  ;;  %v6867_v57 = vld [vmem:[%s7818_s17 + $0x228] ss:$16 sps:$4 sm:$0xff]  }
 0x179   : > { %7340 = vpow2.f32 %v5973_v4  ;;  %v6866_v4 = vld [vmem:[%s7818_s17 + $0x224] ss:$16 sps:$4 sm:$0xff]   ;;  %v6864_v12 = vld [vmem:[%s7818_s17 + $0x220] ss:$16 sps:$4 sm:$0xff]   ;;  %v6885_v50 = vld [vmem:[%s7818_s17 + $0x288] ss:$16 sps:$4 sm:$0xff]  }
 0x17a   : > { %7342 = vpow2.f32 %v5974_v13  ;;  %v1680_v13 = vld [vmem:[%s7822_s18 + $0xf0] sm:$0xff] }
 0x17b   : > { %7344 = vpow2.f32 %v5975_v16 }
 0x182   : > { %v7339_v15 = vpop.eup %7338 }
 0x183   : > { %v7341_v17 = vpop.eup %7340  ;;  %v1614_v18 = vadd.f32 1.0, %v7339_v15 }
 0x184   : > { %v1615_v20 = vadd.f32 1.0, %v7341_v17  ;;  %v7343_v22 = vpop.eup %7342  ;;  %v6872_v17 = vld [vmem:[%s7818_s17 + $0x244] ss:$16 sps:$4 sm:$0xff]  }
 0x185   : > { %7346 = vrcp.f32 %v1614_v18  ;;  %v7345_v24 = vpop.eup %7344  ;;  %v1616_v25 = vadd.f32 1.0, %v7343_v22  ;;  %v6875_v18 = vld [vmem:[%s7818_s17 + $0x24c] ss:$16 sps:$4 sm:$0xff]  }
 0x186   : > { %7348 = vrcp.f32 %v1615_v20  ;;  %v1617_v27 = vadd.f32 1.0, %v7345_v24 }
 0x187   : > { %7350 = vrcp.f32 %v1616_v25 }
 0x188   : > { %7352 = vrcp.f32 %v1617_v27 }
 0x18f   : > { %v7347_v26 = vpop.eup %7346 }
 0x190   : > { %v7349_v28 = vpop.eup %7348  ;;  %v1698_v29 = vpack.c.bf16 %v7347_v26, %v7347_v26 }
 0x191   : > { %v1699_v31 = vpack.c.bf16 %v7349_v28, %v7349_v28  ;;  %v7351_v54 = vpop.eup %7350 }
 0x192   : > { %v1711_v33 = vpack.i.b16 %v1698_v29, %v1698_v29  ;;  %v7353_v61 = vpop.eup %7352  ;;  %v1700_v2 = vpack.c.bf16 %v7351_v54, %v7351_v54  ;;  %v6893_v54 = vld [vmem:[%s7818_s17 + $0x2ac] ss:$16 sps:$4 sm:$0xff]  }
 0x193   : > { %v1718_v34 = vpack.i.b16 %v1699_v31, %v1699_v31  ;;  %v1448_v35 = vpop.f32.mrb[4].mxu0  ;;  %v1701_v7 = vpack.c.bf16 %v7353_v61, %v7353_v61  ;;  %v6873_v31 = vld [vmem:[%s7818_s17 + $0x248] ss:$16 sps:$4 sm:$0xff]  }
 0x194   : > { %v1716_v36 = vrot.slane %v1711_v33, %v8007_v56  ;;  %v1449_v37 = vadd.f32 %v1448_v35, %v1291_v30  ;;  %v1450_v38 = vpop.f32.mrb[5].mxu0  ;;  %v1725_v10 = vpack.i.b16 %v1700_v2, %v1700_v2  ;;  %v6870_v30 = vld [vmem:[%s7818_s17 + $0x240] ss:$16 sps:$4 sm:$0xff]   ;;  %v6878_v35 = vld [vmem:[%s7818_s17 + $0x264] ss:$16 sps:$4 sm:$0xff]   ;;  %v1657_v61 = vld [vmem:[%s7822_s18 + $0x38] sm:$0xff] }
 0x195   : > { %v1723_v39 = vrot.slane %v1718_v34, %v8007_v56  ;;  %v1451_v40 = vadd.f32 %v1450_v38, %v1295_v32  ;;  %v1452_v19 = vpop.f32.mrb[6].mxu0  ;;  %v1489_v11 = vpop.f32.mrb[4].mxu1  ;;  %v1732_v14 = vpack.i.b16 %v1701_v7, %v1701_v7  ;;  %v1686_v38 = vld [vmem:[%s7822_s18 + $0x120] sm:$0xff] }
 0x196   : > { %v5976_v43 = vmul.f32 -1.442695, %v1449_v37  ;;  %v1453_v44 = vpop.f32.mrb[7].mxu0  ;;  %v1490_v15 = vadd.f32 %v1489_v11, %v1299_v55  ;;  %v1491_v16 = vpop.f32.mrb[5].mxu1  ;;  %v1730_v20 = vrot.slane %v1725_v10, %v8007_v56  ;;  %v6879_v19 = vld [vmem:[%s7818_s17 + $0x268] ss:$16 sps:$4 sm:$0xff]  }
 0x197   : > { %v8037_v45 = vcombine.low %v1716_v36, %v1723_v39  ;;  %v5977_v53 = vmul.f32 -1.442695, %v1451_v40  ;;  %v1492_v21 = vadd.f32 %v1491_v16, %v1303_v3  ;;  %v1493_v22 = vpop.f32.mrb[6].mxu1  ;;  %v1737_v23 = vrot.slane %v1732_v14, %v8007_v56  ;;  %v6881_v36 = vld [vmem:[%s7818_s17 + $0x26c] ss:$16 sps:$4 sm:$0xff]  }
 0x198   : > { %7354 = vpow2.f32 %v5976_v43  ;;  %v5978_v24 = vmul.f32 -1.442695, %v1490_v15  ;;  %v1494_v25 = vpop.f32.mrb[7].mxu1  ;;  %v6876_v40 = vld [vmem:[%s7818_s17 + $0x260] ss:$16 sps:$4 sm:$0xff]  }
 0x199   : > { %v1830_v51 = vmul.bf16 %v8037_v45, %v1650_v41  ;;  %v1836_v52 = vmul.bf16 %v8037_v45, %v1656_v42  ;;  %v1842_v59 = vmul.bf16 %v8037_v45, %v1662_v47  ;;  %v1848_v60 = vmul.bf16 %v8037_v45, %v1668_v48  ;;  %v1692_v41 = vld [vmem:[%s7822_s18 + $0x150] sm:$0xff]  ;;  %v6887_v43 = vld [vmem:[%s7818_s17 + $0x28c] ss:$16 sps:$4 sm:$0xff]  }
 0x19a   : > { %7356 = vpow2.f32 %v5977_v53  ;;  %v1854_v27 = vmul.bf16 %v8037_v45, %v1674_v9  ;;  %v1860_v28 = vmul.bf16 %v8037_v45, %v1680_v13  ;;  %v5979_v29 = vmul.f32 -1.442695, %v1492_v21  ;;  %v6884_v42 = vld [vmem:[%s7818_s17 + $0x284] ss:$16 sps:$4 sm:$0xff]   ;;  %v6899_v3 = vld [vmem:[%s7818_s17 + $0x2cc] ss:$16 sps:$4 sm:$0xff]  }
 0x19b   : > { %v5991_v62 = vcombine.high %v1830_v51, %v1836_v52  ;;  %v5990_v1 = vcombine.low %v1830_v51, %v1836_v52  ;;  %v6003_v8 = vcombine.high %v1842_v59, %v1848_v60  ;;  %v8065_v32 = vcombine.low %v1730_v20, %v1737_v23  ;;  %v6890_v53 = vld [vmem:[%s7818_s17 + $0x2a4] ss:$16 sps:$4 sm:$0xff]   ;;  %v6894_v11 = vld [vmem:[%s7818_s17 + $0x2c0] ss:$16 sps:$4 sm:$0xff]  }
 0x19c   : > { %7358 = vpow2.f32 %v5978_v24  ;;  %v6002_v34 = vcombine.low %v1842_v59, %v1848_v60  ;;  %v6015_v37 = vcombine.high %v1854_v27, %v1860_v28  ;;  %v1866_v47 = vmul.bf16 %v8037_v45, %v1686_v38  ;;  %v1651_v59 = vld [vmem:[%s7822_s18 + $0x8] sm:$0xff]  ;;  %v6896_v2 = vld [vmem:[%s7818_s17 + $0x2c4] ss:$16 sps:$4 sm:$0xff]   ;;  %v6906_v38 = vld [vmem:[%s7818_s17 + $0x300] ss:$16 sps:$4 sm:$0xff]  }
 0x19d   : > { %4486 = vmatprep.mubr.bf16.mxu0 %v5991_v62  ;;  %4924 = vmatprep.mubr.bf16.mxu1 %v5991_v62  ;;  %7360 = vpow2.f32 %v5979_v29  ;;  %v1872_v48 = vmul.bf16 %v8037_v45, %v1692_v41  ;;  %v6014_v51 = vcombine.low %v1854_v27, %v1860_v28  ;;  %v8094_v7 = vmul.bf16 %v8065_v32, %v1657_v61  ;;  %v6902_v16 = vld [vmem:[%s7818_s17 + $0x2e4] ss:$16 sps:$4 sm:$0xff]   ;;  %v6900_v27 = vld [vmem:[%s7818_s17 + $0x2e0] ss:$16 sps:$4 sm:$0xff]   ;;  %v6903_v28 = vld [vmem:[%s7818_s17 + $0x2e8] ss:$16 sps:$4 sm:$0xff]  }
 0x19e   : > { %4487 = vmatmul.mubr.bf16.vlgmr.msra.gmra.mrb[12].mxu0 %v5990_v1  ;;  %4925 = vmatmul.mubr.bf16.vlgmr.msra.gmra.mrb[12].mxu1 %v5990_v1  ;;  %v6914_v41 = vld [vmem:[%s7818_s17 + $0x324] ss:$16 sps:$4 sm:$0xff]  }
 0x19f   : > { %4528 = vmatpush1.bf16.msra.mxu0 %v6858_v63  ;;  %4966 = vmatpush1.bf16.msra.mxu1 %v6861_v0  ;;  %v6027_v45 = vcombine.high %v1866_v47, %v1872_v48  ;;  %v6888_v63 = vld [vmem:[%s7818_s17 + $0x2a0] ss:$16 sps:$4 sm:$0xff]   ;;  %v6891_v0 = vld [vmem:[%s7818_s17 + $0x2a8] ss:$16 sps:$4 sm:$0xff]   ;;  %v6026_v15 = vcombine.low %v1866_v47, %v1872_v48 }
 0x1a0   : > { %4496 = vmatprep.mubr.bf16.mxu0 %v6003_v8  ;;  %4934 = vmatprep.mubr.bf16.mxu1 %v6003_v8 }
 0x1a1   : > { %4529 = vmatprep.subr.bf16.mxu0 %v6866_v4  ;;  %4967 = vmatprep.subr.bf16.mxu1 %v6869_v46  ;;  %v8088_v4 = vmul.bf16 %v8065_v32, %v1651_v59  ;;  %v8091_v46 = vld [vmem:[%s7813_s14 + $0x8] sm:$0xf]  ;;  %v6920_v59 = vld [vmem:[%s7818_s17 + $0x344] ss:$16 sps:$4 sm:$0xff]  }
 0x1a2   : > { %v7355_v26 = vpop.eup %7354  ;;  %v1307_v9 = vrot.slane %v8091_v46, %v8007_v56  ;;  %v1311_v10 = vrot.slane %v8091_v46, %v8013_v58  ;;  %v1315_v47 = vrot.slane %v8091_v46, %v8020_v5 }
 0x1a3   : > { %4530 = vmatpush1.bf16.msra.mxu0 %v6864_v12  ;;  %4968 = vmatpush1.bf16.msra.mxu1 %v6867_v57  ;;  %v1618_v33 = vadd.f32 1.0, %v7355_v26  ;;  %v6897_v12 = vld [vmem:[%s7818_s17 + $0x2c8] ss:$16 sps:$4 sm:$0xff]   ;;  %v5993_v21 = vcombine.high %v8088_v4, %v8094_v7 }
 0x1a4   : > { %4531 = vmatprep.subr.bf16.mxu0 %v6872_v17  ;;  %4969 = vmatprep.subr.bf16.mxu1 %v6875_v18  ;;  %v7357_v39 = vpop.eup %7356  ;;  %v6905_v17 = vld [vmem:[%s7818_s17 + $0x2ec] ss:$16 sps:$4 sm:$0xff]  }
 0x1a5   : > { %7362 = vrcp.f32 %v1618_v33  ;;  %v1619_v44 = vadd.f32 1.0, %v7357_v39  ;;  %v6908_v33 = vld [vmem:[%s7818_s17 + $0x304] ss:$16 sps:$4 sm:$0xff]   ;;  %v6909_v39 = vld [vmem:[%s7818_s17 + $0x308] ss:$16 sps:$4 sm:$0xff]  }
 0x1a6   : > { %4497 = vmatmul.mubr.bf16.gmra.mrb[16].mxu0 %v6002_v34  ;;  %4935 = vmatmul.mubr.bf16.gmra.mrb[16].mxu1 %v6002_v34  ;;  %v7359_v52 = vpop.eup %7358  ;;  %v6911_v34 = vld [vmem:[%s7818_s17 + $0x30c] ss:$16 sps:$4 sm:$0xff]  }
 0x1a7   : > { %4532 = vmatpush1.bf16.msra.mxu0 %v6870_v30  ;;  %4970 = vmatpush1.bf16.msra.mxu1 %v6873_v31  ;;  %7364 = vrcp.f32 %v1619_v44  ;;  %v7361_v60 = vpop.eup %7360  ;;  %v1620_v62 = vadd.f32 1.0, %v7359_v52  ;;  %v6915_v52 = vld [vmem:[%s7818_s17 + $0x328] ss:$16 sps:$4 sm:$0xff]  }
 0x1a8   : > { %4506 = vmatprep.mubr.bf16.mxu0 %v6015_v37  ;;  %4944 = vmatprep.mubr.bf16.mxu1 %v6015_v37  ;;  %v1621_v1 = vadd.f32 1.0, %v7361_v60  ;;  %v6923_v60 = vld [vmem:[%s7818_s17 + $0x34c] ss:$16 sps:$4 sm:$0xff]  }
 0x1a9   : > { %4533 = vmatprep.subr.bf16.mxu0 %v6878_v35  ;;  %4971 = vmatprep.subr.bf16.mxu1 %v6881_v36  ;;  %7366 = vrcp.f32 %v1620_v62 }
 0x1aa   : > { %7368 = vrcp.f32 %v1621_v1  ;;  %v6918_v1 = vld [vmem:[%s7818_s17 + $0x340] ss:$16 sps:$4 sm:$0xff]  }
 0x1ab   : > { %4534 = vmatpush1.bf16.msra.mxu0 %v6876_v40  ;;  %4972 = vmatpush1.bf16.msra.mxu1 %v6879_v19 }
 0x1ac   : > { %4535 = vmatprep.subr.bf16.mxu0 %v6884_v42  ;;  %4973 = vmatprep.subr.bf16.mxu1 %v6887_v43  ;;  %v6917_v42 = vld [vmem:[%s7818_s17 + $0x32c] ss:$16 sps:$4 sm:$0xff]  }
 0x1ae   : > { %4507 = vmatmul.mubr.bf16.gmra.mrb[20].mxu0 %v6014_v51  ;;  %4945 = vmatmul.mubr.bf16.gmra.mrb[20].mxu1 %v6014_v51  ;;  %v6912_v51 = vld [vmem:[%s7818_s17 + $0x320] ss:$16 sps:$4 sm:$0xff]  }
 0x1af   : > { %4536 = vmatpush1.bf16.msra.mxu0 %v6882_v49  ;;  %4974 = vmatpush1.bf16.msra.mxu1 %v6885_v50  ;;  %v7363_v55 = vpop.eup %7362  ;;  %v1319_v50 = vrot.slane %v8091_v46, %v8023_v6 }
 0x1b0   : > { %4516 = vmatprep.mubr.bf16.mxu0 %v6027_v45  ;;  %4954 = vmatprep.mubr.bf16.mxu1 %v6027_v45  ;;  %v1702_v8 = vpack.c.bf16 %v7363_v55, %v7363_v55  ;;  %v6921_v55 = vld [vmem:[%s7818_s17 + $0x348] ss:$16 sps:$4 sm:$0xff]  }
 0x1b1   : > { %4537 = vmatprep.subr.bf16.mxu0 %v6890_v53  ;;  %4975 = vmatprep.subr.bf16.mxu1 %v6893_v54  ;;  %v7365_v14 = vpop.eup %7364 }
 0x1b2   : > { %v1739_v57 = vpack.i.b16 %v1702_v8, %v1702_v8  ;;  %v1703_v22 = vpack.c.bf16 %v7365_v14, %v7365_v14  ;;  %v6926_v8 = vld [vmem:[%s7818_s17 + $0x364] ss:$16 sps:$4 sm:$0xff]   ;;  %v6927_v14 = vld [vmem:[%s7818_s17 + $0x368] ss:$16 sps:$4 sm:$0xff]  }
 0x1b3   : > { %4538 = vmatpush1.bf16.msra.mxu0 %v6888_v63  ;;  %4976 = vmatpush1.bf16.msra.mxu1 %v6891_v0  ;;  %v1530_v13 = vpop.f32.mrb[8].mxu0  ;;  %v7367_v36 = vpop.eup %7366 }
 0x1b4   : > { %4539 = vmatprep.subr.bf16.mxu0 %v6896_v2  ;;  %4977 = vmatprep.subr.bf16.mxu1 %v6899_v3  ;;  %v1531_v18 = vadd.f32 %v1530_v13, %v1307_v9  ;;  %v1532_v20 = vpop.f32.mrb[9].mxu0  ;;  %v1744_v29 = vrot.slane %v1739_v57, %v8007_v56  ;;  %v1746_v30 = vpack.i.b16 %v1703_v22, %v1703_v22  ;;  %v7369_v37 = vpop.eup %7368  ;;  %v6924_v13 = vld [vmem:[%s7818_s17 + $0x360] ss:$16 sps:$4 sm:$0xff]  }
 0x1b5   : > { %v1533_v23 = vadd.f32 %v1532_v20, %v1311_v10  ;;  %v1534_v24 = vpop.f32.mrb[10].mxu0  ;;  %v1704_v19 = vpack.c.bf16 %v7367_v36, %v7367_v36  ;;  %v1705_v43 = vpack.c.bf16 %v7369_v37, %v7369_v37  ;;  %v1571_v49 = vpop.f32.mrb[8].mxu1  ;;  %v6938_v20 = vld [vmem:[%s7818_s17 + $0x3a4] ss:$16 sps:$4 sm:$0xff]   ;;  %v6945_v36 = vld [vmem:[%s7818_s17 + $0x3c8] ss:$16 sps:$4 sm:$0xff]  }
 0x1b6   : > { %4517 = vmatmul.mubr.bf16.gmra.mrb[24].mxu0 %v6026_v15  ;;  %4955 = vmatmul.mubr.bf16.gmra.mrb[24].mxu1 %v6026_v15  ;;  %v5980_v25 = vmul.f32 -1.442695, %v1531_v18  ;;  %v1535_v26 = vpop.f32.mrb[11].mxu0  ;;  %v1751_v35 = vrot.slane %v1746_v30, %v8007_v56  ;;  %v1573_v54 = vpop.f32.mrb[9].mxu1  ;;  %v1572_v62 = vadd.f32 %v1571_v49, %v1315_v47  ;;  %v6932_v15 = vld [vmem:[%s7818_s17 + $0x384] ss:$16 sps:$4 sm:$0xff]  }
 0x1b7   : > { %4540 = vmatpush1.bf16.msra.mxu0 %v6894_v11  ;;  %4978 = vmatpush1.bf16.msra.mxu1 %v6897_v12  ;;  %v5981_v31 = vmul.f32 -1.442695, %v1533_v23  ;;  %v1753_v44 = vpack.i.b16 %v1704_v19, %v1704_v19  ;;  %v1760_v48 = vpack.i.b16 %v1705_v43, %v1705_v43  ;;  %v1575_v61 = vpop.f32.mrb[10].mxu1  ;;  %v1574_v3 = vadd.f32 %v1573_v54, %v1319_v50  ;;  %v6929_v11 = vld [vmem:[%s7818_s17 + $0x36c] ss:$16 sps:$4 sm:$0xff]  }
 0x1b8   : > { %4541 = vmatprep.subr.bf16.mxu0 %v6902_v16  ;;  %4979 = vmatprep.subr.bf16.mxu1 %v6905_v17  ;;  %7370 = vpow2.f32 %v5980_v25  ;;  %v8114_v40 = vcombine.low %v1744_v29, %v1751_v35  ;;  %v1576_v63 = vpop.f32.mrb[11].mxu1  ;;  %v5982_v10 = vmul.f32 -1.442695, %v1572_v62  ;;  %v6935_v16 = vld [vmem:[%s7818_s17 + $0x38c] ss:$16 sps:$4 sm:$0xff]   ;;  %v5992_v54 = vcombine.low %v8088_v4, %v8094_v7 }
 0x1b9   : > { %4559 = vmatprep.mubr.bf16.mxu0 %v5993_v21  ;;  %4997 = vmatprep.mubr.bf16.mxu1 %v5993_v21  ;;  %7372 = vpow2.f32 %v5981_v31  ;;  %v1758_v53 = vrot.slane %v1753_v44, %v8007_v56  ;;  %v1765_v45 = vrot.slane %v1760_v48, %v8007_v56  ;;  %v5983_v57 = vmul.f32 -1.442695, %v1574_v3  ;;  %v6930_v17 = vld [vmem:[%s7818_s17 + $0x380] ss:$16 sps:$4 sm:$0xff]   ;;  %v6933_v18 = vld [vmem:[%s7818_s17 + $0x388] ss:$16 sps:$4 sm:$0xff]  }
 0x1ba   : > { %v6941_v21 = vld [vmem:[%s7818_s17 + $0x3ac] ss:$16 sps:$4 sm:$0xff]   ;;  %v6936_v23 = vld [vmem:[%s7818_s17 + $0x3a0] ss:$16 sps:$4 sm:$0xff]   ;;  %v6939_v24 = vld [vmem:[%s7818_s17 + $0x3a8] ss:$16 sps:$4 sm:$0xff]  }
 0x1bb   : > { %4542 = vmatpush1.bf16.msra.mxu0 %v6900_v27  ;;  %4980 = vmatpush1.bf16.msra.mxu1 %v6903_v28  ;;  %v8130_v2 = vcombine.low %v1758_v53, %v1765_v45  ;;  %v6944_v26 = vld [vmem:[%s7818_s17 + $0x3c4] ss:$16 sps:$4 sm:$0xff]   ;;  %v6947_v27 = vld [vmem:[%s7818_s17 + $0x3cc] ss:$16 sps:$4 sm:$0xff]   ;;  %v6942_v35 = vld [vmem:[%s7818_s17 + $0x3c0] ss:$16 sps:$4 sm:$0xff]  }
 0x1bc   : > { %4543 = vmatprep.subr.bf16.mxu0 %v6908_v33  ;;  %4981 = vmatprep.subr.bf16.mxu1 %v6911_v34  ;;  %v1669_v43 = vld [vmem:[%s7822_s18 + $0x98] sm:$0xff]  ;;  %v6948_v47 = vld [vmem:[%s7818_s17 + $0x3e0] ss:$16 sps:$4 sm:$0xff]   ;;  %v6956_v49 = vld [vmem:[%s7818_s17 + $0x404] ss:$16 sps:$4 sm:$0xff]  }
 0x1bd   : > { %v6951_v48 = vld [vmem:[%s7818_s17 + $0x3e8] ss:$16 sps:$4 sm:$0xff]   ;;  %v6959_v50 = vld [vmem:[%s7818_s17 + $0x40c] ss:$16 sps:$4 sm:$0xff]   ;;  %v1849_v53 = vmul.bf16 %v8065_v32, %v1669_v43  ;;  %v6962_v62 = vld [vmem:[%s7818_s17 + $0x424] ss:$16 sps:$4 sm:$0xff]  }
 0x1be   : > { %v6965_v63 = vld [vmem:[%s7818_s17 + $0x42c] ss:$16 sps:$4 sm:$0xff]   ;;  %v6960_v7 = vld [vmem:[%s7818_s17 + $0x420] ss:$16 sps:$4 sm:$0xff]   ;;  %v6963_v3 = vld [vmem:[%s7818_s17 + $0x428] ss:$16 sps:$4 sm:$0xff]  }
 0x1bf   : > { %4544 = vmatpush1.bf16.msra.mxu0 %v6906_v38  ;;  %4982 = vmatpush1.bf16.msra.mxu1 %v6909_v39  ;;  %v6950_v38 = vld [vmem:[%s7818_s17 + $0x3e4] ss:$16 sps:$4 sm:$0xff]   ;;  %v6953_v39 = vld [vmem:[%s7818_s17 + $0x3ec] ss:$16 sps:$4 sm:$0xff]  }
 0x1c0   : > { %4545 = vmatprep.subr.bf16.mxu0 %v6914_v41  ;;  %4983 = vmatprep.subr.bf16.mxu1 %v6917_v42  ;;  %v1663_v42 = vld [vmem:[%s7822_s18 + $0x68] sm:$0xff]  ;;  %v6992_v43 = vld [vmem:[%s7818_s17 + $0x4c4] ss:$16 sps:$4 sm:$0xff]  }
 0x1c2   : > { %v7371_v0 = vpop.eup %7370 }
 0x1c3   : > { %v7373_v46 = vpop.eup %7372  ;;  %4546 = vmatpush1.bf16.msra.mxu0 %v6912_v51  ;;  %4984 = vmatpush1.bf16.msra.mxu1 %v6915_v52  ;;  %v1622_v9 = vadd.f32 1.0, %v7371_v0  ;;  %v1843_v52 = vmul.bf16 %v8065_v32, %v1663_v42  ;;  %v1675_v0 = vld [vmem:[%s7822_s18 + $0xc8] sm:$0xff] }
 0x1c4   : > { %4547 = vmatprep.subr.bf16.mxu0 %v6920_v59  ;;  %4985 = vmatprep.subr.bf16.mxu1 %v6923_v60  ;;  %v1623_v12 = vadd.f32 1.0, %v7373_v46  ;;  %v6954_v59 = vld [vmem:[%s7818_s17 + $0x400] ss:$16 sps:$4 sm:$0xff]   ;;  %v6957_v60 = vld [vmem:[%s7818_s17 + $0x408] ss:$16 sps:$4 sm:$0xff]  }
 0x1c5   : > { %7374 = vrcp.f32 %v1622_v9  ;;  %v6005_v61 = vcombine.high %v1843_v52, %v1849_v53  ;;  %v6968_v46 = vld [vmem:[%s7818_s17 + $0x444] ss:$16 sps:$4 sm:$0xff]   ;;  %v6987_v42 = vld [vmem:[%s7818_s17 + $0x4a8] ss:$16 sps:$4 sm:$0xff]  }
 0x1c6   : > { %7376 = vpow2.f32 %v5982_v10  ;;  %v6971_v10 = vld [vmem:[%s7818_s17 + $0x44c] ss:$16 sps:$4 sm:$0xff]  }
 0x1c7   : > { %4548 = vmatpush1.bf16.msra.mxu0 %v6918_v1  ;;  %4986 = vmatpush1.bf16.msra.mxu1 %v6921_v55  ;;  %7378 = vrcp.f32 %v1623_v12  ;;  %v1681_v1 = vld [vmem:[%s7822_s18 + $0xf8] sm:$0xff] }
 0x1c8   : > { %4549 = vmatprep.subr.bf16.mxu0 %v6926_v8  ;;  %4987 = vmatprep.subr.bf16.mxu1 %v6929_v11  ;;  %7380 = vpow2.f32 %v5983_v57  ;;  %v1855_v11 = vmul.bf16 %v8065_v32, %v1675_v0  ;;  %v1861_v12 = vmul.bf16 %v8065_v32, %v1681_v1  ;;  %v7013_v0 = vld [vmem:[%s7818_s17 + $0x52c] ss:$16 sps:$4 sm:$0xff]   ;;  %v7008_v1 = vld [vmem:[%s7818_s17 + $0x520] ss:$16 sps:$4 sm:$0xff]  }
 0x1cb   : > { %4550 = vmatpush1.bf16.msra.mxu0 %v6924_v13  ;;  %4988 = vmatpush1.bf16.msra.mxu1 %v6927_v14  ;;  %v6966_v14 = vld [vmem:[%s7818_s17 + $0x440] ss:$16 sps:$4 sm:$0xff]  }
 0x1cc   : > { %4551 = vmatprep.subr.bf16.mxu0 %v6932_v15  ;;  %4989 = vmatprep.subr.bf16.mxu1 %v6935_v16  ;;  %v6004_v15 = vcombine.low %v1843_v52, %v1849_v53  ;;  %v6969_v16 = vld [vmem:[%s7818_s17 + $0x448] ss:$16 sps:$4 sm:$0xff]   ;;  %v6998_v52 = vld [vmem:[%s7818_s17 + $0x4e4] ss:$16 sps:$4 sm:$0xff]   ;;  %v7001_v53 = vld [vmem:[%s7818_s17 + $0x4ec] ss:$16 sps:$4 sm:$0xff]  }
 0x1cf   : > { %v7375_v22 = vpop.eup %7374  ;;  %4552 = vmatpush1.bf16.msra.mxu0 %v6930_v17  ;;  %4990 = vmatpush1.bf16.msra.mxu1 %v6933_v18  ;;  %v6017_v18 = vcombine.high %v1855_v11, %v1861_v12 }
 0x1d0   : > { %v7377_v25 = vpop.eup %7376  ;;  %4553 = vmatprep.subr.bf16.mxu0 %v6938_v20  ;;  %4991 = vmatprep.subr.bf16.mxu1 %v6941_v21  ;;  %v1706_v28 = vpack.c.bf16 %v7375_v22, %v7375_v22  ;;  %v6974_v20 = vld [vmem:[%s7818_s17 + $0x464] ss:$16 sps:$4 sm:$0xff]   ;;  %v6977_v21 = vld [vmem:[%s7818_s17 + $0x46c] ss:$16 sps:$4 sm:$0xff]  }
 0x1d1   : > { %v7379_v29 = vpop.eup %7378  ;;  %v1624_v30 = vadd.f32 1.0, %v7377_v25  ;;  %v1687_v22 = vld [vmem:[%s7822_s18 + $0x128] sm:$0xff]  ;;  %v6972_v25 = vld [vmem:[%s7818_s17 + $0x460] ss:$16 sps:$4 sm:$0xff]  }
 0x1d2   : > { %v7381_v31 = vpop.eup %7380  ;;  %v1767_v33 = vpack.i.b16 %v1706_v28, %v1706_v28  ;;  %v1707_v34 = vpack.c.bf16 %v7379_v29, %v7379_v29  ;;  %v6983_v28 = vld [vmem:[%s7818_s17 + $0x48c] ss:$16 sps:$4 sm:$0xff]   ;;  %v1867_v29 = vmul.bf16 %v8065_v32, %v1687_v22  ;;  %v7038_v22 = vld [vmem:[%s7818_s17 + $0x5c0] ss:$16 sps:$4 sm:$0xff]  }
 0x1d3   : > { %4554 = vmatpush1.bf16.msra.mxu0 %v6936_v23  ;;  %4992 = vmatpush1.bf16.msra.mxu1 %v6939_v24  ;;  %7382 = vrcp.f32 %v1624_v30  ;;  %v1625_v37 = vadd.f32 1.0, %v7381_v31  ;;  %v1693_v23 = vld [vmem:[%s7822_s18 + $0x158] sm:$0xff]  ;;  %v6978_v31 = vld [vmem:[%s7818_s17 + $0x480] ss:$16 sps:$4 sm:$0xff]  }
 0x1d4   : > { %4555 = vmatprep.subr.bf16.mxu0 %v6944_v26  ;;  %4993 = vmatprep.subr.bf16.mxu1 %v6947_v27  ;;  %v1772_v19 = vrot.slane %v1767_v33, %v8007_v56  ;;  %v1774_v41 = vpack.i.b16 %v1707_v34, %v1707_v34  ;;  %v6975_v26 = vld [vmem:[%s7818_s17 + $0x468] ss:$16 sps:$4 sm:$0xff]   ;;  %v6980_v27 = vld [vmem:[%s7818_s17 + $0x484] ss:$16 sps:$4 sm:$0xff]   ;;  %v1873_v30 = vmul.bf16 %v8065_v32, %v1693_v23  ;;  %v6984_v32 = vld [vmem:[%s7818_s17 + $0x4a0] ss:$16 sps:$4 sm:$0xff]  }
 0x1d5   : > { %7384 = vrcp.f32 %v1625_v37  ;;  %v6016_v33 = vcombine.low %v1855_v11, %v1861_v12  ;;  %v6981_v34 = vld [vmem:[%s7818_s17 + $0x488] ss:$16 sps:$4 sm:$0xff]   ;;  %v7028_v12 = vld [vmem:[%s7818_s17 + $0x584] ss:$16 sps:$4 sm:$0xff]  }
 0x1d6   : > { %v1779_v44 = vrot.slane %v1774_v41, %v8007_v56  ;;  %v6029_v37 = vcombine.high %v1867_v29, %v1873_v30  ;;  %v7023_v11 = vld [vmem:[%s7818_s17 + $0x568] ss:$16 sps:$4 sm:$0xff]  }
 0x1d7   : > { %4556 = vmatpush1.bf16.msra.mxu0 %v6942_v35  ;;  %4994 = vmatpush1.bf16.msra.mxu1 %v6945_v36  ;;  %v1652_v35 = vld [vmem:[%s7822_s18 + $0x10] sm:$0xff]  ;;  %v1658_v36 = vld [vmem:[%s7822_s18 + $0x40] sm:$0xff]  ;;  %v7041_v23 = vld [vmem:[%s7818_s17 + $0x5c8] ss:$16 sps:$4 sm:$0xff]  }
 0x1d8   : > { %4557 = vmatprep.subr.bf16.mxu0 %v6950_v38  ;;  %4995 = vmatprep.subr.bf16.mxu1 %v6953_v39  ;;  %v8158_v51 = vcombine.low %v1772_v19, %v1779_v44  ;;  %v6986_v38 = vld [vmem:[%s7818_s17 + $0x4a4] ss:$16 sps:$4 sm:$0xff]   ;;  %v6989_v39 = vld [vmem:[%s7818_s17 + $0x4ac] ss:$16 sps:$4 sm:$0xff]   ;;  %v8200_v19 = vmul.bf16 %v8114_v40, %v1652_v35  ;;  %v8203_v41 = vmul.bf16 %v8114_v40, %v1658_v36 }
 0x1d9   : > { %v6995_v44 = vld [vmem:[%s7818_s17 + $0x4cc] ss:$16 sps:$4 sm:$0xff]  }
 0x1da   : > { %v5994_v36 = vcombine.low %v8200_v19, %v8203_v41 }
 0x1db   : > { %4558 = vmatpush1.bf16.msra.mxu0 %v6948_v47  ;;  %4996 = vmatpush1.bf16.msra.mxu1 %v6951_v48  ;;  %v6990_v47 = vld [vmem:[%s7818_s17 + $0x4c0] ss:$16 sps:$4 sm:$0xff]   ;;  %v5995_v48 = vcombine.high %v8200_v19, %v8203_v41  ;;  %v7059_v41 = vld [vmem:[%s7818_s17 + $0x628] ss:$16 sps:$4 sm:$0xff]  }
 0x1dc   : > { %4600 = vmatprep.subr.bf16.mxu0 %v6956_v49  ;;  %5038 = vmatprep.subr.bf16.mxu1 %v6959_v50  ;;  %v6028_v49 = vcombine.low %v1867_v29, %v1873_v30  ;;  %v6993_v50 = vld [vmem:[%s7818_s17 + $0x4c8] ss:$16 sps:$4 sm:$0xff]   ;;  %v7044_v29 = vld [vmem:[%s7818_s17 + $0x5e0] ss:$16 sps:$4 sm:$0xff]  }
 0x1dd   : > { %v7383_v45 = vpop.eup %7382  ;;  %v7047_v30 = vld [vmem:[%s7818_s17 + $0x5e8] ss:$16 sps:$4 sm:$0xff]   ;;  %v7056_v19 = vld [vmem:[%s7818_s17 + $0x620] ss:$16 sps:$4 sm:$0xff]  }
 0x1de   : > { %4560 = vmatmul.mubr.bf16.vlgmr.msra.gmra.mrb[12].mxu0 %v5992_v54  ;;  %4998 = vmatmul.mubr.bf16.vlgmr.msra.gmra.mrb[12].mxu1 %v5992_v54  ;;  %v1708_v55 = vpack.c.bf16 %v7383_v45, %v7383_v45  ;;  %v6996_v54 = vld [vmem:[%s7818_s17 + $0x4e0] ss:$16 sps:$4 sm:$0xff]   ;;  %v7007_v45 = vld [vmem:[%s7818_s17 + $0x50c] ss:$16 sps:$4 sm:$0xff]  }
 0x1df   : > { %v7385_v4 = vpop.eup %7384  ;;  %4569 = vmatprep.mubr.bf16.mxu0 %v6005_v61  ;;  %4601 = vmatpush1.bf16.msra.mxu0 %v6954_v59  ;;  %v6999_v59 = vld [vmem:[%s7818_s17 + $0x4e8] ss:$16 sps:$4 sm:$0xff]  }
 0x1e0   : > { %5007 = vmatprep.mubr.bf16.mxu1 %v6005_v61  ;;  %5039 = vmatpush1.bf16.msra.mxu1 %v6957_v60  ;;  %v1781_v8 = vpack.i.b16 %v1708_v55, %v1708_v55  ;;  %v1709_v9 = vpack.c.bf16 %v7385_v4, %v7385_v4  ;;  %v7004_v60 = vld [vmem:[%s7818_s17 + $0x504] ss:$16 sps:$4 sm:$0xff]   ;;  %v7002_v61 = vld [vmem:[%s7818_s17 + $0x500] ss:$16 sps:$4 sm:$0xff]   ;;  %v7011_v55 = vld [vmem:[%s7818_s17 + $0x528] ss:$16 sps:$4 sm:$0xff]  }
 0x1e1   : > { %4602 = vmatprep.subr.bf16.mxu0 %v6962_v62  ;;  %5040 = vmatprep.subr.bf16.mxu1 %v6965_v63  ;;  %v7005_v62 = vld [vmem:[%s7818_s17 + $0x508] ss:$16 sps:$4 sm:$0xff]   ;;  %v7010_v63 = vld [vmem:[%s7818_s17 + $0x524] ss:$16 sps:$4 sm:$0xff]  }
 0x1e2   : > { %v1786_v57 = vrot.slane %v1781_v8, %v8007_v56  ;;  %v1788_v13 = vpack.i.b16 %v1709_v9, %v1709_v9  ;;  %v7016_v4 = vld [vmem:[%s7818_s17 + $0x544] ss:$16 sps:$4 sm:$0xff]   ;;  %v7025_v9 = vld [vmem:[%s7818_s17 + $0x56c] ss:$16 sps:$4 sm:$0xff]  }
 0x1e3   : > { %4603 = vmatpush1.bf16.msra.mxu0 %v6960_v7  ;;  %v7019_v7 = vld [vmem:[%s7818_s17 + $0x54c] ss:$16 sps:$4 sm:$0xff]   ;;  %v7022_v8 = vld [vmem:[%s7818_s17 + $0x564] ss:$16 sps:$4 sm:$0xff]  }
 0x1e4   : > { %5041 = vmatpush1.bf16.msra.mxu1 %v6963_v3  ;;  %4604 = vmatprep.subr.bf16.mxu0 %v6968_v46  ;;  %v1793_v17 = vrot.slane %v1788_v13, %v8007_v56  ;;  %v7014_v3 = vld [vmem:[%s7818_s17 + $0x540] ss:$16 sps:$4 sm:$0xff]   ;;  %v7017_v46 = vld [vmem:[%s7818_s17 + $0x548] ss:$16 sps:$4 sm:$0xff]  }
 0x1e5   : > { %5042 = vmatprep.subr.bf16.mxu1 %v6971_v10  ;;  %v7020_v10 = vld [vmem:[%s7818_s17 + $0x560] ss:$16 sps:$4 sm:$0xff]  }
 0x1e6   : > { %4570 = vmatmul.mubr.bf16.gmra.mrb[16].mxu0 %v6004_v15  ;;  %5008 = vmatmul.mubr.bf16.gmra.mrb[16].mxu1 %v6004_v15  ;;  %v8184_v24 = vcombine.low %v1786_v57, %v1793_v17  ;;  %v7031_v57 = vld [vmem:[%s7818_s17 + $0x58c] ss:$16 sps:$4 sm:$0xff]   ;;  %v7026_v13 = vld [vmem:[%s7818_s17 + $0x580] ss:$16 sps:$4 sm:$0xff]   ;;  %v7034_v15 = vld [vmem:[%s7818_s17 + $0x5a4] ss:$16 sps:$4 sm:$0xff]  }
 0x1e7   : > { %4579 = vmatprep.mubr.bf16.mxu0 %v6017_v18  ;;  %4605 = vmatpush1.bf16.msra.mxu0 %v6966_v14  ;;  %v7029_v14 = vld [vmem:[%s7818_s17 + $0x588] ss:$16 sps:$4 sm:$0xff]   ;;  %v7032_v17 = vld [vmem:[%s7818_s17 + $0x5a0] ss:$16 sps:$4 sm:$0xff]  }
 0x1e8   : > { %5017 = vmatprep.mubr.bf16.mxu1 %v6017_v18  ;;  %5043 = vmatpush1.bf16.msra.mxu1 %v6969_v16  ;;  %v7037_v16 = vld [vmem:[%s7818_s17 + $0x5ac] ss:$16 sps:$4 sm:$0xff]   ;;  %v7035_v18 = vld [vmem:[%s7818_s17 + $0x5a8] ss:$16 sps:$4 sm:$0xff]  }
 0x1e9   : > { %4606 = vmatprep.subr.bf16.mxu0 %v6974_v20  ;;  %5044 = vmatprep.subr.bf16.mxu1 %v6977_v21  ;;  %v7040_v20 = vld [vmem:[%s7818_s17 + $0x5c4] ss:$16 sps:$4 sm:$0xff]   ;;  %v7043_v21 = vld [vmem:[%s7818_s17 + $0x5cc] ss:$16 sps:$4 sm:$0xff]  }
 0x1eb   : > { %4607 = vmatpush1.bf16.msra.mxu0 %v6972_v25  ;;  %v7046_v25 = vld [vmem:[%s7818_s17 + $0x5e4] ss:$16 sps:$4 sm:$0xff]  }
 0x1ec   : > { %5045 = vmatpush1.bf16.msra.mxu1 %v6975_v26  ;;  %4608 = vmatprep.subr.bf16.mxu0 %v6980_v27  ;;  %v7049_v26 = vld [vmem:[%s7818_s17 + $0x5ec] ss:$16 sps:$4 sm:$0xff]   ;;  %v1664_v27 = vld [vmem:[%s7822_s18 + $0x70] sm:$0xff] }
 0x1ed   : > { %5046 = vmatprep.subr.bf16.mxu1 %v6983_v28  ;;  %v1670_v28 = vld [vmem:[%s7822_s18 + $0xa0] sm:$0xff] }
 0x1ee   : > { %4580 = vmatmul.mubr.bf16.gmra.mrb[20].mxu0 %v6016_v33  ;;  %5018 = vmatmul.mubr.bf16.gmra.mrb[20].mxu1 %v6016_v33  ;;  %v7055_v33 = vld [vmem:[%s7818_s17 + $0x60c] ss:$16 sps:$4 sm:$0xff]   ;;  %v1850_v35 = vmul.bf16 %v8114_v40, %v1670_v28  ;;  %v7100_v28 = vld [vmem:[%s7818_s17 + $0x704] ss:$16 sps:$4 sm:$0xff]  }
 0x1ef   : > { %4589 = vmatprep.mubr.bf16.mxu0 %v6029_v37  ;;  %4609 = vmatpush1.bf16.msra.mxu0 %v6978_v31  ;;  %v7052_v31 = vld [vmem:[%s7818_s17 + $0x604] ss:$16 sps:$4 sm:$0xff]  }
 0x1f0   : > { %5027 = vmatprep.mubr.bf16.mxu1 %v6029_v37  ;;  %5047 = vmatpush1.bf16.msra.mxu1 %v6981_v34  ;;  %v1844_v34 = vmul.bf16 %v8114_v40, %v1664_v27  ;;  %v7050_v37 = vld [vmem:[%s7818_s17 + $0x600] ss:$16 sps:$4 sm:$0xff]   ;;  %v7095_v27 = vld [vmem:[%s7818_s17 + $0x6e8] ss:$16 sps:$4 sm:$0xff]  }
 0x1f1   : > { %4610 = vmatprep.subr.bf16.mxu0 %v6986_v38  ;;  %5048 = vmatprep.subr.bf16.mxu1 %v6989_v39  ;;  %v7053_v38 = vld [vmem:[%s7818_s17 + $0x608] ss:$16 sps:$4 sm:$0xff]  }
 0x1f2   : > { %v6007_v39 = vcombine.high %v1844_v34, %v1850_v35 }
 0x1f3   : > { %4611 = vmatpush1.bf16.msra.mxu0 %v6984_v32  ;;  %v7058_v32 = vld [vmem:[%s7818_s17 + $0x624] ss:$16 sps:$4 sm:$0xff]  }
 0x1f4   : > { %5049 = vmatpush1.bf16.msra.mxu1 %v6987_v42  ;;  %4612 = vmatprep.subr.bf16.mxu0 %v6992_v43  ;;  %v7061_v42 = vld [vmem:[%s7818_s17 + $0x62c] ss:$16 sps:$4 sm:$0xff]   ;;  %v1676_v43 = vld [vmem:[%s7822_s18 + $0xd0] sm:$0xff] }
 0x1f5   : > { %5050 = vmatprep.subr.bf16.mxu1 %v6995_v44  ;;  %v1682_v44 = vld [vmem:[%s7822_s18 + $0x100] sm:$0xff] }
 0x1f6   : > { %4590 = vmatmul.mubr.bf16.gmra.mrb[24].mxu0 %v6028_v49  ;;  %5028 = vmatmul.mubr.bf16.gmra.mrb[24].mxu1 %v6028_v49  ;;  %v1862_v49 = vmul.bf16 %v8114_v40, %v1682_v44  ;;  %v7116_v44 = vld [vmem:[%s7818_s17 + $0x760] ss:$16 sps:$4 sm:$0xff]  }
 0x1f7   : > { %4613 = vmatpush1.bf16.msra.mxu0 %v6990_v47  ;;  %4632 = vmatprep.mubr.bf16.mxu0 %v5995_v48  ;;  %v7064_v47 = vld [vmem:[%s7818_s17 + $0x644] ss:$16 sps:$4 sm:$0xff]  }
 0x1f8   : > { %5051 = vmatpush1.bf16.msra.mxu1 %v6993_v50  ;;  %4614 = vmatprep.subr.bf16.mxu0 %v6998_v52  ;;  %v7067_v50 = vld [vmem:[%s7818_s17 + $0x64c] ss:$16 sps:$4 sm:$0xff]   ;;  %v6006_v52 = vcombine.low %v1844_v34, %v1850_v35  ;;  %v7104_v35 = vld [vmem:[%s7818_s17 + $0x720] ss:$16 sps:$4 sm:$0xff]  }
 0x1f9   : > { %5052 = vmatprep.subr.bf16.mxu1 %v7001_v53  ;;  %5070 = vmatprep.mubr.bf16.mxu1 %v5995_v48  ;;  %v1856_v48 = vmul.bf16 %v8114_v40, %v1676_v43  ;;  %v7062_v53 = vld [vmem:[%s7818_s17 + $0x640] ss:$16 sps:$4 sm:$0xff]   ;;  %v7109_v34 = vld [vmem:[%s7818_s17 + $0x72c] ss:$16 sps:$4 sm:$0xff]  }
 0x1fa   : > { %v7121_v43 = vld [vmem:[%s7818_s17 + $0x76c] ss:$16 sps:$4 sm:$0xff]  }
 0x1fb   : > { %4615 = vmatpush1.bf16.msra.mxu0 %v6996_v54  ;;  %v7065_v54 = vld [vmem:[%s7818_s17 + $0x648] ss:$16 sps:$4 sm:$0xff]  }
 0x1fc   : > { %5053 = vmatpush1.bf16.msra.mxu1 %v6999_v59  ;;  %4616 = vmatprep.subr.bf16.mxu0 %v7004_v60  ;;  %v6019_v59 = vcombine.high %v1856_v48, %v1862_v49  ;;  %v7070_v60 = vld [vmem:[%s7818_s17 + $0x664] ss:$16 sps:$4 sm:$0xff]  }
 0x1fd   : > { %5054 = vmatprep.subr.bf16.mxu1 %v7007_v45  ;;  %v7073_v45 = vld [vmem:[%s7818_s17 + $0x66c] ss:$16 sps:$4 sm:$0xff]  }
 0x1ff   : > { %4617 = vmatpush1.bf16.msra.mxu0 %v7002_v61  ;;  %v1688_v61 = vld [vmem:[%s7822_s18 + $0x130] sm:$0xff] }
 0x200   : > { %5055 = vmatpush1.bf16.msra.mxu1 %v7005_v62  ;;  %4618 = vmatprep.subr.bf16.mxu0 %v7010_v63  ;;  %v1694_v62 = vld [vmem:[%s7822_s18 + $0x160] sm:$0xff] }
 0x201   : > { %5056 = vmatprep.subr.bf16.mxu1 %v7013_v0  ;;  %v7068_v63 = vld [vmem:[%s7818_s17 + $0x660] ss:$16 sps:$4 sm:$0xff]   ;;  %v7071_v0 = vld [vmem:[%s7818_s17 + $0x668] ss:$16 sps:$4 sm:$0xff]  }
 0x203   : > { %4619 = vmatpush1.bf16.msra.mxu0 %v7008_v1  ;;  %v7076_v1 = vld [vmem:[%s7818_s17 + $0x684] ss:$16 sps:$4 sm:$0xff]  }
 0x204   : > { %5057 = vmatpush1.bf16.msra.mxu1 %v7011_v55  ;;  %4620 = vmatprep.subr.bf16.mxu0 %v7016_v4  ;;  %v1868_v55 = vmul.bf16 %v8114_v40, %v1688_v61  ;;  %v1874_v4 = vmul.bf16 %v8114_v40, %v1694_v62  ;;  %v7137_v61 = vld [vmem:[%s7818_s17 + $0x7c8] ss:$16 sps:$4 sm:$0xff]   ;;  %v7142_v62 = vld [vmem:[%s7818_s17 + $0x7e4] ss:$16 sps:$4 sm:$0xff]  }
 0x205   : > { %5058 = vmatprep.subr.bf16.mxu1 %v7019_v7  ;;  %v7079_v7 = vld [vmem:[%s7818_s17 + $0x68c] ss:$16 sps:$4 sm:$0xff]  }
 0x207   : > { %4621 = vmatpush1.bf16.msra.mxu0 %v7014_v3  ;;  %v6018_v3 = vcombine.low %v1856_v48, %v1862_v49  ;;  %v7122_v48 = vld [vmem:[%s7818_s17 + $0x780] ss:$16 sps:$4 sm:$0xff]   ;;  %v7125_v49 = vld [vmem:[%s7818_s17 + $0x788] ss:$16 sps:$4 sm:$0xff]  }
 0x208   : > { %5059 = vmatpush1.bf16.msra.mxu1 %v7017_v46  ;;  %4622 = vmatprep.subr.bf16.mxu0 %v7022_v8  ;;  %v7074_v46 = vld [vmem:[%s7818_s17 + $0x680] ss:$16 sps:$4 sm:$0xff]   ;;  %v1653_v8 = vld [vmem:[%s7822_s18 + $0x18] sm:$0xff] }
 0x209   : > { %5060 = vmatprep.subr.bf16.mxu1 %v7025_v9  ;;  %v1659_v9 = vld [vmem:[%s7822_s18 + $0x48] sm:$0xff]  ;;  %v8287_v40 = vmul.bf16 %v8130_v2, %v1653_v8 }
 0x20b   : > { %4623 = vmatpush1.bf16.msra.mxu0 %v7020_v10  ;;  %v7077_v10 = vld [vmem:[%s7818_s17 + $0x688] ss:$16 sps:$4 sm:$0xff]  }
 0x20c   : > { %5061 = vmatpush1.bf16.msra.mxu1 %v7023_v11  ;;  %4624 = vmatprep.subr.bf16.mxu0 %v7028_v12  ;;  %v6031_v11 = vcombine.high %v1868_v55, %v1874_v4  ;;  %v7082_v12 = vld [vmem:[%s7818_s17 + $0x6a4] ss:$16 sps:$4 sm:$0xff]  }
 0x20d   : > { %5062 = vmatprep.subr.bf16.mxu1 %v7031_v57  ;;  %v7085_v57 = vld [vmem:[%s7818_s17 + $0x6ac] ss:$16 sps:$4 sm:$0xff]  }
 0x20f   : > { %4625 = vmatpush1.bf16.msra.mxu0 %v7026_v13  ;;  %v8290_v13 = vmul.bf16 %v8130_v2, %v1659_v9 }
 0x210   : > { %5063 = vmatpush1.bf16.msra.mxu1 %v7029_v14  ;;  %4626 = vmatprep.subr.bf16.mxu0 %v7034_v15  ;;  %v7080_v14 = vld [vmem:[%s7818_s17 + $0x6a0] ss:$16 sps:$4 sm:$0xff]   ;;  %v7083_v15 = vld [vmem:[%s7818_s17 + $0x6a8] ss:$16 sps:$4 sm:$0xff]  }
 0x211   : > { %5064 = vmatprep.subr.bf16.mxu1 %v7037_v16  ;;  %v7088_v16 = vld [vmem:[%s7818_s17 + $0x6c4] ss:$16 sps:$4 sm:$0xff]   ;;  %v5996_v9 = vcombine.low %v8287_v40, %v8290_v13 }
 0x213   : > { %4627 = vmatpush1.bf16.msra.mxu0 %v7032_v17  ;;  %v7091_v17 = vld [vmem:[%s7818_s17 + $0x6cc] ss:$16 sps:$4 sm:$0xff]  }
 0x214   : > { %5065 = vmatpush1.bf16.msra.mxu1 %v7035_v18  ;;  %4628 = vmatprep.subr.bf16.mxu0 %v7040_v20  ;;  %v5997_v18 = vcombine.high %v8287_v40, %v8290_v13  ;;  %v6030_v20 = vcombine.low %v1868_v55, %v1874_v4  ;;  %v7140_v55 = vld [vmem:[%s7818_s17 + $0x7e0] ss:$16 sps:$4 sm:$0xff]   ;;  %v7143_v4 = vld [vmem:[%s7818_s17 + $0x7e8] ss:$16 sps:$4 sm:$0xff]  }
 0x215   : > { %5066 = vmatprep.subr.bf16.mxu1 %v7043_v21  ;;  %v7086_v21 = vld [vmem:[%s7818_s17 + $0x6c0] ss:$16 sps:$4 sm:$0xff]   ;;  %v7155_v13 = vld [vmem:[%s7818_s17 + $0x828] ss:$16 sps:$4 sm:$0xff]  }
 0x216   : > { %v7152_v40 = vld [vmem:[%s7818_s17 + $0x820] ss:$16 sps:$4 sm:$0xff]  }
 0x217   : > { %4629 = vmatpush1.bf16.msra.mxu0 %v7038_v22  ;;  %v7089_v22 = vld [vmem:[%s7818_s17 + $0x6c8] ss:$16 sps:$4 sm:$0xff]  }
 0x218   : > { %5067 = vmatpush1.bf16.msra.mxu1 %v7041_v23  ;;  %4630 = vmatprep.subr.bf16.mxu0 %v7046_v25  ;;  %v7094_v23 = vld [vmem:[%s7818_s17 + $0x6e4] ss:$16 sps:$4 sm:$0xff]   ;;  %v7097_v25 = vld [vmem:[%s7818_s17 + $0x6ec] ss:$16 sps:$4 sm:$0xff]  }
 0x219   : > { %5068 = vmatprep.subr.bf16.mxu1 %v7049_v26  ;;  %v7092_v26 = vld [vmem:[%s7818_s17 + $0x6e0] ss:$16 sps:$4 sm:$0xff]  }
 0x21b   : > { %4631 = vmatpush1.bf16.msra.mxu0 %v7044_v29  ;;  %v7103_v29 = vld [vmem:[%s7818_s17 + $0x70c] ss:$16 sps:$4 sm:$0xff]  }
 0x21c   : > { %5069 = vmatpush1.bf16.msra.mxu1 %v7047_v30  ;;  %4673 = vmatprep.subr.bf16.mxu0 %v7052_v31  ;;  %v7098_v30 = vld [vmem:[%s7818_s17 + $0x700] ss:$16 sps:$4 sm:$0xff]   ;;  %v7101_v31 = vld [vmem:[%s7818_s17 + $0x708] ss:$16 sps:$4 sm:$0xff]  }
 0x21d   : > { %5111 = vmatprep.subr.bf16.mxu1 %v7055_v33  ;;  %v7106_v33 = vld [vmem:[%s7818_s17 + $0x724] ss:$16 sps:$4 sm:$0xff]  }
 0x21e   : > { %4633 = vmatmul.mubr.bf16.vlgmr.msra.gmra.mrb[12].mxu0 %v5994_v36 }
 0x21f   : > { %5071 = vmatmul.mubr.bf16.vlgmr.msra.gmra.mrb[12].mxu1 %v5994_v36  ;;  %4642 = vmatprep.mubr.bf16.mxu0 %v6007_v39  ;;  %v7107_v36 = vld [vmem:[%s7818_s17 + $0x728] ss:$16 sps:$4 sm:$0xff]  }
 0x220   : > { %4674 = vmatpush1.bf16.msra.mxu0 %v7050_v37  ;;  %5080 = vmatprep.mubr.bf16.mxu1 %v6007_v39  ;;  %v7112_v37 = vld [vmem:[%s7818_s17 + $0x744] ss:$16 sps:$4 sm:$0xff]   ;;  %v7110_v39 = vld [vmem:[%s7818_s17 + $0x740] ss:$16 sps:$4 sm:$0xff]  }
 0x221   : > { %5112 = vmatpush1.bf16.msra.mxu1 %v7053_v38  ;;  %4675 = vmatprep.subr.bf16.mxu0 %v7058_v32  ;;  %v7115_v38 = vld [vmem:[%s7818_s17 + $0x74c] ss:$16 sps:$4 sm:$0xff]   ;;  %v7113_v32 = vld [vmem:[%s7818_s17 + $0x748] ss:$16 sps:$4 sm:$0xff]  }
 0x222   : > { %5113 = vmatprep.subr.bf16.mxu1 %v7061_v42  ;;  %v7118_v42 = vld [vmem:[%s7818_s17 + $0x764] ss:$16 sps:$4 sm:$0xff]  }
 0x224   : > { %4676 = vmatpush1.bf16.msra.mxu0 %v7056_v19  ;;  %v7119_v19 = vld [vmem:[%s7818_s17 + $0x768] ss:$16 sps:$4 sm:$0xff]  }
 0x225   : > { %5114 = vmatpush1.bf16.msra.mxu1 %v7059_v41  ;;  %4677 = vmatprep.subr.bf16.mxu0 %v7064_v47  ;;  %v7124_v41 = vld [vmem:[%s7818_s17 + $0x784] ss:$16 sps:$4 sm:$0xff]   ;;  %v7127_v47 = vld [vmem:[%s7818_s17 + $0x78c] ss:$16 sps:$4 sm:$0xff]  }
 0x226   : > { %4643 = vmatmul.mubr.bf16.gmra.mrb[16].mxu0 %v6006_v52  ;;  %5115 = vmatprep.subr.bf16.mxu1 %v7067_v50  ;;  %v7130_v50 = vld [vmem:[%s7818_s17 + $0x7a4] ss:$16 sps:$4 sm:$0xff]  }
 0x227   : > { %5081 = vmatmul.mubr.bf16.gmra.mrb[16].mxu1 %v6006_v52  ;;  %4652 = vmatprep.mubr.bf16.mxu0 %v6019_v59  ;;  %v7133_v52 = vld [vmem:[%s7818_s17 + $0x7ac] ss:$16 sps:$4 sm:$0xff]  }
 0x228   : > { %4678 = vmatpush1.bf16.msra.mxu0 %v7062_v53  ;;  %5090 = vmatprep.mubr.bf16.mxu1 %v6019_v59  ;;  %v7128_v53 = vld [vmem:[%s7818_s17 + $0x7a0] ss:$16 sps:$4 sm:$0xff]   ;;  %v7136_v59 = vld [vmem:[%s7818_s17 + $0x7c4] ss:$16 sps:$4 sm:$0xff]  }
 0x229   : > { %5116 = vmatpush1.bf16.msra.mxu1 %v7065_v54  ;;  %4679 = vmatprep.subr.bf16.mxu0 %v7070_v60  ;;  %v7131_v54 = vld [vmem:[%s7818_s17 + $0x7a8] ss:$16 sps:$4 sm:$0xff]   ;;  %v7139_v60 = vld [vmem:[%s7818_s17 + $0x7cc] ss:$16 sps:$4 sm:$0xff]  }
 0x22a   : > { %5117 = vmatprep.subr.bf16.mxu1 %v7073_v45  ;;  %v7134_v45 = vld [vmem:[%s7818_s17 + $0x7c0] ss:$16 sps:$4 sm:$0xff]  }
 0x22c   : > { %4680 = vmatpush1.bf16.msra.mxu0 %v7068_v63  ;;  %v7145_v63 = vld [vmem:[%s7818_s17 + $0x7ec] ss:$16 sps:$4 sm:$0xff]  }
 0x22d   : > { %5118 = vmatpush1.bf16.msra.mxu1 %v7071_v0  ;;  %4681 = vmatprep.subr.bf16.mxu0 %v7076_v1  ;;  %v1665_v0 = vld [vmem:[%s7822_s18 + $0x78] sm:$0xff]  ;;  %v1671_v1 = vld [vmem:[%s7822_s18 + $0xa8] sm:$0xff] }
 0x22e   : > { %4653 = vmatmul.mubr.bf16.gmra.mrb[20].mxu0 %v6018_v3  ;;  %5119 = vmatprep.subr.bf16.mxu1 %v7079_v7  ;;  %v7148_v7 = vld [vmem:[%s7818_s17 + $0x804] ss:$16 sps:$4 sm:$0xff]   ;;  %v1851_v8 = vmul.bf16 %v8130_v2, %v1671_v1  ;;  %v7199_v1 = vld [vmem:[%s7818_s17 + $0x90c] ss:$16 sps:$4 sm:$0xff]  }
 0x22f   : > { %5091 = vmatmul.mubr.bf16.gmra.mrb[20].mxu1 %v6018_v3  ;;  %4662 = vmatprep.mubr.bf16.mxu0 %v6031_v11  ;;  %v7151_v3 = vld [vmem:[%s7818_s17 + $0x80c] ss:$16 sps:$4 sm:$0xff]  }
 0x230   : > { %4682 = vmatpush1.bf16.msra.mxu0 %v7074_v46  ;;  %5100 = vmatprep.mubr.bf16.mxu1 %v6031_v11  ;;  %v1845_v46 = vmul.bf16 %v8130_v2, %v1665_v0  ;;  %v7149_v11 = vld [vmem:[%s7818_s17 + $0x808] ss:$16 sps:$4 sm:$0xff]   ;;  %v7196_v0 = vld [vmem:[%s7818_s17 + $0x904] ss:$16 sps:$4 sm:$0xff]  }
 0x231   : > { %5120 = vmatpush1.bf16.msra.mxu1 %v7077_v10  ;;  %4683 = vmatprep.subr.bf16.mxu0 %v7082_v12  ;;  %v7146_v10 = vld [vmem:[%s7818_s17 + $0x800] ss:$16 sps:$4 sm:$0xff]  }
 0x232   : > { %5121 = vmatprep.subr.bf16.mxu1 %v7085_v57  ;;  %v6009_v12 = vcombine.high %v1845_v46, %v1851_v8  ;;  %v7154_v57 = vld [vmem:[%s7818_s17 + $0x824] ss:$16 sps:$4 sm:$0xff]  }
 0x234   : > { %4684 = vmatpush1.bf16.msra.mxu0 %v7080_v14  ;;  %v7157_v14 = vld [vmem:[%s7818_s17 + $0x82c] ss:$16 sps:$4 sm:$0xff]  }
 0x235   : > { %5122 = vmatpush1.bf16.msra.mxu1 %v7083_v15  ;;  %4685 = vmatprep.subr.bf16.mxu0 %v7088_v16  ;;  %v1677_v15 = vld [vmem:[%s7822_s18 + $0xd8] sm:$0xff]  ;;  %v1683_v16 = vld [vmem:[%s7822_s18 + $0x108] sm:$0xff] }
 0x236   : > { %4663 = vmatmul.mubr.bf16.gmra.mrb[24].mxu0 %v6030_v20  ;;  %5123 = vmatprep.subr.bf16.mxu1 %v7091_v17  ;;  %v7160_v17 = vld [vmem:[%s7818_s17 + $0x844] ss:$16 sps:$4 sm:$0xff]  }
 0x237   : > { %5101 = vmatmul.mubr.bf16.gmra.mrb[24].mxu1 %v6030_v20  ;;  %4705 = vmatprep.mubr.bf16.mxu0 %v5997_v18  ;;  %v1863_v20 = vmul.bf16 %v8130_v2, %v1683_v16  ;;  %v7215_v16 = vld [vmem:[%s7818_s17 + $0x968] ss:$16 sps:$4 sm:$0xff]  }
 0x238   : > { %4686 = vmatpush1.bf16.msra.mxu0 %v7086_v21  ;;  %5143 = vmatprep.mubr.bf16.mxu1 %v5997_v18  ;;  %v1857_v18 = vmul.bf16 %v8130_v2, %v1677_v15  ;;  %v7163_v21 = vld [vmem:[%s7818_s17 + $0x84c] ss:$16 sps:$4 sm:$0xff]   ;;  %v7212_v15 = vld [vmem:[%s7818_s17 + $0x960] ss:$16 sps:$4 sm:$0xff]  }
 0x239   : > { %5124 = vmatpush1.bf16.msra.mxu1 %v7089_v22  ;;  %4687 = vmatprep.subr.bf16.mxu0 %v7094_v23  ;;  %v6008_v22 = vcombine.low %v1845_v46, %v1851_v8  ;;  %v7158_v23 = vld [vmem:[%s7818_s17 + $0x840] ss:$16 sps:$4 sm:$0xff]   ;;  %v7203_v8 = vld [vmem:[%s7818_s17 + $0x928] ss:$16 sps:$4 sm:$0xff]  }
 0x23a   : > { %5125 = vmatprep.subr.bf16.mxu1 %v7097_v25  ;;  %v7161_v25 = vld [vmem:[%s7818_s17 + $0x848] ss:$16 sps:$4 sm:$0xff]   ;;  %v7200_v46 = vld [vmem:[%s7818_s17 + $0x920] ss:$16 sps:$4 sm:$0xff]  }
 0x23c   : > { %4688 = vmatpush1.bf16.msra.mxu0 %v7092_v26  ;;  %v6021_v26 = vcombine.high %v1857_v18, %v1863_v20 }
 0x23d   : > { %5126 = vmatpush1.bf16.msra.mxu1 %v7095_v27  ;;  %4689 = vmatprep.subr.bf16.mxu0 %v7100_v28  ;;  %v7166_v27 = vld [vmem:[%s7818_s17 + $0x864] ss:$16 sps:$4 sm:$0xff]   ;;  %v7169_v28 = vld [vmem:[%s7818_s17 + $0x86c] ss:$16 sps:$4 sm:$0xff]  }
 0x23e   : > { %5127 = vmatprep.subr.bf16.mxu1 %v7103_v29  ;;  %v1689_v29 = vld [vmem:[%s7822_s18 + $0x138] sm:$0xff] }
 0x240   : > { %4690 = vmatpush1.bf16.msra.mxu0 %v7098_v30  ;;  %v1695_v30 = vld [vmem:[%s7822_s18 + $0x168] sm:$0xff] }
 0x241   : > { %5128 = vmatpush1.bf16.msra.mxu1 %v7101_v31  ;;  %4691 = vmatprep.subr.bf16.mxu0 %v7106_v33  ;;  %v7164_v31 = vld [vmem:[%s7818_s17 + $0x860] ss:$16 sps:$4 sm:$0xff]   ;;  %v7167_v33 = vld [vmem:[%s7818_s17 + $0x868] ss:$16 sps:$4 sm:$0xff]  }
 0x242   : > { %5129 = vmatprep.subr.bf16.mxu1 %v7109_v34  ;;  %v7172_v34 = vld [vmem:[%s7818_s17 + $0x884] ss:$16 sps:$4 sm:$0xff]  }
 0x244   : > { %4692 = vmatpush1.bf16.msra.mxu0 %v7104_v35  ;;  %v1869_v35 = vmul.bf16 %v8130_v2, %v1689_v29  ;;  %v7238_v29 = vld [vmem:[%s7818_s17 + $0x9e4] ss:$16 sps:$4 sm:$0xff]  }
 0x245   : > { %5130 = vmatpush1.bf16.msra.mxu1 %v7107_v36  ;;  %4693 = vmatprep.subr.bf16.mxu0 %v7112_v37  ;;  %v1875_v36 = vmul.bf16 %v8130_v2, %v1695_v30  ;;  %v7175_v37 = vld [vmem:[%s7818_s17 + $0x88c] ss:$16 sps:$4 sm:$0xff]   ;;  %v7176_v2 = vld [vmem:[%s7818_s17 + $0x8a0] ss:$16 sps:$4 sm:$0xff]  }
 0x246   : > { %5131 = vmatprep.subr.bf16.mxu1 %v7115_v38  ;;  %v6020_v38 = vcombine.low %v1857_v18, %v1863_v20  ;;  %v7221_v18 = vld [vmem:[%s7818_s17 + $0x988] ss:$16 sps:$4 sm:$0xff]   ;;  %v7226_v20 = vld [vmem:[%s7818_s17 + $0x9a4] ss:$16 sps:$4 sm:$0xff]   ;;  %v7241_v30 = vld [vmem:[%s7818_s17 + $0x9ec] ss:$16 sps:$4 sm:$0xff]  }
 0x248   : > { %4694 = vmatpush1.bf16.msra.mxu0 %v7110_v39  ;;  %v7170_v39 = vld [vmem:[%s7818_s17 + $0x880] ss:$16 sps:$4 sm:$0xff]  }
 0x249   : > { %5132 = vmatpush1.bf16.msra.mxu1 %v7113_v32  ;;  %4695 = vmatprep.subr.bf16.mxu0 %v7118_v42  ;;  %v7173_v32 = vld [vmem:[%s7818_s17 + $0x888] ss:$16 sps:$4 sm:$0xff]   ;;  %v6033_v42 = vcombine.high %v1869_v35, %v1875_v36 }
 0x24a   : > { %5133 = vmatprep.subr.bf16.mxu1 %v7121_v43  ;;  %v7178_v43 = vld [vmem:[%s7818_s17 + $0x8a4] ss:$16 sps:$4 sm:$0xff]  }
 0x24c   : > { %4696 = vmatpush1.bf16.msra.mxu0 %v7116_v44  ;;  %v7181_v44 = vld [vmem:[%s7818_s17 + $0x8ac] ss:$16 sps:$4 sm:$0xff]  }
 0x24d   : > { %5134 = vmatpush1.bf16.msra.mxu1 %v7119_v19  ;;  %4697 = vmatprep.subr.bf16.mxu0 %v7124_v41  ;;  %v1654_v19 = vld [vmem:[%s7822_s18 + $0x20] sm:$0xff]  ;;  %v1660_v41 = vld [vmem:[%s7822_s18 + $0x50] sm:$0xff] }
 0x24e   : > { %5135 = vmatprep.subr.bf16.mxu1 %v7127_v47  ;;  %v7179_v47 = vld [vmem:[%s7818_s17 + $0x8a8] ss:$16 sps:$4 sm:$0xff]  }
 0x250   : > { %4698 = vmatpush1.bf16.msra.mxu0 %v7122_v48  ;;  %v7184_v48 = vld [vmem:[%s7818_s17 + $0x8c4] ss:$16 sps:$4 sm:$0xff]  }
 0x251   : > { %5136 = vmatpush1.bf16.msra.mxu1 %v7125_v49  ;;  %4699 = vmatprep.subr.bf16.mxu0 %v7130_v50  ;;  %v8378_v49 = vmul.bf16 %v8158_v51, %v1654_v19  ;;  %v8381_v50 = vmul.bf16 %v8158_v51, %v1660_v41  ;;  %v7250_v19 = vld [vmem:[%s7818_s17 + $0xa24] ss:$16 sps:$4 sm:$0xff]   ;;  %v7253_v41 = vld [vmem:[%s7818_s17 + $0xa2c] ss:$16 sps:$4 sm:$0xff]  }
 0x252   : > { %5137 = vmatprep.subr.bf16.mxu1 %v7133_v52  ;;  %v7187_v52 = vld [vmem:[%s7818_s17 + $0x8cc] ss:$16 sps:$4 sm:$0xff]  }
 0x254   : > { %4700 = vmatpush1.bf16.msra.mxu0 %v7128_v53  ;;  %v6032_v53 = vcombine.low %v1869_v35, %v1875_v36  ;;  %v7239_v35 = vld [vmem:[%s7818_s17 + $0x9e8] ss:$16 sps:$4 sm:$0xff]   ;;  %v7244_v36 = vld [vmem:[%s7818_s17 + $0xa04] ss:$16 sps:$4 sm:$0xff]  }
 0x255   : > { %5138 = vmatpush1.bf16.msra.mxu1 %v7131_v54  ;;  %4701 = vmatprep.subr.bf16.mxu0 %v7136_v59  ;;  %v7182_v54 = vld [vmem:[%s7818_s17 + $0x8c0] ss:$16 sps:$4 sm:$0xff]   ;;  %v7185_v59 = vld [vmem:[%s7818_s17 + $0x8c8] ss:$16 sps:$4 sm:$0xff]  }
 0x256   : > { %5139 = vmatprep.subr.bf16.mxu1 %v7139_v60  ;;  %v5999_v60 = vcombine.high %v8378_v49, %v8381_v50 }
 0x258   : > { %4702 = vmatpush1.bf16.msra.mxu0 %v7134_v45  ;;  %v7190_v45 = vld [vmem:[%s7818_s17 + $0x8e4] ss:$16 sps:$4 sm:$0xff]  }
 0x259   : > { %5140 = vmatpush1.bf16.msra.mxu1 %v7137_v61  ;;  %4703 = vmatprep.subr.bf16.mxu0 %v7142_v62  ;;  %v7193_v61 = vld [vmem:[%s7818_s17 + $0x8ec] ss:$16 sps:$4 sm:$0xff]   ;;  %v7188_v62 = vld [vmem:[%s7818_s17 + $0x8e0] ss:$16 sps:$4 sm:$0xff]  }
 0x25a   : > { %5141 = vmatprep.subr.bf16.mxu1 %v7145_v63  ;;  %v7191_v63 = vld [vmem:[%s7818_s17 + $0x8e8] ss:$16 sps:$4 sm:$0xff]  }
 0x25c   : > { %4704 = vmatpush1.bf16.msra.mxu0 %v7140_v55  ;;  %v7194_v55 = vld [vmem:[%s7818_s17 + $0x900] ss:$16 sps:$4 sm:$0xff]  }
 0x25d   : > { %5142 = vmatpush1.bf16.msra.mxu1 %v7143_v4  ;;  %4746 = vmatprep.subr.bf16.mxu0 %v7148_v7  ;;  %v7197_v4 = vld [vmem:[%s7818_s17 + $0x908] ss:$16 sps:$4 sm:$0xff]   ;;  %v7202_v7 = vld [vmem:[%s7818_s17 + $0x924] ss:$16 sps:$4 sm:$0xff]  }
 0x25e   : > { %5184 = vmatprep.subr.bf16.mxu1 %v7151_v3  ;;  %v7205_v3 = vld [vmem:[%s7818_s17 + $0x92c] ss:$16 sps:$4 sm:$0xff]  }
 0x25f   : > { %4706 = vmatmul.mubr.bf16.vlgmr.msra.gmra.mrb[12].mxu0 %v5996_v9 }
 0x260   : > { %5144 = vmatmul.mubr.bf16.vlgmr.msra.gmra.mrb[12].mxu1 %v5996_v9  ;;  %4715 = vmatprep.mubr.bf16.mxu0 %v6009_v12  ;;  %v7208_v9 = vld [vmem:[%s7818_s17 + $0x944] ss:$16 sps:$4 sm:$0xff]  }
 0x261   : > { %4747 = vmatpush1.bf16.msra.mxu0 %v7146_v10  ;;  %5153 = vmatprep.mubr.bf16.mxu1 %v6009_v12  ;;  %v7211_v10 = vld [vmem:[%s7818_s17 + $0x94c] ss:$16 sps:$4 sm:$0xff]   ;;  %v7209_v12 = vld [vmem:[%s7818_s17 + $0x948] ss:$16 sps:$4 sm:$0xff]  }
 0x262   : > { %5185 = vmatpush1.bf16.msra.mxu1 %v7149_v11  ;;  %4748 = vmatprep.subr.bf16.mxu0 %v7154_v57  ;;  %v7206_v11 = vld [vmem:[%s7818_s17 + $0x940] ss:$16 sps:$4 sm:$0xff]   ;;  %v7214_v57 = vld [vmem:[%s7818_s17 + $0x964] ss:$16 sps:$4 sm:$0xff]  }
 0x263   : > { %5186 = vmatprep.subr.bf16.mxu1 %v7157_v14  ;;  %v7217_v14 = vld [vmem:[%s7818_s17 + $0x96c] ss:$16 sps:$4 sm:$0xff]  }
 0x265   : > { %4749 = vmatpush1.bf16.msra.mxu0 %v7152_v40  ;;  %v7220_v40 = vld [vmem:[%s7818_s17 + $0x984] ss:$16 sps:$4 sm:$0xff]  }
 0x266   : > { %5187 = vmatpush1.bf16.msra.mxu1 %v7155_v13  ;;  %4750 = vmatprep.subr.bf16.mxu0 %v7160_v17  ;;  %v7223_v13 = vld [vmem:[%s7818_s17 + $0x98c] ss:$16 sps:$4 sm:$0xff]   ;;  %v7218_v17 = vld [vmem:[%s7818_s17 + $0x980] ss:$16 sps:$4 sm:$0xff]  }
 0x267   : > { %4716 = vmatmul.mubr.bf16.gmra.mrb[16].mxu0 %v6008_v22  ;;  %5188 = vmatprep.subr.bf16.mxu1 %v7163_v21  ;;  %v7229_v21 = vld [vmem:[%s7818_s17 + $0x9ac] ss:$16 sps:$4 sm:$0xff]  }
 0x268   : > { %5154 = vmatmul.mubr.bf16.gmra.mrb[16].mxu1 %v6008_v22  ;;  %4725 = vmatprep.mubr.bf16.mxu0 %v6021_v26  ;;  %v7224_v22 = vld [vmem:[%s7818_s17 + $0x9a0] ss:$16 sps:$4 sm:$0xff]  }
 0x269   : > { %4751 = vmatpush1.bf16.msra.mxu0 %v7158_v23  ;;  %5163 = vmatprep.mubr.bf16.mxu1 %v6021_v26  ;;  %v7227_v23 = vld [vmem:[%s7818_s17 + $0x9a8] ss:$16 sps:$4 sm:$0xff]   ;;  %v7235_v26 = vld [vmem:[%s7818_s17 + $0x9cc] ss:$16 sps:$4 sm:$0xff]  }
 0x26a   : > { %5189 = vmatpush1.bf16.msra.mxu1 %v7161_v25  ;;  %4752 = vmatprep.subr.bf16.mxu0 %v7166_v27  ;;  %v7232_v25 = vld [vmem:[%s7818_s17 + $0x9c4] ss:$16 sps:$4 sm:$0xff]   ;;  %v7230_v27 = vld [vmem:[%s7818_s17 + $0x9c0] ss:$16 sps:$4 sm:$0xff]  }
 0x26b   : > { %5190 = vmatprep.subr.bf16.mxu1 %v7169_v28  ;;  %v7233_v28 = vld [vmem:[%s7818_s17 + $0x9c8] ss:$16 sps:$4 sm:$0xff]  }
 0x26d   : > { %4753 = vmatpush1.bf16.msra.mxu0 %v7164_v31  ;;  %v1666_v31 = vld [vmem:[%s7822_s18 + $0x80] sm:$0xff] }
 0x26e   : > { %5191 = vmatpush1.bf16.msra.mxu1 %v7167_v33  ;;  %4754 = vmatprep.subr.bf16.mxu0 %v7172_v34  ;;  %v1672_v33 = vld [vmem:[%s7822_s18 + $0xb0] sm:$0xff] }
 0x26f   : > { %4726 = vmatmul.mubr.bf16.gmra.mrb[20].mxu0 %v6020_v38  ;;  %5192 = vmatprep.subr.bf16.mxu1 %v7175_v37  ;;  %v7236_v34 = vld [vmem:[%s7818_s17 + $0x9e0] ss:$16 sps:$4 sm:$0xff]   ;;  %v7247_v37 = vld [vmem:[%s7818_s17 + $0xa0c] ss:$16 sps:$4 sm:$0xff]  }
 0x270   : > { %5164 = vmatmul.mubr.bf16.gmra.mrb[20].mxu1 %v6020_v38  ;;  %4735 = vmatprep.mubr.bf16.mxu0 %v6033_v42  ;;  %v1846_v38 = vmul.bf16 %v8158_v51, %v1666_v31  ;;  %v7295_v31 = vld [vmem:[%s7818_s17 + $0xb0c] ss:$16 sps:$4 sm:$0xff]  }
 0x271   : > { %4755 = vmatpush1.bf16.msra.mxu0 %v7170_v39  ;;  %5173 = vmatprep.mubr.bf16.mxu1 %v6033_v42  ;;  %v1852_v39 = vmul.bf16 %v8158_v51, %v1672_v33  ;;  %v7242_v42 = vld [vmem:[%s7818_s17 + $0xa00] ss:$16 sps:$4 sm:$0xff]  }
 0x272   : > { %5193 = vmatpush1.bf16.msra.mxu1 %v7173_v32  ;;  %4756 = vmatprep.subr.bf16.mxu0 %v7178_v43  ;;  %v5998_v32 = vcombine.low %v8378_v49, %v8381_v50  ;;  %v7245_v43 = vld [vmem:[%s7818_s17 + $0xa08] ss:$16 sps:$4 sm:$0xff]   ;;  %v7256_v50 = vld [vmem:[%s7818_s17 + $0xa44] ss:$16 sps:$4 sm:$0xff]   ;;  %v7290_v33 = vld [vmem:[%s7818_s17 + $0xb00] ss:$16 sps:$4 sm:$0xff]  }
 0x273   : > { %5194 = vmatprep.subr.bf16.mxu1 %v7181_v44  ;;  %v6011_v44 = vcombine.high %v1846_v38, %v1852_v39  ;;  %v7251_v49 = vld [vmem:[%s7818_s17 + $0xa28] ss:$16 sps:$4 sm:$0xff]  }
 0x275   : > { %4757 = vmatpush1.bf16.msra.mxu0 %v7176_v2  ;;  %v1678_v2 = vld [vmem:[%s7822_s18 + $0xe0] sm:$0xff] }
 0x276   : > { %5195 = vmatpush1.bf16.msra.mxu1 %v7179_v47  ;;  %4758 = vmatprep.subr.bf16.mxu0 %v7184_v48  ;;  %v1684_v47 = vld [vmem:[%s7822_s18 + $0x110] sm:$0xff] }
 0x277   : > { %4736 = vmatmul.mubr.bf16.gmra.mrb[24].mxu0 %v6032_v53  ;;  %5196 = vmatprep.subr.bf16.mxu1 %v7187_v52  ;;  %v7248_v48 = vld [vmem:[%s7818_s17 + $0xa20] ss:$16 sps:$4 sm:$0xff]   ;;  %v1858_v52 = vmul.bf16 %v8158_v51, %v1678_v2  ;;  %v7311_v2 = vld [vmem:[%s7818_s17 + $0xb68] ss:$16 sps:$4 sm:$0xff]  }
 0x278   : > { %5174 = vmatmul.mubr.bf16.gmra.mrb[24].mxu1 %v6032_v53  ;;  %4778 = vmatprep.mubr.bf16.mxu0 %v5999_v60  ;;  %v1864_v53 = vmul.bf16 %v8158_v51, %v1684_v47  ;;  %v7316_v47 = vld [vmem:[%s7818_s17 + $0xb84] ss:$16 sps:$4 sm:$0xff]  }
 0x279   : > { %4759 = vmatpush1.bf16.msra.mxu0 %v7182_v54  ;;  %5216 = vmatprep.mubr.bf16.mxu1 %v5999_v60  ;;  %v7259_v54 = vld [vmem:[%s7818_s17 + $0xa4c] ss:$16 sps:$4 sm:$0xff]   ;;  %v7254_v60 = vld [vmem:[%s7818_s17 + $0xa40] ss:$16 sps:$4 sm:$0xff]  }
 0x27a   : > { %5197 = vmatpush1.bf16.msra.mxu1 %v7185_v59  ;;  %4760 = vmatprep.subr.bf16.mxu0 %v7190_v45  ;;  %v6010_v59 = vcombine.low %v1846_v38, %v1852_v39  ;;  %v7257_v45 = vld [vmem:[%s7818_s17 + $0xa48] ss:$16 sps:$4 sm:$0xff]   ;;  %v7304_v39 = vld [vmem:[%s7818_s17 + $0xb44] ss:$16 sps:$4 sm:$0xff]  }
 0x27b   : > { %5198 = vmatprep.subr.bf16.mxu1 %v7193_v61  ;;  %v6023_v61 = vcombine.high %v1858_v52, %v1864_v53  ;;  %v7299_v38 = vld [vmem:[%s7818_s17 + $0xb28] ss:$16 sps:$4 sm:$0xff]  }
 0x27d   : > { %4761 = vmatpush1.bf16.msra.mxu0 %v7188_v62  ;;  %v7262_v62 = vld [vmem:[%s7818_s17 + $0xa64] ss:$16 sps:$4 sm:$0xff]  }
 0x27e   : > { %5199 = vmatpush1.bf16.msra.mxu1 %v7191_v63  ;;  %4762 = vmatprep.subr.bf16.mxu0 %v7196_v0  ;;  %v7265_v63 = vld [vmem:[%s7818_s17 + $0xa6c] ss:$16 sps:$4 sm:$0xff]   ;;  %v1690_v0 = vld [vmem:[%s7822_s18 + $0x140] sm:$0xff] }
 0x27f   : > { %5200 = vmatprep.subr.bf16.mxu1 %v7199_v1  ;;  %v1696_v1 = vld [vmem:[%s7822_s18 + $0x170] sm:$0xff] }
 0x281   : > { %4763 = vmatpush1.bf16.msra.mxu0 %v7194_v55  ;;  %v7260_v55 = vld [vmem:[%s7818_s17 + $0xa60] ss:$16 sps:$4 sm:$0xff]  }
 0x282   : > { %5201 = vmatpush1.bf16.msra.mxu1 %v7197_v4  ;;  %4764 = vmatprep.subr.bf16.mxu0 %v7202_v7  ;;  %v7263_v4 = vld [vmem:[%s7818_s17 + $0xa68] ss:$16 sps:$4 sm:$0xff]   ;;  %v7268_v7 = vld [vmem:[%s7818_s17 + $0xa84] ss:$16 sps:$4 sm:$0xff]  }
 0x283   : > { %5202 = vmatprep.subr.bf16.mxu1 %v7205_v3  ;;  %v1870_v3 = vmul.bf16 %v8158_v51, %v1690_v0  ;;  %v7337_v0 = vld [vmem:[%s7818_s17 + $0xbec] ss:$16 sps:$4 sm:$0xff]  }
 0x285   : > { %4765 = vmatpush1.bf16.msra.mxu0 %v7200_v46  ;;  %v1876_v46 = vmul.bf16 %v8158_v51, %v1696_v1  ;;  %v7272_v51 = vld [vmem:[%s7818_s17 + $0xaa0] ss:$16 sps:$4 sm:$0xff]   ;;  %v1667_v1 = vld [vmem:[%s7822_s18 + $0x88] sm:$0xff] }
 0x286   : > { %5203 = vmatpush1.bf16.msra.mxu1 %v7203_v8  ;;  %4766 = vmatprep.subr.bf16.mxu0 %v7208_v9  ;;  %v7271_v8 = vld [vmem:[%s7818_s17 + $0xa8c] ss:$16 sps:$4 sm:$0xff]   ;;  %v6022_v9 = vcombine.low %v1858_v52, %v1864_v53  ;;  %v7322_v52 = vld [vmem:[%s7818_s17 + $0xba4] ss:$16 sps:$4 sm:$0xff]  }
 0x287   : > { %5204 = vmatprep.subr.bf16.mxu1 %v7211_v10  ;;  %v7266_v10 = vld [vmem:[%s7818_s17 + $0xa80] ss:$16 sps:$4 sm:$0xff]   ;;  %v7325_v53 = vld [vmem:[%s7818_s17 + $0xbac] ss:$16 sps:$4 sm:$0xff]  }
 0x289   : > { %4767 = vmatpush1.bf16.msra.mxu0 %v7206_v11  ;;  %v7269_v11 = vld [vmem:[%s7818_s17 + $0xa88] ss:$16 sps:$4 sm:$0xff]  }
 0x28a   : > { %5205 = vmatpush1.bf16.msra.mxu1 %v7209_v12  ;;  %4768 = vmatprep.subr.bf16.mxu0 %v7214_v57  ;;  %v6035_v12 = vcombine.high %v1870_v3, %v1876_v46  ;;  %v7274_v57 = vld [vmem:[%s7818_s17 + $0xaa4] ss:$16 sps:$4 sm:$0xff]  }
 0x28b   : > { %5206 = vmatprep.subr.bf16.mxu1 %v7217_v14  ;;  %v7277_v14 = vld [vmem:[%s7818_s17 + $0xaac] ss:$16 sps:$4 sm:$0xff]  }
 0x28d   : > { %4769 = vmatpush1.bf16.msra.mxu0 %v7212_v15  ;;  %v1655_v15 = vld [vmem:[%s7822_s18 + $0x28] sm:$0xff] }
 0x28e   : > { %5207 = vmatpush1.bf16.msra.mxu1 %v7215_v16  ;;  %4770 = vmatprep.subr.bf16.mxu0 %v7220_v40  ;;  %v1661_v16 = vld [vmem:[%s7822_s18 + $0x58] sm:$0xff] }
 0x28f   : > { %5208 = vmatprep.subr.bf16.mxu1 %v7223_v13  ;;  %v7275_v40 = vld [vmem:[%s7818_s17 + $0xaa8] ss:$16 sps:$4 sm:$0xff]   ;;  %v7280_v13 = vld [vmem:[%s7818_s17 + $0xac4] ss:$16 sps:$4 sm:$0xff]  }
 0x291   : > { %4771 = vmatpush1.bf16.msra.mxu0 %v7218_v17  ;;  %v8466_v17 = vmul.bf16 %v8184_v24, %v1655_v15 }
 0x292   : > { %5209 = vmatpush1.bf16.msra.mxu1 %v7221_v18  ;;  %4772 = vmatprep.subr.bf16.mxu0 %v7226_v20  ;;  %v8469_v18 = vmul.bf16 %v8184_v24, %v1661_v16  ;;  %v7283_v20 = vld [vmem:[%s7818_s17 + $0xacc] ss:$16 sps:$4 sm:$0xff]  }
 0x293   : > { %5210 = vmatprep.subr.bf16.mxu1 %v7229_v21  ;;  %v6034_v21 = vcombine.low %v1870_v3, %v1876_v46  ;;  %v1847_v3 = vmul.bf16 %v8184_v24, %v1667_v1  ;;  %v1691_v16 = vld [vmem:[%s7822_s18 + $0x148] sm:$0xff]  ;;  %v1893_v1 = vld [vmem:[#allocation2 + $0x78] sm:$0xff] }
 0x295   : > { %4773 = vmatpush1.bf16.msra.mxu0 %v7224_v22  ;;  %v7278_v22 = vld [vmem:[%s7818_s17 + $0xac0] ss:$16 sps:$4 sm:$0xff]  }
 0x296   : > { %5211 = vmatpush1.bf16.msra.mxu1 %v7227_v23  ;;  %4774 = vmatprep.subr.bf16.mxu0 %v7232_v25  ;;  %v7281_v23 = vld [vmem:[%s7818_s17 + $0xac8] ss:$16 sps:$4 sm:$0xff]   ;;  %v6001_v25 = vcombine.high %v8466_v17, %v8469_v18 }
 0x297   : > { %5212 = vmatprep.subr.bf16.mxu1 %v7235_v26  ;;  %v7286_v26 = vld [vmem:[%s7818_s17 + $0xae4] ss:$16 sps:$4 sm:$0xff]  }
 0x299   : > { %4775 = vmatpush1.bf16.msra.mxu0 %v7230_v27  ;;  %v7289_v27 = vld [vmem:[%s7818_s17 + $0xaec] ss:$16 sps:$4 sm:$0xff]  }
 0x29a   : > { %5213 = vmatpush1.bf16.msra.mxu1 %v7233_v28  ;;  %4776 = vmatprep.subr.bf16.mxu0 %v7238_v29  ;;  %v7284_v28 = vld [vmem:[%s7818_s17 + $0xae0] ss:$16 sps:$4 sm:$0xff]   ;;  %v7287_v29 = vld [vmem:[%s7818_s17 + $0xae8] ss:$16 sps:$4 sm:$0xff]  }
 0x29b   : > { %5214 = vmatprep.subr.bf16.mxu1 %v7241_v30  ;;  %v7292_v30 = vld [vmem:[%s7818_s17 + $0xb04] ss:$16 sps:$4 sm:$0xff]  }
 0x29d   : > { %4777 = vmatpush1.bf16.msra.mxu0 %v7236_v34  ;;  %v7293_v34 = vld [vmem:[%s7818_s17 + $0xb08] ss:$16 sps:$4 sm:$0xff]  }
 0x29e   : > { %5215 = vmatpush1.bf16.msra.mxu1 %v7239_v35  ;;  %4819 = vmatprep.subr.bf16.mxu0 %v7244_v36  ;;  %v7298_v35 = vld [vmem:[%s7818_s17 + $0xb24] ss:$16 sps:$4 sm:$0xff]   ;;  %v7301_v36 = vld [vmem:[%s7818_s17 + $0xb2c] ss:$16 sps:$4 sm:$0xff]  }
 0x29f   : > { %5257 = vmatprep.subr.bf16.mxu1 %v7247_v37  ;;  %v7296_v37 = vld [vmem:[%s7818_s17 + $0xb20] ss:$16 sps:$4 sm:$0xff]  }
 0x2a0   : > { %4779 = vmatmul.mubr.bf16.vlgmr.msra.gmra.mrb[12].mxu0 %v5998_v32 }
 0x2a1   : > { %5217 = vmatmul.mubr.bf16.vlgmr.msra.gmra.mrb[12].mxu1 %v5998_v32  ;;  %4788 = vmatprep.mubr.bf16.mxu0 %v6011_v44  ;;  %v7307_v32 = vld [vmem:[%s7818_s17 + $0xb4c] ss:$16 sps:$4 sm:$0xff]  }
 0x2a2   : > { %4820 = vmatpush1.bf16.msra.mxu0 %v7242_v42  ;;  %5226 = vmatprep.mubr.bf16.mxu1 %v6011_v44  ;;  %v7302_v42 = vld [vmem:[%s7818_s17 + $0xb40] ss:$16 sps:$4 sm:$0xff]   ;;  %v7310_v44 = vld [vmem:[%s7818_s17 + $0xb64] ss:$16 sps:$4 sm:$0xff]  }
 0x2a3   : > { %5258 = vmatpush1.bf16.msra.mxu1 %v7245_v43  ;;  %4821 = vmatprep.subr.bf16.mxu0 %v7250_v19  ;;  %v7305_v43 = vld [vmem:[%s7818_s17 + $0xb48] ss:$16 sps:$4 sm:$0xff]   ;;  %v7313_v19 = vld [vmem:[%s7818_s17 + $0xb6c] ss:$16 sps:$4 sm:$0xff]  }
 0x2a4   : > { %5259 = vmatprep.subr.bf16.mxu1 %v7253_v41  ;;  %v7308_v41 = vld [vmem:[%s7818_s17 + $0xb60] ss:$16 sps:$4 sm:$0xff]  }
 0x2a6   : > { %4822 = vmatpush1.bf16.msra.mxu0 %v7248_v48  ;;  %v7319_v48 = vld [vmem:[%s7818_s17 + $0xb8c] ss:$16 sps:$4 sm:$0xff]  }
 0x2a7   : > { %5260 = vmatpush1.bf16.msra.mxu1 %v7251_v49  ;;  %4823 = vmatprep.subr.bf16.mxu0 %v7256_v50  ;;  %v7314_v49 = vld [vmem:[%s7818_s17 + $0xb80] ss:$16 sps:$4 sm:$0xff]   ;;  %v7317_v50 = vld [vmem:[%s7818_s17 + $0xb88] ss:$16 sps:$4 sm:$0xff]  }
 0x2a8   : > { %4789 = vmatmul.mubr.bf16.gmra.mrb[16].mxu0 %v6010_v59  ;;  %5261 = vmatprep.subr.bf16.mxu1 %v7259_v54  ;;  %v7320_v54 = vld [vmem:[%s7818_s17 + $0xba0] ss:$16 sps:$4 sm:$0xff]  }
 0x2a9   : > { %5227 = vmatmul.mubr.bf16.gmra.mrb[16].mxu1 %v6010_v59  ;;  %4798 = vmatprep.mubr.bf16.mxu0 %v6023_v61  ;;  %v7323_v59 = vld [vmem:[%s7818_s17 + $0xba8] ss:$16 sps:$4 sm:$0xff]  }
 0x2aa   : > { %4824 = vmatpush1.bf16.msra.mxu0 %v7254_v60  ;;  %5236 = vmatprep.mubr.bf16.mxu1 %v6023_v61  ;;  %v7328_v60 = vld [vmem:[%s7818_s17 + $0xbc4] ss:$16 sps:$4 sm:$0xff]   ;;  %v7326_v61 = vld [vmem:[%s7818_s17 + $0xbc0] ss:$16 sps:$4 sm:$0xff]  }
 0x2ab   : > { %5262 = vmatpush1.bf16.msra.mxu1 %v7257_v45  ;;  %4825 = vmatprep.subr.bf16.mxu0 %v7262_v62  ;;  %v7331_v45 = vld [vmem:[%s7818_s17 + $0xbcc] ss:$16 sps:$4 sm:$0xff]   ;;  %v7329_v62 = vld [vmem:[%s7818_s17 + $0xbc8] ss:$16 sps:$4 sm:$0xff]  }
 0x2ac   : > { %5263 = vmatprep.subr.bf16.mxu1 %v7265_v63  ;;  %v7334_v63 = vld [vmem:[%s7818_s17 + $0xbe4] ss:$16 sps:$4 sm:$0xff]  }
 0x2ae   : > { %4826 = vmatpush1.bf16.msra.mxu0 %v7260_v55  ;;  %v1673_v55 = vld [vmem:[%s7822_s18 + $0xb8] sm:$0xff] }
 0x2af   : > { %5264 = vmatpush1.bf16.msra.mxu1 %v7263_v4  ;;  %4827 = vmatprep.subr.bf16.mxu0 %v7268_v7  ;;  %v7332_v4 = vld [vmem:[%s7818_s17 + $0xbe0] ss:$16 sps:$4 sm:$0xff]   ;;  %v7335_v7 = vld [vmem:[%s7818_s17 + $0xbe8] ss:$16 sps:$4 sm:$0xff]   ;;  %v1853_v46 = vmul.bf16 %v8184_v24, %v1673_v55 }
 0x2b0   : > { %4799 = vmatmul.mubr.bf16.gmra.mrb[20].mxu0 %v6022_v9  ;;  %5265 = vmatprep.subr.bf16.mxu1 %v7271_v8  ;;  %v6000_v8 = vcombine.low %v8466_v17, %v8469_v18 }
 0x2b1   : > { %5237 = vmatmul.mubr.bf16.gmra.mrb[20].mxu1 %v6022_v9  ;;  %4808 = vmatprep.mubr.bf16.mxu0 %v6035_v12  ;;  %v6013_v9 = vcombine.high %v1847_v3, %v1853_v46 }
 0x2b2   : > { %4828 = vmatpush1.bf16.msra.mxu0 %v7266_v10  ;;  %5246 = vmatprep.mubr.bf16.mxu1 %v6035_v12  ;;  %v1679_v10 = vld [vmem:[%s7822_s18 + $0xe8] sm:$0xff] }
 0x2b3   : > { %5266 = vmatpush1.bf16.msra.mxu1 %v7269_v11  ;;  %4829 = vmatprep.subr.bf16.mxu0 %v7274_v57  ;;  %v1685_v11 = vld [vmem:[%s7822_s18 + $0x118] sm:$0xff]  ;;  %v1859_v12 = vmul.bf16 %v8184_v24, %v1679_v10 }
 0x2b4   : > { %5267 = vmatprep.subr.bf16.mxu1 %v7277_v14  ;;  %v1865_v57 = vmul.bf16 %v8184_v24, %v1685_v11  ;;  %v6012_v14 = vcombine.low %v1847_v3, %v1853_v46  ;;  %v1894_v11 = vld [vmem:[#allocation2 + $0x80] sm:$0xff] }
 0x2b6   : > { %4830 = vmatpush1.bf16.msra.mxu0 %v7272_v51  ;;  %v6025_v15 = vcombine.high %v1859_v12, %v1865_v57  ;;  %v1697_v51 = vld [vmem:[%s7822_s18 + $0x178] sm:$0xff]  ;;  %v6024_v17 = vcombine.low %v1859_v12, %v1865_v57  ;;  %v1896_v12 = vld [vmem:[#allocation2 + $0x90] sm:$0xff]  ;;  %v1895_v57 = vld [vmem:[#allocation2 + $0x88] sm:$0xff] }
 0x2b7   : > { %5268 = vmatpush1.bf16.msra.mxu1 %v7275_v40  ;;  %4831 = vmatprep.subr.bf16.mxu0 %v7280_v13  ;;  %v1871_v40 = vmul.bf16 %v8184_v24, %v1691_v16  ;;  %v1877_v13 = vmul.bf16 %v8184_v24, %v1697_v51  ;;  %v1883_v24 = vld [vmem:[#allocation2 + $0x28] sm:$0xff]  ;;  %v1898_v16 = vld [vmem:[#allocation2 + $0xa0] sm:$0xff] }
 0x2b8   : > { %4809 = vmatmul.mubr.bf16.gmra.mrb[24].mxu0 %v6034_v21  ;;  %5269 = vmatprep.subr.bf16.mxu1 %v7283_v20 }
 0x2b9   : > { %5247 = vmatmul.mubr.bf16.gmra.mrb[24].mxu1 %v6034_v21  ;;  %4851 = vmatprep.mubr.bf16.mxu0 %v6001_v25  ;;  %v6037_v18 = vcombine.high %v1871_v40, %v1877_v13  ;;  %v6036_v20 = vcombine.low %v1871_v40, %v1877_v13  ;;  %v1878_v21 = vld [vmem:[#allocation2] sm:$0xff] }
 0x2ba   : > { %4832 = vmatpush1.bf16.msra.mxu0 %v7278_v22  ;;  %5289 = vmatprep.mubr.bf16.mxu1 %v6001_v25  ;;  %v1880_v22 = vld [vmem:[#allocation2 + $0x10] sm:$0xff] }
 0x2bb   : > { %5270 = vmatpush1.bf16.msra.mxu1 %v7281_v23  ;;  %4833 = vmatprep.subr.bf16.mxu0 %v7286_v26  ;;  %v1879_v23 = vld [vmem:[#allocation2 + $0x8] sm:$0xff]  ;;  %v1881_v26 = vld [vmem:[#allocation2 + $0x18] sm:$0xff] }
 0x2bc   : > { %5271 = vmatprep.subr.bf16.mxu1 %v7289_v27  ;;  %v1882_v27 = vld [vmem:[#allocation2 + $0x20] sm:$0xff] }
 0x2be   : > { %4834 = vmatpush1.bf16.msra.mxu0 %v7284_v28 }
 0x2bf   : > { %5272 = vmatpush1.bf16.msra.mxu1 %v7287_v29  ;;  %4835 = vmatprep.subr.bf16.mxu0 %v7292_v30 }
 0x2c0   : > { %5273 = vmatprep.subr.bf16.mxu1 %v7295_v31  ;;  %v1884_v31 = vld [vmem:[#allocation2 + $0x30] sm:$0xff] }
 0x2c2   : > { %4836 = vmatpush1.bf16.msra.mxu0 %v7290_v33 }
 0x2c3   : > { %5274 = vmatpush1.bf16.msra.mxu1 %v7293_v34  ;;  %4837 = vmatprep.subr.bf16.mxu0 %v7298_v35 }
 0x2c4   : > { %5275 = vmatprep.subr.bf16.mxu1 %v7301_v36 }
 0x2c6   : > { %4838 = vmatpush1.bf16.msra.mxu0 %v7296_v37  ;;  %v1885_v37 = vld [vmem:[#allocation2 + $0x38] sm:$0xff] }
 0x2c7   : > { %5276 = vmatpush1.bf16.msra.mxu1 %v7299_v38  ;;  %4839 = vmatprep.subr.bf16.mxu0 %v7304_v39 }
 0x2c8   : > { %5277 = vmatprep.subr.bf16.mxu1 %v7307_v32 }
 0x2ca   : > { %4840 = vmatpush1.bf16.msra.mxu0 %v7302_v42 }
 0x2cb   : > { %5278 = vmatpush1.bf16.msra.mxu1 %v7305_v43  ;;  %4841 = vmatprep.subr.bf16.mxu0 %v7310_v44 }
 0x2cc   : > { %5279 = vmatprep.subr.bf16.mxu1 %v7313_v19 }
 0x2ce   : > { %4842 = vmatpush1.bf16.msra.mxu0 %v7308_v41 }
 0x2cf   : > { %5280 = vmatpush1.bf16.msra.mxu1 %v7311_v2  ;;  %4843 = vmatprep.subr.bf16.mxu0 %v7316_v47  ;;  %v1886_v2 = vld [vmem:[#allocation2 + $0x40] sm:$0xff]  ;;  %v1888_v47 = vld [vmem:[#allocation2 + $0x50] sm:$0xff] }
 0x2d0   : > { %5281 = vmatprep.subr.bf16.mxu1 %v7319_v48  ;;  %v1887_v48 = vld [vmem:[#allocation2 + $0x48] sm:$0xff] }
 0x2d2   : > { %4844 = vmatpush1.bf16.msra.mxu0 %v7314_v49 }
 0x2d3   : > { %5282 = vmatpush1.bf16.msra.mxu1 %v7317_v50  ;;  %4845 = vmatprep.subr.bf16.mxu0 %v7322_v52  ;;  %v1889_v50 = vld [vmem:[#allocation2 + $0x58] sm:$0xff]  ;;  %v1890_v52 = vld [vmem:[#allocation2 + $0x60] sm:$0xff] }
 0x2d4   : > { %5283 = vmatprep.subr.bf16.mxu1 %v7325_v53 }
 0x2d6   : > { %4846 = vmatpush1.bf16.msra.mxu0 %v7320_v54 }
 0x2d7   : > { %5284 = vmatpush1.bf16.msra.mxu1 %v7323_v59  ;;  %4847 = vmatprep.subr.bf16.mxu0 %v7328_v60  ;;  %v1892_v60 = vld [vmem:[#allocation2 + $0x70] sm:$0xff] }
 0x2d8   : > { %5285 = vmatprep.subr.bf16.mxu1 %v7331_v45  ;;  %v1891_v45 = vld [vmem:[#allocation2 + $0x68] sm:$0xff] }
 0x2da   : > { %4848 = vmatpush1.bf16.msra.mxu0 %v7326_v61 }
 0x2db   : > { %5286 = vmatpush1.bf16.msra.mxu1 %v7329_v62  ;;  %4849 = vmatprep.subr.bf16.mxu0 %v7334_v63 }
 0x2dc   : > { %5287 = vmatprep.subr.bf16.mxu1 %v7337_v0 }
 0x2de   : > { %4850 = vmatpush1.bf16.msra.mxu0 %v7332_v4 }
 0x2df   : > { %5288 = vmatpush1.bf16.msra.mxu1 %v7335_v7 }
 0x2e1   : > { %4852 = vmatmul.mubr.bf16.vlgmr.msra.gmra.mrb[12].mxu0 %v6000_v8 }
 0x2e2   : > { %5290 = vmatmul.mubr.bf16.vlgmr.msra.gmra.mrb[12].mxu1 %v6000_v8  ;;  %4861 = vmatprep.mubr.bf16.mxu0 %v6013_v9 }
 0x2e3   : > { %5299 = vmatprep.mubr.bf16.mxu1 %v6013_v9 }
 0x2e9   : > { %4862 = vmatmul.mubr.bf16.gmra.mrb[16].mxu0 %v6012_v14 }
 0x2ea   : > { %5300 = vmatmul.mubr.bf16.gmra.mrb[16].mxu1 %v6012_v14  ;;  %4871 = vmatprep.mubr.bf16.mxu0 %v6025_v15 }
 0x2eb   : > { %5309 = vmatprep.mubr.bf16.mxu1 %v6025_v15  ;;  %v1897_v15 = vld [vmem:[#allocation2 + $0x98] sm:$0xff] }
 0x2f1   : > { %4872 = vmatmul.mubr.bf16.gmra.mrb[20].mxu0 %v6024_v17 }
 0x2f2   : > { %5310 = vmatmul.mubr.bf16.gmra.mrb[20].mxu1 %v6024_v17  ;;  %4881 = vmatprep.mubr.bf16.mxu0 %v6037_v18  ;;  %v1900_v17 = vld [vmem:[#allocation2 + $0xb0] sm:$0xff] }
 0x2f3   : > { %5319 = vmatprep.mubr.bf16.mxu1 %v6037_v18  ;;  %v1899_v18 = vld [vmem:[#allocation2 + $0xa8] sm:$0xff] }
 0x2f9   : > { %4882 = vmatmul.mubr.bf16.gmra.mrb[24].mxu0 %v6036_v20 }
 0x2fa   : > { %5320 = vmatmul.mubr.bf16.gmra.mrb[24].mxu1 %v6036_v20 }
 0x3b4   : > { %v4853_v25 = vpop.f32.mrb[12].mxu0 }
 0x3b5   : > { %v5330_v28 = vadd.f32 %v4853_v25, %v1878_v21  ;;  %v5291_v29 = vpop.f32.mrb[12].mxu1  ;;  %v4855_v30 = vpop.f32.mrb[13].mxu0  ;;  %v1901_v25 = vld [vmem:[#allocation2 + $0xb8] sm:$0xff] }
 0x3b6   : > { %v5332_v33 = vadd.f32 %v5291_v29, %v1880_v22  ;;  %v5331_v34 = vadd.f32 %v4855_v30, %v1879_v23  ;;  %v5293_v35 = vpop.f32.mrb[13].mxu1  ;;  %v4857_v36 = vpop.f32.mrb[14].mxu0 }
 0x3b7   : > { %5362 = vst [vmem:[#allocation2] sm:$0xff] %v5330_v28  ;;  %v5333_v38 = vadd.f32 %v5293_v35, %v1881_v26  ;;  %v5334_v39 = vadd.f32 %v4857_v36, %v1882_v27  ;;  %v5295_v32 = vpop.f32.mrb[14].mxu1  ;;  %v4859_v42 = vpop.f32.mrb[15].mxu0  ;;  %v1904_v35 = vld [vmem:[#allocation2 + $0xd0] sm:$0xff]  ;;  %v1903_v36 = vld [vmem:[#allocation2 + $0xc8] sm:$0xff] }
 0x3b8   : > { %5364 = vst [vmem:[#allocation2 + $0x10] sm:$0xff] %v5332_v33  ;;  %5363 = vst [vmem:[#allocation2 + $0x8] sm:$0xff] %v5331_v34  ;;  %v5336_v43 = vadd.f32 %v5295_v32, %v1884_v31  ;;  %v5335_v44 = vadd.f32 %v4859_v42, %v1883_v24  ;;  %v5297_v19 = vpop.f32.mrb[15].mxu1  ;;  %v1902_v34 = vld [vmem:[#allocation2 + $0xc0] sm:$0xff] }
 0x3b9   : > { %5365 = vst [vmem:[#allocation2 + $0x18] sm:$0xff] %v5333_v38  ;;  %5366 = vst [vmem:[#allocation2 + $0x20] sm:$0xff] %v5334_v39  ;;  %v5337_v41 = vadd.f32 %v5297_v19, %v1885_v37  ;;  %v1905_v38 = vld [vmem:[#allocation2 + $0xd8] sm:$0xff]  ;;  %v1906_v39 = vld [vmem:[#allocation2 + $0xe0] sm:$0xff] }
 0x3ba   : > { %5368 = vst [vmem:[#allocation2 + $0x30] sm:$0xff] %v5336_v43  ;;  %5367 = vst [vmem:[#allocation2 + $0x28] sm:$0xff] %v5335_v44  ;;  %v1908_v44 = vld [vmem:[#allocation2 + $0xf0] sm:$0xff]  ;;  %v1907_v19 = vld [vmem:[#allocation2 + $0xe8] sm:$0xff] }
 0x3bb   : > { %5369 = vst [vmem:[#allocation2 + $0x38] sm:$0xff] %v5337_v41 }
 0x3bc   : > { %v4863_v49 = vpop.f32.mrb[16].mxu0 }
 0x3bd   : > { %v5338_v53 = vadd.f32 %v4863_v49, %v1886_v2  ;;  %v5301_v54 = vpop.f32.mrb[16].mxu1  ;;  %v4865_v59 = vpop.f32.mrb[17].mxu0  ;;  %v1909_v49 = vld [vmem:[#allocation2 + $0xf8] sm:$0xff] }
 0x3be   : > { %v5340_v61 = vadd.f32 %v5301_v54, %v1888_v47  ;;  %v5339_v62 = vadd.f32 %v4865_v59, %v1887_v48  ;;  %v5303_v63 = vpop.f32.mrb[17].mxu1  ;;  %v4867_v0 = vpop.f32.mrb[18].mxu0 }
 0x3bf   : > { %5370 = vst [vmem:[#allocation2 + $0x40] sm:$0xff] %v5338_v53  ;;  %v5341_v55 = vadd.f32 %v5303_v63, %v1889_v50  ;;  %v5342_v4 = vadd.f32 %v4867_v0, %v1890_v52  ;;  %v5305_v7 = vpop.f32.mrb[18].mxu1  ;;  %v4869_v3 = vpop.f32.mrb[19].mxu0 }
 0x3c0   : > { %5372 = vst [vmem:[#allocation2 + $0x50] sm:$0xff] %v5340_v61  ;;  %5371 = vst [vmem:[#allocation2 + $0x48] sm:$0xff] %v5339_v62  ;;  %v5344_v46 = vadd.f32 %v5305_v7, %v1892_v60  ;;  %v5343_v8 = vadd.f32 %v4869_v3, %v1891_v45  ;;  %v5307_v9 = vpop.f32.mrb[19].mxu1 }
 0x3c1   : > { %5373 = vst [vmem:[#allocation2 + $0x58] sm:$0xff] %v5341_v55  ;;  %5374 = vst [vmem:[#allocation2 + $0x60] sm:$0xff] %v5342_v4  ;;  %v5345_v10 = vadd.f32 %v5307_v9, %v1893_v1 }
 0x3c2   : > { %5376 = vst [vmem:[#allocation2 + $0x70] sm:$0xff] %v5344_v46  ;;  %5375 = vst [vmem:[#allocation2 + $0x68] sm:$0xff] %v5343_v8 }
 0x3c3   : > { %5377 = vst [vmem:[#allocation2 + $0x78] sm:$0xff] %v5345_v10 }
 0x3c4   : > { %v4873_v14 = vpop.f32.mrb[20].mxu0 }
 0x3c5   : > { %v5346_v51 = vadd.f32 %v4873_v14, %v1894_v11  ;;  %v5311_v40 = vpop.f32.mrb[20].mxu1  ;;  %v4875_v13 = vpop.f32.mrb[21].mxu0 }
 0x3c6   : > { %v5348_v20 = vadd.f32 %v5311_v40, %v1896_v12  ;;  %v5347_v21 = vadd.f32 %v4875_v13, %v1895_v57  ;;  %v5313_v22 = vpop.f32.mrb[21].mxu1  ;;  %v4877_v23 = vpop.f32.mrb[22].mxu0 }
 0x3c7   : > { %5378 = vst [vmem:[#allocation2 + $0x80] sm:$0xff] %v5346_v51  ;;  %v5349_v26 = vadd.f32 %v5313_v22, %v1897_v15  ;;  %v5350_v27 = vadd.f32 %v4877_v23, %v1898_v16  ;;  %v5315_v28 = vpop.f32.mrb[22].mxu1  ;;  %v4879_v29 = vpop.f32.mrb[23].mxu0 }
 0x3c8   : > { %5380 = vst [vmem:[#allocation2 + $0x90] sm:$0xff] %v5348_v20  ;;  %5379 = vst [vmem:[#allocation2 + $0x88] sm:$0xff] %v5347_v21  ;;  %v5352_v30 = vadd.f32 %v5315_v28, %v1900_v17  ;;  %v5351_v31 = vadd.f32 %v4879_v29, %v1899_v18  ;;  %v5317_v24 = vpop.f32.mrb[23].mxu1 }
 0x3c9   : > { %5381 = vst [vmem:[#allocation2 + $0x98] sm:$0xff] %v5349_v26  ;;  %5382 = vst [vmem:[#allocation2 + $0xa0] sm:$0xff] %v5350_v27  ;;  %v5353_v33 = vadd.f32 %v5317_v24, %v1901_v25 }
 0x3ca   : > { %5384 = vst [vmem:[#allocation2 + $0xb0] sm:$0xff] %v5352_v30  ;;  %5383 = vst [vmem:[#allocation2 + $0xa8] sm:$0xff] %v5351_v31 }
 0x3cb   : > { %5385 = vst [vmem:[#allocation2 + $0xb8] sm:$0xff] %v5353_v33 }
 0x3cc   : > { %v4883_v37 = vpop.f32.mrb[24].mxu0 }
 0x3cd   : > { %v5354_v32 = vadd.f32 %v4883_v37, %v1902_v34  ;;  %v5321_v42 = vpop.f32.mrb[24].mxu1  ;;  %v4885_v43 = vpop.f32.mrb[25].mxu0  ;;  %5397 = sbr.rel (%p6422_p11) target bundleno = 1067 (0x42b), region = 102 }
 0x3ce   : > { %v5356_v41 = vadd.f32 %v5321_v42, %v1904_v35  ;;  %v5355_v2 = vadd.f32 %v4885_v43, %v1903_v36  ;;  %v5323_v47 = vpop.f32.mrb[25].mxu1  ;;  %v4887_v48 = vpop.f32.mrb[26].mxu0 }
 0x3cf   : > { %5386 = vst [vmem:[#allocation2 + $0xc0] sm:$0xff] %v5354_v32  ;;  %v5357_v50 = vadd.f32 %v5323_v47, %v1905_v38  ;;  %v5358_v52 = vadd.f32 %v4887_v48, %v1906_v39  ;;  %v5325_v53 = vpop.f32.mrb[26].mxu1  ;;  %v4889_v54 = vpop.f32.mrb[27].mxu0 }
 0x3d0   : > { %5388 = vst [vmem:[#allocation2 + $0xd0] sm:$0xff] %v5356_v41  ;;  %5387 = vst [vmem:[#allocation2 + $0xc8] sm:$0xff] %v5355_v2  ;;  %v5360_v59 = vadd.f32 %v5325_v53, %v1908_v44  ;;  %v5359_v60 = vadd.f32 %v4889_v54, %v1907_v19  ;;  %v5327_v45 = vpop.f32.mrb[27].mxu1 }
 0x3d1   : > { %5389 = vst [vmem:[#allocation2 + $0xd8] sm:$0xff] %v5357_v50  ;;  %5390 = vst [vmem:[#allocation2 + $0xe0] sm:$0xff] %v5358_v52  ;;  %v5361_v61 = vadd.f32 %v5327_v45, %v1909_v49 }
 0x3d2   : > { %5392 = vst [vmem:[#allocation2 + $0xf0] sm:$0xff] %v5360_v59  ;;  %5391 = vst [vmem:[#allocation2 + $0xe8] sm:$0xff] %v5359_v60 }
 0x3d3   : > { %5393 = vst [vmem:[#allocation2 + $0xf8] sm:$0xff] %v5361_v61 }
 0x3d4   : > { %v8527_v62 = vld [vmem:[#allocation2] sm:$0xff]  ;;  %v8550_v12 = vld [vmem:[#allocation2 + $0x8] sm:$0xff]  ;;  %v8583_v28 = vld [vmem:[#allocation2 + $0x10] sm:$0xff] }
 0x3d5   : > { %v8529_v63 = vld [vmem:[#allocation2 + $0x20] sm:$0xff]  ;;  %v5486_v4 = vmul.f32 %v8527_v62, %v8527_v62  ;;  %v8552_v57 = vld [vmem:[#allocation2 + $0x28] sm:$0xff]  ;;  %v5487_v40 = vmul.f32 %v8550_v12, %v8550_v12  ;;  %v8585_v29 = vld [vmem:[#allocation2 + $0x30] sm:$0xff]  ;;  %v5488_v49 = vmul.f32 %v8583_v28, %v8583_v28 }
 0x3d6   : > { %v8531_v0 = vld [vmem:[#allocation2 + $0x40] sm:$0xff]  ;;  %v5430_v55 = vadd.f32 %v8529_v63, %v8527_v62  ;;  %v5490_v7 = vmul.f32 %v8529_v63, %v8529_v63  ;;  %v8558_v16 = vld [vmem:[#allocation2 + $0x48] sm:$0xff]  ;;  %v5443_v51 = vadd.f32 %v8552_v57, %v8550_v12  ;;  %v5491_v22 = vmul.f32 %v8552_v57, %v8552_v57  ;;  %v8604_v39 = vld [vmem:[#allocation2 + $0x50] sm:$0xff] }
 0x3d7   : > { %v8533_v1 = vld [vmem:[#allocation2 + $0x60] sm:$0xff]  ;;  %v5494_v3 = vmul.f32 %v8531_v0, %v8531_v0  ;;  %v8572_v21 = vld [vmem:[#allocation2 + $0x68] sm:$0xff]  ;;  %v5495_v27 = vmul.f32 %v8558_v16, %v8558_v16  ;;  %v5456_v19 = vadd.f32 %v8585_v29, %v8583_v28  ;;  %v8616_v48 = vld [vmem:[#allocation2 + $0x70] sm:$0xff]  ;;  %v5492_v50 = vmul.f32 %v8585_v29, %v8585_v29 }
 0x3d8   : > { %v8543_v46 = vld [vmem:[#allocation2 + $0x80] sm:$0xff]  ;;  %v5431_v9 = vadd.f32 %v5430_v55, %v8531_v0  ;;  %v5498_v10 = vmul.f32 %v8533_v1, %v8533_v1  ;;  %v5518_v11 = vadd.f32 %v5490_v7, %v5486_v4  ;;  %v8578_v25 = vld [vmem:[#allocation2 + $0x88] sm:$0xff]  ;;  %v5444_v26 = vadd.f32 %v5443_v51, %v8558_v16  ;;  %v8633_v4 = vld [vmem:[#allocation2 + $0x90] sm:$0xff] }
 0x3d9   : > { %v8545_v8 = vld [vmem:[#allocation2 + $0xa0] sm:$0xff]  ;;  %v5502_v17 = vmul.f32 %v8543_v46, %v8543_v46  ;;  %v5499_v37 = vmul.f32 %v8572_v21, %v8572_v21  ;;  %v5531_v38 = vadd.f32 %v5491_v22, %v5487_v40  ;;  %v8607_v43 = vld [vmem:[#allocation2 + $0xa8] sm:$0xff]  ;;  %v5503_v44 = vmul.f32 %v8578_v25, %v8578_v25  ;;  %v8642_v40 = vld [vmem:[#allocation2 + $0xb0] sm:$0xff] }
 0x3da   : > { %v8554_v14 = vld [vmem:[#allocation2 + $0xc0] sm:$0xff]  ;;  %v5432_v13 = vadd.f32 %v5431_v9, %v8533_v1  ;;  %v5519_v18 = vadd.f32 %v5518_v11, %v5494_v3  ;;  %v5506_v23 = vmul.f32 %v8545_v8, %v8545_v8  ;;  %v5445_v36 = vadd.f32 %v5444_v26, %v8572_v21  ;;  %v8613_v41 = vld [vmem:[#allocation2 + $0xc8] sm:$0xff]  ;;  %v8648_v22 = vld [vmem:[#allocation2 + $0x38] sm:$0xff] }
 0x3db   : > { %v8556_v15 = vld [vmem:[#allocation2 + $0xe0] sm:$0xff]  ;;  %v5510_v31 = vmul.f32 %v8554_v14, %v8554_v14  ;;  %v5532_v47 = vadd.f32 %v5531_v38, %v5495_v27  ;;  %v5457_v59 = vadd.f32 %v5456_v19, %v8604_v39  ;;  %v8628_v60 = vld [vmem:[#allocation2 + $0xe8] sm:$0xff]  ;;  %v5507_v61 = vmul.f32 %v8607_v43, %v8607_v43 }
 0x3dc   : > { %v8570_v20 = vld [vmem:[%s9030_s5] sm:$0xf]  ;;  %v5433_v30 = vadd.f32 %v5432_v13, %v8543_v46  ;;  %v5514_v24 = vmul.f32 %v8556_v15, %v8556_v15  ;;  %v5520_v33 = vadd.f32 %v5519_v18, %v5498_v10  ;;  %v5446_v2 = vadd.f32 %v5445_v36, %v8578_v25  ;;  %v8646_v18 = vld [vmem:[#allocation2 + $0x18] sm:$0xff]  ;;  %v8654_v36 = vld [vmem:[#allocation2 + $0xd0] sm:$0xff] }
 0x3dd   : > { %9038 = vst [vmem:[#allocation6_spill] sm:$0xff] %v8570_v20  ;;  %v8594_v34 = vrot.slane %v8570_v20, %v8007_v56  ;;  %v8599_v35 = vld [vmem:[%s9031_s6] sm:$0xf]  ;;  %v5533_v55 = vadd.f32 %v5532_v47, %v5499_v37  ;;  %v5496_v7 = vmul.f32 %v8604_v39, %v8604_v39  ;;  %v5458_v10 = vadd.f32 %v5457_v59, %v8616_v48 }
 0x3de   : > { %v5434_v32 = vadd.f32 %v5433_v30, %v8545_v8  ;;  %v5521_v42 = vadd.f32 %v5520_v33, %v5502_v17  ;;  %v8625_v54 = vrot.slane %v8599_v35, %v8007_v56  ;;  %v5447_v45 = vadd.f32 %v5446_v2, %v8607_v43 }
 0x3df   : > { %v5511_v56 = vmul.f32 %v8613_v41, %v8613_v41  ;;  %v5534_v51 = vadd.f32 %v5533_v55, %v5503_v44  ;;  %v5500_v13 = vmul.f32 %v8616_v48, %v8616_v48  ;;  %v5544_v17 = vadd.f32 %v5492_v50, %v5488_v49  ;;  %v8663_v49 = vld [vmem:[#allocation2 + $0xf0] sm:$0xff] }
 0x3e0   : > { %v5435_v52 = vadd.f32 %v5434_v32, %v8554_v14  ;;  %v5522_v53 = vadd.f32 %v5521_v42, %v5506_v23  ;;  %v5448_v11 = vadd.f32 %v5447_v45, %v8613_v41  ;;  %v5515_v27 = vmul.f32 %v8628_v60, %v8628_v60  ;;  %v8658_v32 = vld [vmem:[#allocation2 + $0x58] sm:$0xff] }
 0x3e1   : > { %v5459_v30 = vadd.f32 %v5458_v10, %v8633_v4  ;;  %v5535_v33 = vadd.f32 %v5534_v51, %v5507_v61  ;;  %v5504_v37 = vmul.f32 %v8633_v4, %v8633_v4  ;;  %v5545_v38 = vadd.f32 %v5544_v17, %v5496_v7  ;;  %v8673_v10 = vld [vmem:[#allocation2 + $0x98] sm:$0xff] }
 0x3e2   : > { %v5436_v3 = vadd.f32 %v5435_v52, %v8556_v15  ;;  %v5523_v9 = vadd.f32 %v5522_v53, %v5510_v31  ;;  %v5449_v31 = vadd.f32 %v5448_v11, %v8628_v60  ;;  %v5469_v19 = vadd.f32 %v8648_v22, %v8646_v18  ;;  %v8667_v53 = vld [vmem:[#allocation2 + $0x78] sm:$0xff] }
 0x3e3   : > { %v5536_v47 = vadd.f32 %v5535_v33, %v5511_v56  ;;  %v5508_v50 = vmul.f32 %v8642_v40, %v8642_v40  ;;  %v5546_v52 = vadd.f32 %v5545_v38, %v5500_v13 }
 0x3e4   : > { %v5437_v23 = vrot.slane %v5436_v3, 4  ;;  %v5524_v26 = vadd.f32 %v5523_v9, %v5514_v24  ;;  %v5460_v24 = vadd.f32 %v5459_v30, %v8642_v40  ;;  %v5450_v2 = vrot.slane %v5449_v31, 4 }
 0x3e5   : > { %v5470_v55 = vadd.f32 %v5469_v19, %v8658_v32  ;;  %v5512_v9 = vmul.f32 %v8654_v36, %v8654_v36  ;;  %v5547_v56 = vadd.f32 %v5546_v52, %v5504_v37  ;;  %v5516_v30 = vmul.f32 %v8663_v49, %v8663_v49 }
 0x3e6   : > { %v5438_v42 = vadd.f32 %v5437_v23, %v5436_v3  ;;  %v5525_v44 = vrot.slane %v5524_v26, 4  ;;  %v5461_v61 = vadd.f32 %v5460_v24, %v8654_v36  ;;  %v5451_v7 = vadd.f32 %v5450_v2, %v5449_v31  ;;  %v8679_v31 = vld [vmem:[#allocation2 + $0xb8] sm:$0xff] }
 0x3e7   : > { %v5537_v3 = vadd.f32 %v5536_v47, %v5515_v27  ;;  %v5471_v17 = vadd.f32 %v5470_v55, %v8667_v53  ;;  %v5548_v33 = vadd.f32 %v5547_v56, %v5508_v50  ;;  %v8684_v19 = vrot.slane %v8570_v20, %v8013_v58  ;;  %v8686_v47 = vld [vmem:[#allocation2 + $0xd8] sm:$0xff] }
 0x3e8   : > { %v5439_v59 = vrot.slane %v5438_v42, 2  ;;  %v5526_v45 = vadd.f32 %v5525_v44, %v5524_v26  ;;  %v5462_v13 = vadd.f32 %v5461_v61, %v8663_v49  ;;  %v5452_v23 = vrot.slane %v5451_v7, 2 }
 0x3e9   : > { %v5538_v26 = vrot.slane %v5537_v3, 4  ;;  %v5472_v37 = vadd.f32 %v5471_v17, %v8673_v10  ;;  %v5549_v2 = vadd.f32 %v5548_v33, %v5512_v9  ;;  %v5489_v33 = vmul.f32 %v8646_v18, %v8646_v18 }
 0x3ea   : > { %v5440_v11 = vadd.f32 %v5439_v59, %v5438_v42  ;;  %v5527_v51 = vrot.slane %v5526_v45, 2  ;;  %v5463_v44 = vrot.slane %v5462_v13, 4  ;;  %v5453_v24 = vadd.f32 %v5452_v23, %v5451_v7  ;;  %v8695_v23 = vld [vmem:[#allocation2 + $0xf8] sm:$0xff] }
 0x3eb   : > { %v5539_v42 = vadd.f32 %v5538_v26, %v5537_v3  ;;  %v5473_v50 = vadd.f32 %v5472_v37, %v8679_v31  ;;  %v5550_v7 = vadd.f32 %v5549_v2, %v5516_v30  ;;  %v5493_v30 = vmul.f32 %v8648_v22, %v8648_v22 }
 0x3ec   : > { %v5441_v27 = vrot.slane %v5440_v11, 1  ;;  %v5528_v38 = vadd.f32 %v5527_v51, %v5526_v45  ;;  %v5464_v61 = vadd.f32 %v5463_v44, %v5462_v13  ;;  %v5454_v55 = vrot.slane %v5453_v24, 1 }
 0x3ed   : > { %v5540_v56 = vrot.slane %v5539_v42, 2  ;;  %v8691_v45 = vrot.slane %v8599_v35, %v8013_v58  ;;  %v5474_v9 = vadd.f32 %v5473_v50, %v8686_v47  ;;  %v5551_v13 = vrot.slane %v5550_v7, 4 }
 0x3ee   : > { %v5442_v52 = vadd.f32 %v5441_v27, %v5440_v11  ;;  %v5529_v59 = vrot.slane %v5528_v38, 1  ;;  %v5465_v17 = vrot.slane %v5464_v61, 2  ;;  %v5455_v11 = vadd.f32 %v5454_v55, %v5453_v24 }
 0x3ef   : > { %v5541_v26 = vadd.f32 %v5540_v56, %v5539_v42  ;;  %v5552_v2 = vadd.f32 %v5551_v13, %v5550_v7  ;;  %v5497_v50 = vmul.f32 %v8658_v32, %v8658_v32 }
 0x3f0   : > { %v8693_v3 = vmul.f32 0.020408163, %v5442_v52  ;;  %v5530_v51 = vadd.f32 %v5529_v59, %v5528_v38  ;;  %v5466_v44 = vadd.f32 %v5465_v17, %v5464_v61  ;;  %v8704_v38 = vmul.f32 0.020408163, %v5455_v11 }
 0x3f1   : > { %v5542_v37 = vrot.slane %v5541_v26, 1  ;;  %v5475_v52 = vadd.f32 %v5474_v9, %v8695_v23  ;;  %v8709_v59 = vrot.slane %v8570_v20, %v8020_v5  ;;  %v5553_v56 = vrot.slane %v5552_v2, 2 }
 0x3f2   : > { %v5570_v27 = vmul.f32 0.020408163, %v5530_v51  ;;  %v5574_v58 = vmul.f32 %v8693_v3, %v8693_v3  ;;  %v5467_v42 = vrot.slane %v5466_v44, 1  ;;  %v5575_v61 = vmul.f32 %v8704_v38, %v8704_v38 }
 0x3f3   : > { %v5543_v55 = vadd.f32 %v5542_v37, %v5541_v26  ;;  %v5501_v51 = vmul.f32 %v8667_v53, %v8667_v53  ;;  %v5476_v9 = vrot.slane %v5475_v52, 4  ;;  %v5557_v11 = vadd.f32 %v5493_v30, %v5489_v33 }
 0x3f4   : > { %v5578_v24 = vsub.f32 %v5570_v27, %v5574_v58  ;;  %v5468_v17 = vadd.f32 %v5467_v42, %v5466_v44  ;;  %v5554_v27 = vadd.f32 %v5553_v56, %v5552_v2  ;;  %v8719_v58 = vrot.slane %v8599_v35, %v8020_v5 }
 0x3f5   : > { %v5571_v13 = vmul.f32 0.020408163, %v5543_v55  ;;  %v5505_v26 = vmul.f32 %v8673_v10, %v8673_v10  ;;  %v5477_v20 = vadd.f32 %v5476_v9, %v5475_v52  ;;  %v5558_v6 = vadd.f32 %v5557_v11, %v5497_v50 }
 0x3f6   : > { %v5614_v7 = vadd.f32 0.001, %v5578_v24  ;;  %v8723_v37 = vmul.f32 0.020408163, %v5468_v17  ;;  %v5582_v24 = vsub.f32 %v8527_v62, %v8693_v3  ;;  %v5555_v42 = vrot.slane %v5554_v27, 1 }
 0x3f7   : > { %v5579_v44 = vsub.f32 %v5571_v13, %v5575_v61  ;;  %v5509_v33 = vmul.f32 %v8679_v31, %v8679_v31  ;;  %v5478_v30 = vrot.slane %v5477_v20, 2  ;;  %v5513_v5 = vmul.f32 %v8686_v47, %v8686_v47 }
 0x3f8   : > { %7386 = vrsqrt.f32 %v5614_v7  ;;  %v5517_v2 = vmul.f32 %v8695_v23, %v8695_v23  ;;  %v5559_v55 = vadd.f32 %v5558_v6, %v5501_v51  ;;  %v5583_v52 = vsub.f32 %v8550_v12, %v8704_v38 }
 0x3f9   : > { %v5615_v50 = vadd.f32 0.001, %v5579_v44  ;;  %v5556_v56 = vadd.f32 %v5555_v42, %v5554_v27  ;;  %v5576_v62 = vmul.f32 %v8723_v37, %v8723_v37  ;;  %v5479_v61 = vadd.f32 %v5478_v30, %v5477_v20 }
 0x3fa   : > { %v5560_v7 = vadd.f32 %v5559_v55, %v5505_v26  ;;  %v5586_v17 = vsub.f32 %v8529_v63, %v8693_v3  ;;  %v5587_v9 = vsub.f32 %v8552_v57, %v8704_v38  ;;  %v5584_v6 = vsub.f32 %v8583_v28, %v8723_v37 }
 0x3fb   : > { %7388 = vrsqrt.f32 %v5615_v50  ;;  %v5572_v11 = vmul.f32 0.020408163, %v5556_v56  ;;  %v5588_v12 = vsub.f32 %v8585_v29, %v8723_v37  ;;  %v5480_v51 = vrot.slane %v5479_v61, 1 }
 0x3fc   : > { %v5561_v13 = vadd.f32 %v5560_v7, %v5509_v33  ;;  %v5590_v20 = vsub.f32 %v8531_v0, %v8693_v3  ;;  %v5591_v27 = vsub.f32 %v8558_v16, %v8704_v38  ;;  %v5592_v57 = vsub.f32 %v8604_v39, %v8723_v37 }
 0x3fd   : > { %v5580_v63 = vsub.f32 %v5572_v11, %v5576_v62  ;;  %v5594_v26 = vsub.f32 %v8533_v1, %v8693_v3  ;;  %v5595_v44 = vsub.f32 %v8572_v21, %v8704_v38  ;;  %v5481_v42 = vadd.f32 %v5480_v51, %v5479_v61 }
 0x3fe   : > { %v5562_v30 = vadd.f32 %v5561_v13, %v5513_v5  ;;  %v5596_v33 = vsub.f32 %v8616_v48, %v8723_v37  ;;  %v5598_v0 = vsub.f32 %v8543_v46, %v8693_v3  ;;  %v5599_v16 = vsub.f32 %v8578_v25, %v8704_v38 }
 0x3ff   : > { %v5616_v55 = vadd.f32 0.001, %v5580_v63  ;;  %v5600_v50 = vsub.f32 %v8633_v4, %v8723_v37  ;;  %v5602_v1 = vsub.f32 %v8545_v8, %v8693_v3  ;;  %v8767_v21 = vmul.f32 0.020408163, %v5481_v42 }
 0x400   : > { %v5563_v5 = vadd.f32 %v5562_v30, %v5517_v2  ;;  %v5603_v62 = vsub.f32 %v8607_v43, %v8704_v38  ;;  %v5604_v46 = vsub.f32 %v8642_v40, %v8723_v37  ;;  %v5606_v8 = vsub.f32 %v8554_v14, %v8693_v3 }
 0x401   : > { %7390 = vrsqrt.f32 %v5616_v55  ;;  %v5607_v2 = vsub.f32 %v8613_v41, %v8704_v38  ;;  %v9040_v41 = vsub.f32 %v8556_v15, %v8693_v3  ;;  %v5612_v3 = vsub.f32 %v8663_v49, %v8723_v37 }
 0x402   : > { %v8765_v56 = vpop.eup %7386  ;;  %v5564_v11 = vrot.slane %v5563_v5, 4  ;;  %v5585_v49 = vsub.f32 %v8646_v18, %v8767_v21  ;;  %v5609_v18 = vsub.f32 %v8686_v47, %v8767_v21 }
 0x403   : > { %v5622_v61 = vmul.f32 %v8765_v56, %v5582_v24  ;;  %v5626_v25 = vmul.f32 %v8765_v56, %v5586_v17  ;;  %v5630_v7 = vmul.f32 %v8765_v56, %v5590_v20  ;;  %v5634_v63 = vmul.f32 %v8765_v56, %v5594_v26 }
 0x404   : > { %v5565_v20 = vadd.f32 %v5564_v11, %v5563_v5  ;;  %v5638_v42 = vmul.f32 %v8765_v56, %v5598_v0  ;;  %v5646_v40 = vmul.f32 %v8765_v56, %v5606_v8  ;;  %v5650_v8 = vmul.f32 %v8765_v56, %v9040_v41 }
 0x405   : > { %v5676_v51 = vmul.f32 %v8594_v34, %v5622_v61  ;;  %v5680_v13 = vmul.f32 %v8594_v34, %v5626_v25  ;;  %v5684_v24 = vmul.f32 %v8594_v34, %v5630_v7  ;;  %v8791_v55 = vpop.eup %7388  ;;  %v8796_v61 = vmul.f32 %v8767_v21, %v8767_v21 }
 0x406   : > { %v5623_v5 = vmul.f32 %v8791_v55, %v5583_v52  ;;  %v5566_v26 = vrot.slane %v5565_v20, 2  ;;  %v5627_v0 = vmul.f32 %v8791_v55, %v5587_v9  ;;  %v5631_v11 = vmul.f32 %v8791_v55, %v5591_v27 }
 0x407   : > { %v5730_v43 = vadd.f32 %v8625_v54, %v5676_v51  ;;  %v5734_v25 = vadd.f32 %v8625_v54, %v5680_v13  ;;  %v5738_v7 = vadd.f32 %v8625_v54, %v5684_v24  ;;  %v5688_v51 = vmul.f32 %v8594_v34, %v5634_v63 }
 0x408   : > { %v5635_v52 = vmul.f32 %v8791_v55, %v5595_v44  ;;  %v5692_v9 = vmul.f32 %v8594_v34, %v5638_v42  ;;  %v5639_v27 = vmul.f32 %v8791_v55, %v5599_v16  ;;  %v5677_v13 = vmul.f32 %v8684_v19, %v5623_v5 }
 0x409   : > { %5762 = vst [vmem:[%s9032_s7] sm:$0xff] %v5730_v43  ;;  %5766 = vst [vmem:[%s9032_s7 + $0x20] sm:$0xff] %v5734_v25  ;;  %v5567_v24 = vadd.f32 %v5566_v26, %v5565_v20  ;;  %v5681_v43 = vmul.f32 %v8684_v19, %v5627_v0  ;;  %v5685_v30 = vmul.f32 %v8684_v19, %v5631_v11 }
 0x40a   : > { %5770 = vst [vmem:[%s9032_s7 + $0x40] sm:$0xff] %v5738_v7  ;;  %v5742_v25 = vadd.f32 %v8625_v54, %v5688_v51  ;;  %v5689_v17 = vmul.f32 %v8684_v19, %v5635_v52  ;;  %v5746_v7 = vadd.f32 %v8625_v54, %v5692_v9  ;;  %v5693_v63 = vmul.f32 %v8684_v19, %v5639_v27 }
 0x40b   : > { %v5731_v44 = vadd.f32 %v8691_v45, %v5677_v13  ;;  %v5568_v42 = vrot.slane %v5567_v24, 1  ;;  %v5735_v16 = vadd.f32 %v8691_v45, %v5681_v43  ;;  %v5739_v5 = vadd.f32 %v8691_v45, %v5685_v30  ;;  %v8826_v20 = vpop.eup %7390 }
 0x40c   : > { %5774 = vst [vmem:[%s9032_s7 + $0x60] sm:$0xff] %v5742_v25  ;;  %v5743_v26 = vadd.f32 %v8691_v45, %v5689_v17  ;;  %5778 = vst [vmem:[%s9032_s7 + $0x80] sm:$0xff] %v5746_v7  ;;  %v5747_v0 = vadd.f32 %v8691_v45, %v5693_v63  ;;  %v5642_v11 = vmul.f32 %v8765_v56, %v5602_v1 }
 0x40d   : > { %v5643_v51 = vmul.f32 %v8791_v55, %v5603_v62  ;;  %5763 = vst [vmem:[%s9032_s7 + $0x8] sm:$0xff] %v5731_v44  ;;  %v5624_v30 = vmul.f32 %v8826_v20, %v5584_v6  ;;  %v5569_v17 = vadd.f32 %v5568_v42, %v5567_v24  ;;  %5767 = vst [vmem:[%s9032_s7 + $0x28] sm:$0xff] %v5735_v16 }
 0x40e   : > { %v5628_v1 = vmul.f32 %v8826_v20, %v5588_v12  ;;  %5771 = vst [vmem:[%s9032_s7 + $0x48] sm:$0xff] %v5739_v5  ;;  %v5632_v28 = vmul.f32 %v8826_v20, %v5592_v57  ;;  %5775 = vst [vmem:[%s9032_s7 + $0x68] sm:$0xff] %v5743_v26  ;;  %v5636_v29 = vmul.f32 %v8826_v20, %v5596_v33 }
 0x40f   : > { %5779 = vst [vmem:[%s9032_s7 + $0x88] sm:$0xff] %v5747_v0  ;;  %v5640_v39 = vmul.f32 %v8826_v20, %v5600_v50  ;;  %v5696_v6 = vmul.f32 %v8594_v34, %v5642_v11  ;;  %v5697_v12 = vmul.f32 %v8684_v19, %v5643_v51  ;;  %v5678_v57 = vmul.f32 %v8709_v59, %v5624_v30 }
 0x410   : > { %v5573_v62 = vmul.f32 0.020408163, %v5569_v17  ;;  %v5682_v48 = vmul.f32 %v8709_v59, %v5628_v1  ;;  %v5686_v33 = vmul.f32 %v8709_v59, %v5632_v28  ;;  %v5690_v52 = vmul.f32 %v8709_v59, %v5636_v29  ;;  %v9042_v17 = vld [vmem:[#allocation5_spill] sm:$0xff]  ;;  %v9043_v1 = vld [vmem:[#allocation6_spill] sm:$0xff] }
 0x411   : > { %v5694_v9 = vmul.f32 %v8709_v59, %v5640_v39  ;;  %v5750_v27 = vadd.f32 %v8625_v54, %v5696_v6  ;;  %v5751_v4 = vadd.f32 %v8691_v45, %v5697_v12  ;;  %v5732_v50 = vadd.f32 %v8719_v58, %v5678_v57 }
 0x412   : > { %v5581_v13 = vsub.f32 %v5573_v62, %v8796_v61  ;;  %v5736_v24 = vadd.f32 %v8719_v58, %v5682_v48  ;;  %v5740_v43 = vadd.f32 %v8719_v58, %v5686_v33  ;;  %v5744_v25 = vadd.f32 %v8719_v58, %v5690_v52 }
 0x413   : > { %v5748_v7 = vadd.f32 %v8719_v58, %v5694_v9  ;;  %5782 = vst [vmem:[%s9032_s7 + $0xa0] sm:$0xff] %v5750_v27  ;;  %5783 = vst [vmem:[%s9032_s7 + $0xa8] sm:$0xff] %v5751_v4  ;;  %v5644_v61 = vmul.f32 %v8826_v20, %v5604_v46  ;;  %v5647_v46 = vmul.f32 %v8791_v55, %v5607_v2 }
 0x414   : > { %5764 = vst [vmem:[%s9032_s7 + $0x10] sm:$0xff] %v5732_v50  ;;  %v5617_v63 = vadd.f32 0.001, %v5581_v13  ;;  %5768 = vst [vmem:[%s9032_s7 + $0x30] sm:$0xff] %v5736_v24  ;;  %v9039_v44 = vsub.f32 %v8654_v36, %v8723_v37  ;;  %v9041_v36 = vsub.f32 %v8628_v60, %v8704_v38  ;;  %v5700_v16 = vmul.f32 %v8594_v34, %v5646_v40 }
 0x415   : > { %5772 = vst [vmem:[%s9032_s7 + $0x50] sm:$0xff] %v5740_v43  ;;  %5776 = vst [vmem:[%s9032_s7 + $0x70] sm:$0xff] %v5744_v25  ;;  %v5698_v14 = vmul.f32 %v8709_v59, %v5644_v61  ;;  %v5701_v5 = vmul.f32 %v8684_v19, %v5647_v46  ;;  %v5704_v11 = vmul.f32 %v8594_v34, %v5650_v8 }
 0x416   : > { %v5648_v42 = vmul.f32 %v8826_v20, %v9039_v44  ;;  %5780 = vst [vmem:[%s9032_s7 + $0x90] sm:$0xff] %v5748_v7  ;;  %v5651_v2 = vmul.f32 %v8791_v55, %v9041_v36  ;;  %7392 = vrsqrt.f32 %v5617_v63  ;;  %v5754_v60 = vadd.f32 %v8625_v54, %v5700_v16 }
 0x417   : > { %v5752_v0 = vadd.f32 %v8719_v58, %v5698_v14  ;;  %v5755_v38 = vadd.f32 %v8691_v45, %v5701_v5  ;;  %v5758_v55 = vadd.f32 %v8625_v54, %v5704_v11  ;;  %v5652_v34 = vmul.f32 %v8826_v20, %v5612_v3 }
 0x418   : > { %v5702_v26 = vmul.f32 %v8709_v59, %v5648_v42  ;;  %v5705_v15 = vmul.f32 %v8684_v19, %v5651_v2  ;;  %5786 = vst [vmem:[%s9032_s7 + $0xc0] sm:$0xff] %v5754_v60  ;;  %v5589_v19 = vsub.f32 %v8648_v22, %v8767_v21  ;;  %v5597_v37 = vsub.f32 %v8667_v53, %v8767_v21 }
 0x419   : > { %5784 = vst [vmem:[%s9032_s7 + $0xb0] sm:$0xff] %v5752_v0  ;;  %5787 = vst [vmem:[%s9032_s7 + $0xc8] sm:$0xff] %v5755_v38  ;;  %v5706_v54 = vmul.f32 %v8709_v59, %v5652_v34  ;;  %v5601_v30 = vsub.f32 %v8673_v10, %v8767_v21  ;;  %v5605_v59 = vsub.f32 %v8679_v31, %v8767_v21 }
 0x41a   : > { %v5756_v56 = vadd.f32 %v8719_v58, %v5702_v26  ;;  %v5759_v51 = vadd.f32 %v8691_v45, %v5705_v15  ;;  %5790 = vst [vmem:[%s9032_s7 + $0xe0] sm:$0xff] %v5758_v55  ;;  %v5593_v45 = vsub.f32 %v8658_v32, %v8767_v21  ;;  %v5613_v22 = vsub.f32 %v8695_v23, %v8767_v21 }
 0x41b   : > { %v5760_v20 = vadd.f32 %v8719_v58, %v5706_v54  ;;  %v5671_v32 = vrot.slane %v9043_v1, %v9042_v17  ;;  %v5725_v10 = vrot.slane %v8599_v35, %v9042_v17 }
 0x41c   : > { %5788 = vst [vmem:[%s9032_s7 + $0xd0] sm:$0xff] %v5756_v56  ;;  %5791 = vst [vmem:[%s9032_s7 + $0xe8] sm:$0xff] %v5759_v51 }
 0x41d   : > { %5792 = vst [vmem:[%s9032_s7 + $0xf0] sm:$0xff] %v5760_v20 }
 0x420   : > { %v7393_v53 = vpop.eup %7392 }
 0x421   : > { %v5625_v58 = vmul.f32 %v7393_v53, %v5585_v49  ;;  %v5629_v28 = vmul.f32 %v7393_v53, %v5589_v19  ;;  %v5633_v31 = vmul.f32 %v7393_v53, %v5593_v45  ;;  %v5637_v29 = vmul.f32 %v7393_v53, %v5597_v37 }
 0x422   : > { %v5641_v39 = vmul.f32 %v7393_v53, %v5601_v30  ;;  %v5645_v47 = vmul.f32 %v7393_v53, %v5605_v59  ;;  %v5649_v6 = vmul.f32 %v7393_v53, %v5609_v18  ;;  %v5653_v12 = vmul.f32 %v7393_v53, %v5613_v22 }
 0x423   : > { %v5679_v23 = vmul.f32 %v5671_v32, %v5625_v58  ;;  %v5683_v21 = vmul.f32 %v5671_v32, %v5629_v28  ;;  %v5687_v57 = vmul.f32 %v5671_v32, %v5633_v31  ;;  %v5691_v62 = vmul.f32 %v5671_v32, %v5637_v29 }
 0x424   : > { %v5695_v48 = vmul.f32 %v5671_v32, %v5641_v39  ;;  %v5699_v33 = vmul.f32 %v5671_v32, %v5645_v47  ;;  %v5703_v52 = vmul.f32 %v5671_v32, %v5649_v6  ;;  %v5707_v9 = vmul.f32 %v5671_v32, %v5653_v12 }
 0x425   : > { %v5733_v27 = vadd.f32 %v5725_v10, %v5679_v23  ;;  %v5737_v4 = vadd.f32 %v5725_v10, %v5683_v21  ;;  %v5741_v50 = vadd.f32 %v5725_v10, %v5687_v57  ;;  %v5745_v35 = vadd.f32 %v5725_v10, %v5691_v62 }
 0x426   : > { %v5749_v13 = vadd.f32 %v5725_v10, %v5695_v48  ;;  %v5753_v24 = vadd.f32 %v5725_v10, %v5699_v33  ;;  %v5757_v43 = vadd.f32 %v5725_v10, %v5703_v52  ;;  %v5761_v25 = vadd.f32 %v5725_v10, %v5707_v9 }
 0x427   : > { %5765 = vst [vmem:[%s9032_s7 + $0x18] sm:$0xff] %v5733_v27  ;;  %5769 = vst [vmem:[%s9032_s7 + $0x38] sm:$0xff] %v5737_v4 }
 0x428   : > { %5773 = vst [vmem:[%s9032_s7 + $0x58] sm:$0xff] %v5741_v50  ;;  %5777 = vst [vmem:[%s9032_s7 + $0x78] sm:$0xff] %v5745_v35 }
 0x429   : > { %5781 = vst [vmem:[%s9032_s7 + $0x98] sm:$0xff] %v5749_v13  ;;  %5785 = vst [vmem:[%s9032_s7 + $0xb8] sm:$0xff] %v5753_v24 }
 0x42a   : > { %5789 = vst [vmem:[%s9032_s7 + $0xd8] sm:$0xff] %v5757_v43  ;;  %5793 = vst [vmem:[%s9032_s7 + $0xf8] sm:$0xff] %v5761_v25 }
 0x42b PF: > { %p14_p12 = scmp.ge.s32.totalorder %s7479_s28, 4   ;;  %s9044_s24 = smov %s7412_s25 }
 0x42c   : > { %s9045_s25 = smov %s7488_s8  ;;  %s9046_s26 = smov %s7479_s28 }
 0x42d   :  { %16 = sbr.rel (!%p14_p12) target bundleno = 2 (0x2), region = 147 }

</bundles_post_ra>
